<compile_context>
chip_gen: v7x
topology: tpu7x:2x2x1
jax: 0.10.0
libtpu: 0.0.40
codegen_flags: <defaults>
</compile_context>

<pallas_src>
import jax
import jax.numpy as jnp
from jax.experimental import pallas as pl
from jax.experimental.pallas import tpu as pltpu

INPUT_DIM = 4   # matches self.empty_fill = [-1, -1, -1, 0]
NC = 16         # nc default of PNEncoderBatched / STNkd


# ----------------------------- packed-weight layout -----------------------------

def _build_layout(input_dim=INPUT_DIM, nc=NC):
    """Pack order + offsets for the 3 weight slabs (grouped by output lane width)."""
    # (name, cin, real_cout, slab_width)
    layers = [
        ("sd1",  input_dim,    nc,              nc),
        ("sd2",  nc,           4 * nc,          4 * nc),
        ("sd3",  4 * nc,       16 * nc,         16 * nc),
        ("sdf1", 16 * nc,      4 * nc,          4 * nc),
        ("sdf2", 4 * nc,       nc,              nc),
        ("sdf3", nc,           input_dim ** 2,  16 * nc),   # padded wide -> lane-dense transD
        ("c1",   input_dim,    nc,              nc),
        ("sf1",  nc,           nc,              nc),
        ("sf2",  nc,           4 * nc,          4 * nc),
        ("sf3",  4 * nc,       16 * nc,         16 * nc),
        ("sff1", 16 * nc,      4 * nc,          4 * nc),
        ("sff2", 4 * nc,       nc,              nc),
        ("sff3", nc,           nc * nc,         16 * nc),
        ("c2",   nc,           4 * nc,          4 * nc),
        ("c3",   4 * nc,       16 * nc,         16 * nc),
    ]
    layout = {}
    rows = {nc: 0, 4 * nc: 0, 16 * nc: 0}
    for name, cin, cout, sw in layers:
        layout[name] = (sw, rows[sw], cin, cout)
        rows[sw] += cin + 1
    return layers, layout, rows


def _pack_params(params, layers):
    """Concatenate every (W, b) pair ([Cin,Cout] + [1,Cout]) into per-width slabs."""
    src = {
        "sd1": params["stnD"][0:2],   "sd2": params["stnD"][2:4],   "sd3": params["stnD"][4:6],
        "sdf1": params["stnD"][6:8],  "sdf2": params["stnD"][8:10], "sdf3": params["stnD"][10:12],
        "c1": params["conv1"],
        "sf1": params["stnF"][0:2],   "sf2": params["stnF"][2:4],   "sf3": params["stnF"][4:6],
        "sff1": params["stnF"][6:8],  "sff2": params["stnF"][8:10], "sff3": params["stnF"][10:12],
        "c2": params["conv2"], "c3": params["conv3"],
    }
    pieces = {}
    for name, cin, cout, sw in layers:
        w, b = src[name]
        assert w.shape == (cin, cout) and b.shape == (1, cout), (name, w.shape, b.shape)
        if cout < sw:  # zero-pad extra output lanes (keeps matmul results exact in real lanes)
            w = jnp.pad(w, ((0, 0), (0, sw - cout)))
            b = jnp.pad(b, ((0, 0), (0, sw - cout)))
        pieces.setdefault(sw, []).append(jnp.concatenate([w, b], axis=0))
    return {sw: jnp.concatenate(blocks, axis=0).astype(jnp.float32)
            for sw, blocks in pieces.items()}


# ----------------------------- kernel -----------------------------

def _apply_flat_transform(x3, t_flat, k):
    """x3: [TB, N, k]; t_flat: [TB, >=k*k] row-major (k,k) matrix M per batch.
    Returns x3 @ M without in-kernel (k,k) reshapes (which would relayout
    lane data into sublanes)."""
    out = x3[:, :, 0:1] * t_flat[:, None, 0:k]
    for i in range(1, k):
        out = out + x3[:, :, i:i + 1] * t_flat[:, None, i * k:(i + 1) * k]
    return out


def _make_kernel(tb, n, layout):
    c16 = 16 * NC

    def kernel(pts_ref, s16_ref, s64_ref, s256_ref, feat_ref, tD_ref, tF_ref):
        slabs = {NC: s16_ref[...], 4 * NC: s64_ref[...], 16 * NC: s256_ref[...]}

        def dense(x, name, relu=True):
            sw, off, cin, _ = layout[name]
            s = slabs[sw]
            w = s[off:off + cin, :]
            b = s[off + cin:off + cin + 1, :]
            y = jnp.dot(x, w, preferred_element_type=jnp.float32) + b
            return jnp.maximum(y, 0.0) if relu else y

        def pool_max(x2):
            # [TB*N, C] -> per-batch max over the N points (sublane reduce).
            return jnp.max(x2.reshape(tb, n, x2.shape[-1]), axis=1)

        p3 = pts_ref[...]                                  # [TB, N, D]
        p2 = p3.reshape(tb * n, INPUT_DIM)                 # [TB*N, D]

        # ---- input transform STNkd(k=D) ----
        h = dense(p2, "sd1")
        h = dense(h, "sd2")
        h = dense(h, "sd3")                                # [TB*N, 16*nc]
        g = pool_max(h)                                    # [TB, 16*nc]
        g = dense(g, "sdf1")
        g = dense(g, "sdf2")
        tD = dense(g, "sdf3", relu=False)                  # [TB, 256]; first D*D lanes valid

        x = _apply_flat_transform(p3, tD, INPUT_DIM)       # [TB, N, D]
        x = x.reshape(tb * n, INPUT_DIM)

        # ---- conv1 ----
        x = dense(x, "c1")                                 # [TB*N, nc]

        # ---- feature transform STNkd(k=nc) ----
        h = dense(x, "sf1")
        h = dense(h, "sf2")
        h = dense(h, "sf3")                                # [TB*N, 16*nc]
        g = pool_max(h)
        g = dense(g, "sff1")
        g = dense(g, "sff2")
        tF = dense(g, "sff3", relu=False)                  # [TB, nc*nc]

        x = _apply_flat_transform(x.reshape(tb, n, NC), tF, NC)
        x = x.reshape(tb * n, NC)

        # ---- conv2 / conv3 + global max pool ----
        x = dense(x, "c2")                                 # [TB*N, 4*nc]
        x = dense(x, "c3", relu=False)                     # [TB*N, 16*nc]
        feat = pool_max(x)                                 # [TB, 16*nc]

        feat_ref[...] = feat
        tD_ref[...] = tD
        tF_ref[...] = tF

    return kernel


# ----------------------------- wrapper (glue) -----------------------------

def pn_encoder_batched(points, params, *, tb=64):
    """points: [B, N, D] padded social-vehicle states (channels last)."""
    B, N, D = points.shape
    assert D == INPUT_DIM
    assert tb % 8 == 0, "TB must be a multiple of 8 (sublane tile)"

    # Adapt the batch tile down for small B so we don't compute on padded rows.
    tb = min(tb, ((B + 7) // 8) * 8)

    layers, layout, _ = _build_layout()
    slabs = _pack_params(params, layers)
    s16, s64, s256 = slabs[NC], slabs[4 * NC], slabs[16 * NC]

    bp = ((B + tb - 1) // tb) * tb
    pts = points.astype(jnp.float32)
    if bp != B:
        pts = jnp.pad(pts, ((0, bp - B), (0, 0), (0, 0)))

    c16 = 16 * NC
    in_specs = [
        pl.BlockSpec((tb, N, D), lambda b: (b, 0, 0)),
        pl.BlockSpec(s16.shape, lambda b: (0, 0)),    # constant index_map: DMA'd once
        pl.BlockSpec(s64.shape, lambda b: (0, 0)),
        pl.BlockSpec(s256.shape, lambda b: (0, 0)),
    ]
    out_shape = tuple(jax.ShapeDtypeStruct((bp, c16), jnp.float32) for _ in range(3))
    out_specs = tuple(pl.BlockSpec((tb, c16), lambda b: (b, 0)) for _ in range(3))

    kernel = _make_kernel(tb, N, layout)

    feat, tD, tF = pl.pallas_call(
        kernel,
        out_shape=out_shape,
        grid_spec=pltpu.PrefetchScalarGridSpec(
            num_scalar_prefetch=0,
            grid=(bp // tb,),
            in_specs=in_specs,
            out_specs=out_specs,
        ),
        compiler_params=pltpu.CompilerParams(dimension_semantics=("parallel",)),
    )(pts, s16, s64, s256)

    return (feat[:B],
            tD[:B, :D * D].reshape(B, D, D),
            tF[:B].reshape(B, NC, NC))


# ----------------------------- parameter init -----------------------------

def _init_stn(key, k, nc):
    dims = [(k, nc), (nc, 4 * nc), (4 * nc, 16 * nc),
            (16 * nc, 4 * nc), (4 * nc, nc), (nc, k * k)]
    keys = jax.random.split(key, 2 * len(dims))
    p = []
    for i, (cin, cout) in enumerate(dims):
        p.append(0.1 * jax.random.normal(keys[2 * i], (cin, cout), jnp.float32))
        p.append(0.1 * jax.random.normal(keys[2 * i + 1], (1, cout), jnp.float32))
    # fold STNkd's "+ flattened identity" into the fc3 bias
    p[-1] = p[-1] + jnp.eye(k, dtype=jnp.float32).reshape(1, k * k)
    return p


def init_params(key, input_dim=INPUT_DIM, nc=NC):
    kD, kF, k1, k2, k3 = jax.random.split(key, 5)

    def conv(k, cin, cout):
        kw, kb = jax.random.split(k)
        return [0.1 * jax.random.normal(kw, (cin, cout), jnp.float32),
                0.1 * jax.random.normal(kb, (1, cout), jnp.float32)]

    return {
        "stnD": _init_stn(kD, input_dim, nc),
        "conv1": conv(k1, input_dim, nc),
        "stnF": _init_stn(kF, nc, nc),
        "conv2": conv(k2, nc, 4 * nc),
        "conv3": conv(k3, 4 * nc, 16 * nc),
    }


# ----------------------------- pure-JAX reference -----------------------------

def reference_forward(points, params):
    B, N, D = points.shape
    nc = NC

    def stn(x, p, k):
        w1, b1, w2, b2, w3, b3, wf1, bf1, wf2, bf2, wf3, bf3 = p
        h = jax.nn.relu(x @ w1 + b1)
        h = jax.nn.relu(h @ w2 + b2)
        h = jax.nn.relu(h @ w3 + b3)
        g = jnp.max(h, axis=1)
        g = jax.nn.relu(g @ wf1 + bf1)
        g = jax.nn.relu(g @ wf2 + bf2)
        g = g @ wf3 + bf3
        return g.reshape(B, k, k)

    c1_w, c1_b = params["conv1"]
    c2_w, c2_b = params["conv2"]
    c3_w, c3_b = params["conv3"]
    tD = stn(points, params["stnD"], D)
    x = jnp.einsum("bnd,bde->bne", points, tD)
    x = jax.nn.relu(x @ c1_w + c1_b)
    tF = stn(x, params["stnF"], nc)
    x = jnp.einsum("bnc,bce->bne", x, tF)
    x = jax.nn.relu(x @ c2_w + c2_b)
    x = x @ c3_w + c3_b
    return jnp.max(x, axis=1), tD, tF


# ----------------------------- main -----------------------------

if __name__ == "__main__":
    key = jax.random.PRNGKey(0)
    k_data, k_params = jax.random.split(key)

    B, N, D = 6, 8, INPUT_DIM
    lens = [5, 8, 1, 3, 8, 2]   # variable-length per-env social vehicle lists
    dkeys = jax.random.split(k_data, B)
    social_vehicles_state = [jax.random.normal(dkeys[i], (lens[i], D), jnp.float32)
                             for i in range(B)]

    # Padding glue (mirrors PNEncoderBatched.forward's empty_fill padding).
    empty_fill = jnp.array([-1.0, -1.0, -1.0, 0.0], jnp.float32)
    rows = []
    for s in social_vehicles_state:
        if s.shape[0] < N:
            pad = jnp.tile(empty_fill[None, :], (N - s.shape[0], 1))
            s = jnp.concatenate([s, pad], axis=0)
        rows.append(s)
    points = jnp.stack(rows, axis=0)  # [B, N, D]

    params = init_params(k_params)

    feat, transD, transF = pn_encoder_batched(points, params)
    jax.block_until_ready((feat, transD, transF))

    # Mirror the module's returned list-of-unsqueezed-features convention.
    social_features = [feat[i:i + 1] for i in range(B)]

    ref_feat, ref_tD, ref_tF = reference_forward(points, params)
    assert feat.shape == (B, 16 * NC) and transD.shape == (B, D, D) and transF.shape == (B, NC, NC)
    assert jnp.allclose(feat, ref_feat, atol=1e-2, rtol=1e-2)
    assert jnp.allclose(transD, ref_tD, atol=1e-2, rtol=1e-2)
    assert jnp.allclose(transF, ref_tF, atol=1e-2, rtol=1e-2)

    print("KERNEL_OK")
</pallas_src>

<mosaic_0001>
module attributes {stable_mosaic.version = 11 : i64} {
  func.func @kernel(%arg0: i32, %arg1: memref<8x8x4xf32, #tpu.memory_space<vmem>>, %arg2: memref<157x16xf32, #tpu.memory_space<vmem>>, %arg3: memref<565x64xf32, #tpu.memory_space<vmem>>, %arg4: memref<229x256xf32, #tpu.memory_space<vmem>>, %arg5: memref<8x256xf32, #tpu.memory_space<vmem>>, %arg6: memref<8x256xf32, #tpu.memory_space<vmem>>, %arg7: memref<8x256xf32, #tpu.memory_space<vmem>>) attributes {dimension_semantics = [#tpu.dimension_semantics<parallel>], iteration_bounds = array<i64: 1>, scalar_prefetch = 0 : i64, scratch_operands = 0 : i64, tpu.core_type = #tpu.core_type<tc>, window_params = [{transform_indices = @transform_0, window_bounds = array<i64: 8, 8, 4>}, {pipeline_mode = #tpu.pipeline_mode<synchronous>, transform_indices = @transform_1, window_bounds = array<i64: 157, 16>}, {pipeline_mode = #tpu.pipeline_mode<synchronous>, transform_indices = @transform_2, window_bounds = array<i64: 565, 64>}, {pipeline_mode = #tpu.pipeline_mode<synchronous>, transform_indices = @transform_3, window_bounds = array<i64: 229, 256>}, {transform_indices = @transform_4, window_bounds = array<i64: 8, 256>}, {transform_indices = @transform_5, window_bounds = array<i64: 8, 256>}, {transform_indices = @transform_6, window_bounds = array<i64: 8, 256>}]} {
    %c0 = arith.constant 0 : index
    %c0_0 = arith.constant 0 : index
    %0 = vector.load %arg2[%c0, %c0_0] : memref<157x16xf32, #tpu.memory_space<vmem>>, vector<157x16xf32>
    %c0_1 = arith.constant 0 : index
    %c0_2 = arith.constant 0 : index
    %1 = vector.load %arg3[%c0_1, %c0_2] : memref<565x64xf32, #tpu.memory_space<vmem>>, vector<565x64xf32>
    %c0_3 = arith.constant 0 : index
    %c0_4 = arith.constant 0 : index
    %2 = vector.load %arg4[%c0_3, %c0_4] : memref<229x256xf32, #tpu.memory_space<vmem>>, vector<229x256xf32>
    %c0_5 = arith.constant 0 : index
    %c0_6 = arith.constant 0 : index
    %c0_7 = arith.constant 0 : index
    %3 = vector.load %arg1[%c0_5, %c0_6, %c0_7] : memref<8x8x4xf32, #tpu.memory_space<vmem>>, vector<8x8x4xf32>
    %4 = vector.shape_cast %3 : vector<8x8x4xf32> to vector<64x4xf32>
    %5 = vector.extract_strided_slice %0 {offsets = [0, 0], sizes = [4, 16], strides = [1, 1]} : vector<157x16xf32> to vector<4x16xf32>
    %6 = vector.extract_strided_slice %0 {offsets = [4, 0], sizes = [1, 16], strides = [1, 1]} : vector<157x16xf32> to vector<1x16xf32>
    %cst = arith.constant dense<0.000000e+00> : vector<64x16xf32>
    %7 = tpu.matmul %4, %5, %cst {dimension_numbers = #tpu.dot_dimension_numbers<[1], [0], [0], [1], [0, 0, 1, 1], [], []>} : vector<64x4xf32>, vector<4x16xf32>, vector<64x16xf32> -> vector<64x16xf32>
    %8 = vector.broadcast %6 : vector<1x16xf32> to vector<64x16xf32>
    %9 = arith.addf %7, %8 : vector<64x16xf32>
    %cst_8 = arith.constant 0.000000e+00 : f32
    %10 = vector.broadcast %cst_8 : f32 to vector<64x16xf32>
    %11 = arith.maximumf %9, %10 : vector<64x16xf32>
    %12 = vector.extract_strided_slice %1 {offsets = [0, 0], sizes = [16, 64], strides = [1, 1]} : vector<565x64xf32> to vector<16x64xf32>
    %13 = vector.extract_strided_slice %1 {offsets = [16, 0], sizes = [1, 64], strides = [1, 1]} : vector<565x64xf32> to vector<1x64xf32>
    %cst_9 = arith.constant dense<0.000000e+00> : vector<64x64xf32>
    %14 = tpu.matmul %11, %12, %cst_9 {dimension_numbers = #tpu.dot_dimension_numbers<[1], [0], [0], [1], [0, 0, 1, 1], [], []>} : vector<64x16xf32>, vector<16x64xf32>, vector<64x64xf32> -> vector<64x64xf32>
    %15 = vector.broadcast %13 : vector<1x64xf32> to vector<64x64xf32>
    %16 = arith.addf %14, %15 : vector<64x64xf32>
    %cst_10 = arith.constant 0.000000e+00 : f32
    %17 = vector.broadcast %cst_10 : f32 to vector<64x64xf32>
    %18 = arith.maximumf %16, %17 : vector<64x64xf32>
    %19 = vector.extract_strided_slice %2 {offsets = [0, 0], sizes = [64, 256], strides = [1, 1]} : vector<229x256xf32> to vector<64x256xf32>
    %20 = vector.extract_strided_slice %2 {offsets = [64, 0], sizes = [1, 256], strides = [1, 1]} : vector<229x256xf32> to vector<1x256xf32>
    %cst_11 = arith.constant dense<0.000000e+00> : vector<64x256xf32>
    %21 = tpu.matmul %18, %19, %cst_11 {dimension_numbers = #tpu.dot_dimension_numbers<[1], [0], [0], [1], [0, 0, 1, 1], [], []>} : vector<64x64xf32>, vector<64x256xf32>, vector<64x256xf32> -> vector<64x256xf32>
    %22 = vector.broadcast %20 : vector<1x256xf32> to vector<64x256xf32>
    %23 = arith.addf %21, %22 : vector<64x256xf32>
    %cst_12 = arith.constant 0.000000e+00 : f32
    %24 = vector.broadcast %cst_12 : f32 to vector<64x256xf32>
    %25 = arith.maximumf %23, %24 : vector<64x256xf32>
    %26 = vector.shape_cast %25 : vector<64x256xf32> to vector<8x8x256xf32>
    %cst_13 = arith.constant dense<0xFF800000> : vector<8x256xf32>
    %27 = vector.multi_reduction <maximumf>, %26, %cst_13 [1] : vector<8x8x256xf32> to vector<8x256xf32>
    %28 = vector.extract_strided_slice %1 {offsets = [17, 0], sizes = [256, 64], strides = [1, 1]} : vector<565x64xf32> to vector<256x64xf32>
    %29 = vector.extract_strided_slice %1 {offsets = [273, 0], sizes = [1, 64], strides = [1, 1]} : vector<565x64xf32> to vector<1x64xf32>
    %cst_14 = arith.constant dense<0.000000e+00> : vector<8x64xf32>
    %30 = tpu.matmul %27, %28, %cst_14 {dimension_numbers = #tpu.dot_dimension_numbers<[1], [0], [0], [1], [0, 0, 1, 1], [], []>} : vector<8x256xf32>, vector<256x64xf32>, vector<8x64xf32> -> vector<8x64xf32>
    %31 = vector.broadcast %29 : vector<1x64xf32> to vector<8x64xf32>
    %32 = arith.addf %30, %31 : vector<8x64xf32>
    %cst_15 = arith.constant 0.000000e+00 : f32
    %33 = vector.broadcast %cst_15 : f32 to vector<8x64xf32>
    %34 = arith.maximumf %32, %33 : vector<8x64xf32>
    %35 = vector.extract_strided_slice %0 {offsets = [5, 0], sizes = [64, 16], strides = [1, 1]} : vector<157x16xf32> to vector<64x16xf32>
    %36 = vector.extract_strided_slice %0 {offsets = [69, 0], sizes = [1, 16], strides = [1, 1]} : vector<157x16xf32> to vector<1x16xf32>
    %cst_16 = arith.constant dense<0.000000e+00> : vector<8x16xf32>
    %37 = tpu.matmul %34, %35, %cst_16 {dimension_numbers = #tpu.dot_dimension_numbers<[1], [0], [0], [1], [0, 0, 1, 1], [], []>} : vector<8x64xf32>, vector<64x16xf32>, vector<8x16xf32> -> vector<8x16xf32>
    %38 = vector.broadcast %36 : vector<1x16xf32> to vector<8x16xf32>
    %39 = arith.addf %37, %38 : vector<8x16xf32>
    %cst_17 = arith.constant 0.000000e+00 : f32
    %40 = vector.broadcast %cst_17 : f32 to vector<8x16xf32>
    %41 = arith.maximumf %39, %40 : vector<8x16xf32>
    %42 = vector.extract_strided_slice %2 {offsets = [65, 0], sizes = [16, 256], strides = [1, 1]} : vector<229x256xf32> to vector<16x256xf32>
    %43 = vector.extract_strided_slice %2 {offsets = [81, 0], sizes = [1, 256], strides = [1, 1]} : vector<229x256xf32> to vector<1x256xf32>
    %cst_18 = arith.constant dense<0.000000e+00> : vector<8x256xf32>
    %44 = tpu.matmul %41, %42, %cst_18 {dimension_numbers = #tpu.dot_dimension_numbers<[1], [0], [0], [1], [0, 0, 1, 1], [], []>} : vector<8x16xf32>, vector<16x256xf32>, vector<8x256xf32> -> vector<8x256xf32>
    %45 = vector.broadcast %43 : vector<1x256xf32> to vector<8x256xf32>
    %46 = arith.addf %44, %45 : vector<8x256xf32>
    %47 = vector.extract_strided_slice %3 {offsets = [0, 0, 0], sizes = [8, 8, 1], strides = [1, 1, 1]} : vector<8x8x4xf32> to vector<8x8x1xf32>
    %48 = vector.extract_strided_slice %46 {offsets = [0, 0], sizes = [8, 4], strides = [1, 1]} : vector<8x256xf32> to vector<8x4xf32>
    %49 = vector.shape_cast %48 : vector<8x4xf32> to vector<8x1x4xf32>
    %50 = vector.broadcast %47 : vector<8x8x1xf32> to vector<8x8x4xf32>
    %51 = vector.broadcast %49 : vector<8x1x4xf32> to vector<8x8x4xf32>
    %52 = arith.mulf %50, %51 : vector<8x8x4xf32>
    %53 = vector.extract_strided_slice %3 {offsets = [0, 0, 1], sizes = [8, 8, 1], strides = [1, 1, 1]} : vector<8x8x4xf32> to vector<8x8x1xf32>
    %54 = vector.extract_strided_slice %46 {offsets = [0, 4], sizes = [8, 4], strides = [1, 1]} : vector<8x256xf32> to vector<8x4xf32>
    %55 = vector.shape_cast %54 : vector<8x4xf32> to vector<8x1x4xf32>
    %56 = vector.broadcast %53 : vector<8x8x1xf32> to vector<8x8x4xf32>
    %57 = vector.broadcast %55 : vector<8x1x4xf32> to vector<8x8x4xf32>
    %58 = arith.mulf %56, %57 : vector<8x8x4xf32>
    %59 = arith.addf %52, %58 : vector<8x8x4xf32>
    %60 = vector.extract_strided_slice %3 {offsets = [0, 0, 2], sizes = [8, 8, 1], strides = [1, 1, 1]} : vector<8x8x4xf32> to vector<8x8x1xf32>
    %61 = vector.extract_strided_slice %46 {offsets = [0, 8], sizes = [8, 4], strides = [1, 1]} : vector<8x256xf32> to vector<8x4xf32>
    %62 = vector.shape_cast %61 : vector<8x4xf32> to vector<8x1x4xf32>
    %63 = vector.broadcast %60 : vector<8x8x1xf32> to vector<8x8x4xf32>
    %64 = vector.broadcast %62 : vector<8x1x4xf32> to vector<8x8x4xf32>
    %65 = arith.mulf %63, %64 : vector<8x8x4xf32>
    %66 = arith.addf %59, %65 : vector<8x8x4xf32>
    %67 = vector.extract_strided_slice %3 {offsets = [0, 0, 3], sizes = [8, 8, 1], strides = [1, 1, 1]} : vector<8x8x4xf32> to vector<8x8x1xf32>
    %68 = vector.extract_strided_slice %46 {offsets = [0, 12], sizes = [8, 4], strides = [1, 1]} : vector<8x256xf32> to vector<8x4xf32>
    %69 = vector.shape_cast %68 : vector<8x4xf32> to vector<8x1x4xf32>
    %70 = vector.broadcast %67 : vector<8x8x1xf32> to vector<8x8x4xf32>
    %71 = vector.broadcast %69 : vector<8x1x4xf32> to vector<8x8x4xf32>
    %72 = arith.mulf %70, %71 : vector<8x8x4xf32>
    %73 = arith.addf %66, %72 : vector<8x8x4xf32>
    %74 = vector.shape_cast %73 : vector<8x8x4xf32> to vector<64x4xf32>
    %75 = vector.extract_strided_slice %0 {offsets = [70, 0], sizes = [4, 16], strides = [1, 1]} : vector<157x16xf32> to vector<4x16xf32>
    %76 = vector.extract_strided_slice %0 {offsets = [74, 0], sizes = [1, 16], strides = [1, 1]} : vector<157x16xf32> to vector<1x16xf32>
    %cst_19 = arith.constant dense<0.000000e+00> : vector<64x16xf32>
    %77 = tpu.matmul %74, %75, %cst_19 {dimension_numbers = #tpu.dot_dimension_numbers<[1], [0], [0], [1], [0, 0, 1, 1], [], []>} : vector<64x4xf32>, vector<4x16xf32>, vector<64x16xf32> -> vector<64x16xf32>
    %78 = vector.broadcast %76 : vector<1x16xf32> to vector<64x16xf32>
    %79 = arith.addf %77, %78 : vector<64x16xf32>
    %cst_20 = arith.constant 0.000000e+00 : f32
    %80 = vector.broadcast %cst_20 : f32 to vector<64x16xf32>
    %81 = arith.maximumf %79, %80 : vector<64x16xf32>
    %82 = vector.extract_strided_slice %0 {offsets = [75, 0], sizes = [16, 16], strides = [1, 1]} : vector<157x16xf32> to vector<16x16xf32>
    %83 = vector.extract_strided_slice %0 {offsets = [91, 0], sizes = [1, 16], strides = [1, 1]} : vector<157x16xf32> to vector<1x16xf32>
    %cst_21 = arith.constant dense<0.000000e+00> : vector<64x16xf32>
    %84 = tpu.matmul %81, %82, %cst_21 {dimension_numbers = #tpu.dot_dimension_numbers<[1], [0], [0], [1], [0, 0, 1, 1], [], []>} : vector<64x16xf32>, vector<16x16xf32>, vector<64x16xf32> -> vector<64x16xf32>
    %85 = vector.broadcast %83 : vector<1x16xf32> to vector<64x16xf32>
    %86 = arith.addf %84, %85 : vector<64x16xf32>
    %cst_22 = arith.constant 0.000000e+00 : f32
    %87 = vector.broadcast %cst_22 : f32 to vector<64x16xf32>
    %88 = arith.maximumf %86, %87 : vector<64x16xf32>
    %89 = vector.extract_strided_slice %1 {offsets = [274, 0], sizes = [16, 64], strides = [1, 1]} : vector<565x64xf32> to vector<16x64xf32>
    %90 = vector.extract_strided_slice %1 {offsets = [290, 0], sizes = [1, 64], strides = [1, 1]} : vector<565x64xf32> to vector<1x64xf32>
    %cst_23 = arith.constant dense<0.000000e+00> : vector<64x64xf32>
    %91 = tpu.matmul %88, %89, %cst_23 {dimension_numbers = #tpu.dot_dimension_numbers<[1], [0], [0], [1], [0, 0, 1, 1], [], []>} : vector<64x16xf32>, vector<16x64xf32>, vector<64x64xf32> -> vector<64x64xf32>
    %92 = vector.broadcast %90 : vector<1x64xf32> to vector<64x64xf32>
    %93 = arith.addf %91, %92 : vector<64x64xf32>
    %cst_24 = arith.constant 0.000000e+00 : f32
    %94 = vector.broadcast %cst_24 : f32 to vector<64x64xf32>
    %95 = arith.maximumf %93, %94 : vector<64x64xf32>
    %96 = vector.extract_strided_slice %2 {offsets = [82, 0], sizes = [64, 256], strides = [1, 1]} : vector<229x256xf32> to vector<64x256xf32>
    %97 = vector.extract_strided_slice %2 {offsets = [146, 0], sizes = [1, 256], strides = [1, 1]} : vector<229x256xf32> to vector<1x256xf32>
    %cst_25 = arith.constant dense<0.000000e+00> : vector<64x256xf32>
    %98 = tpu.matmul %95, %96, %cst_25 {dimension_numbers = #tpu.dot_dimension_numbers<[1], [0], [0], [1], [0, 0, 1, 1], [], []>} : vector<64x64xf32>, vector<64x256xf32>, vector<64x256xf32> -> vector<64x256xf32>
    %99 = vector.broadcast %97 : vector<1x256xf32> to vector<64x256xf32>
    %100 = arith.addf %98, %99 : vector<64x256xf32>
    %cst_26 = arith.constant 0.000000e+00 : f32
    %101 = vector.broadcast %cst_26 : f32 to vector<64x256xf32>
    %102 = arith.maximumf %100, %101 : vector<64x256xf32>
    %103 = vector.shape_cast %102 : vector<64x256xf32> to vector<8x8x256xf32>
    %cst_27 = arith.constant dense<0xFF800000> : vector<8x256xf32>
    %104 = vector.multi_reduction <maximumf>, %103, %cst_27 [1] : vector<8x8x256xf32> to vector<8x256xf32>
    %105 = vector.extract_strided_slice %1 {offsets = [291, 0], sizes = [256, 64], strides = [1, 1]} : vector<565x64xf32> to vector<256x64xf32>
    %106 = vector.extract_strided_slice %1 {offsets = [547, 0], sizes = [1, 64], strides = [1, 1]} : vector<565x64xf32> to vector<1x64xf32>
    %cst_28 = arith.constant dense<0.000000e+00> : vector<8x64xf32>
    %107 = tpu.matmul %104, %105, %cst_28 {dimension_numbers = #tpu.dot_dimension_numbers<[1], [0], [0], [1], [0, 0, 1, 1], [], []>} : vector<8x256xf32>, vector<256x64xf32>, vector<8x64xf32> -> vector<8x64xf32>
    %108 = vector.broadcast %106 : vector<1x64xf32> to vector<8x64xf32>
    %109 = arith.addf %107, %108 : vector<8x64xf32>
    %cst_29 = arith.constant 0.000000e+00 : f32
    %110 = vector.broadcast %cst_29 : f32 to vector<8x64xf32>
    %111 = arith.maximumf %109, %110 : vector<8x64xf32>
    %112 = vector.extract_strided_slice %0 {offsets = [92, 0], sizes = [64, 16], strides = [1, 1]} : vector<157x16xf32> to vector<64x16xf32>
    %113 = vector.extract_strided_slice %0 {offsets = [156, 0], sizes = [1, 16], strides = [1, 1]} : vector<157x16xf32> to vector<1x16xf32>
    %cst_30 = arith.constant dense<0.000000e+00> : vector<8x16xf32>
    %114 = tpu.matmul %111, %112, %cst_30 {dimension_numbers = #tpu.dot_dimension_numbers<[1], [0], [0], [1], [0, 0, 1, 1], [], []>} : vector<8x64xf32>, vector<64x16xf32>, vector<8x16xf32> -> vector<8x16xf32>
    %115 = vector.broadcast %113 : vector<1x16xf32> to vector<8x16xf32>
    %116 = arith.addf %114, %115 : vector<8x16xf32>
    %cst_31 = arith.constant 0.000000e+00 : f32
    %117 = vector.broadcast %cst_31 : f32 to vector<8x16xf32>
    %118 = arith.maximumf %116, %117 : vector<8x16xf32>
    %119 = vector.extract_strided_slice %2 {offsets = [147, 0], sizes = [16, 256], strides = [1, 1]} : vector<229x256xf32> to vector<16x256xf32>
    %120 = vector.extract_strided_slice %2 {offsets = [163, 0], sizes = [1, 256], strides = [1, 1]} : vector<229x256xf32> to vector<1x256xf32>
    %cst_32 = arith.constant dense<0.000000e+00> : vector<8x256xf32>
    %121 = tpu.matmul %118, %119, %cst_32 {dimension_numbers = #tpu.dot_dimension_numbers<[1], [0], [0], [1], [0, 0, 1, 1], [], []>} : vector<8x16xf32>, vector<16x256xf32>, vector<8x256xf32> -> vector<8x256xf32>
    %122 = vector.broadcast %120 : vector<1x256xf32> to vector<8x256xf32>
    %123 = arith.addf %121, %122 : vector<8x256xf32>
    %124 = vector.shape_cast %81 : vector<64x16xf32> to vector<8x8x16xf32>
    %125 = vector.extract_strided_slice %124 {offsets = [0, 0, 0], sizes = [8, 8, 1], strides = [1, 1, 1]} : vector<8x8x16xf32> to vector<8x8x1xf32>
    %126 = vector.extract_strided_slice %123 {offsets = [0, 0], sizes = [8, 16], strides = [1, 1]} : vector<8x256xf32> to vector<8x16xf32>
    %127 = vector.shape_cast %126 : vector<8x16xf32> to vector<8x1x16xf32>
    %128 = vector.broadcast %125 : vector<8x8x1xf32> to vector<8x8x16xf32>
    %129 = vector.broadcast %127 : vector<8x1x16xf32> to vector<8x8x16xf32>
    %130 = arith.mulf %128, %129 : vector<8x8x16xf32>
    %131 = vector.extract_strided_slice %124 {offsets = [0, 0, 1], sizes = [8, 8, 1], strides = [1, 1, 1]} : vector<8x8x16xf32> to vector<8x8x1xf32>
    %132 = vector.extract_strided_slice %123 {offsets = [0, 16], sizes = [8, 16], strides = [1, 1]} : vector<8x256xf32> to vector<8x16xf32>
    %133 = vector.shape_cast %132 : vector<8x16xf32> to vector<8x1x16xf32>
    %134 = vector.broadcast %131 : vector<8x8x1xf32> to vector<8x8x16xf32>
    %135 = vector.broadcast %133 : vector<8x1x16xf32> to vector<8x8x16xf32>
    %136 = arith.mulf %134, %135 : vector<8x8x16xf32>
    %137 = arith.addf %130, %136 : vector<8x8x16xf32>
    %138 = vector.extract_strided_slice %124 {offsets = [0, 0, 2], sizes = [8, 8, 1], strides = [1, 1, 1]} : vector<8x8x16xf32> to vector<8x8x1xf32>
    %139 = vector.extract_strided_slice %123 {offsets = [0, 32], sizes = [8, 16], strides = [1, 1]} : vector<8x256xf32> to vector<8x16xf32>
    %140 = vector.shape_cast %139 : vector<8x16xf32> to vector<8x1x16xf32>
    %141 = vector.broadcast %138 : vector<8x8x1xf32> to vector<8x8x16xf32>
    %142 = vector.broadcast %140 : vector<8x1x16xf32> to vector<8x8x16xf32>
    %143 = arith.mulf %141, %142 : vector<8x8x16xf32>
    %144 = arith.addf %137, %143 : vector<8x8x16xf32>
    %145 = vector.extract_strided_slice %124 {offsets = [0, 0, 3], sizes = [8, 8, 1], strides = [1, 1, 1]} : vector<8x8x16xf32> to vector<8x8x1xf32>
    %146 = vector.extract_strided_slice %123 {offsets = [0, 48], sizes = [8, 16], strides = [1, 1]} : vector<8x256xf32> to vector<8x16xf32>
    %147 = vector.shape_cast %146 : vector<8x16xf32> to vector<8x1x16xf32>
    %148 = vector.broadcast %145 : vector<8x8x1xf32> to vector<8x8x16xf32>
    %149 = vector.broadcast %147 : vector<8x1x16xf32> to vector<8x8x16xf32>
    %150 = arith.mulf %148, %149 : vector<8x8x16xf32>
    %151 = arith.addf %144, %150 : vector<8x8x16xf32>
    %152 = vector.extract_strided_slice %124 {offsets = [0, 0, 4], sizes = [8, 8, 1], strides = [1, 1, 1]} : vector<8x8x16xf32> to vector<8x8x1xf32>
    %153 = vector.extract_strided_slice %123 {offsets = [0, 64], sizes = [8, 16], strides = [1, 1]} : vector<8x256xf32> to vector<8x16xf32>
    %154 = vector.shape_cast %153 : vector<8x16xf32> to vector<8x1x16xf32>
    %155 = vector.broadcast %152 : vector<8x8x1xf32> to vector<8x8x16xf32>
    %156 = vector.broadcast %154 : vector<8x1x16xf32> to vector<8x8x16xf32>
    %157 = arith.mulf %155, %156 : vector<8x8x16xf32>
    %158 = arith.addf %151, %157 : vector<8x8x16xf32>
    %159 = vector.extract_strided_slice %124 {offsets = [0, 0, 5], sizes = [8, 8, 1], strides = [1, 1, 1]} : vector<8x8x16xf32> to vector<8x8x1xf32>
    %160 = vector.extract_strided_slice %123 {offsets = [0, 80], sizes = [8, 16], strides = [1, 1]} : vector<8x256xf32> to vector<8x16xf32>
    %161 = vector.shape_cast %160 : vector<8x16xf32> to vector<8x1x16xf32>
    %162 = vector.broadcast %159 : vector<8x8x1xf32> to vector<8x8x16xf32>
    %163 = vector.broadcast %161 : vector<8x1x16xf32> to vector<8x8x16xf32>
    %164 = arith.mulf %162, %163 : vector<8x8x16xf32>
    %165 = arith.addf %158, %164 : vector<8x8x16xf32>
    %166 = vector.extract_strided_slice %124 {offsets = [0, 0, 6], sizes = [8, 8, 1], strides = [1, 1, 1]} : vector<8x8x16xf32> to vector<8x8x1xf32>
    %167 = vector.extract_strided_slice %123 {offsets = [0, 96], sizes = [8, 16], strides = [1, 1]} : vector<8x256xf32> to vector<8x16xf32>
    %168 = vector.shape_cast %167 : vector<8x16xf32> to vector<8x1x16xf32>
    %169 = vector.broadcast %166 : vector<8x8x1xf32> to vector<8x8x16xf32>
    %170 = vector.broadcast %168 : vector<8x1x16xf32> to vector<8x8x16xf32>
    %171 = arith.mulf %169, %170 : vector<8x8x16xf32>
    %172 = arith.addf %165, %171 : vector<8x8x16xf32>
    %173 = vector.extract_strided_slice %124 {offsets = [0, 0, 7], sizes = [8, 8, 1], strides = [1, 1, 1]} : vector<8x8x16xf32> to vector<8x8x1xf32>
    %174 = vector.extract_strided_slice %123 {offsets = [0, 112], sizes = [8, 16], strides = [1, 1]} : vector<8x256xf32> to vector<8x16xf32>
    %175 = vector.shape_cast %174 : vector<8x16xf32> to vector<8x1x16xf32>
    %176 = vector.broadcast %173 : vector<8x8x1xf32> to vector<8x8x16xf32>
    %177 = vector.broadcast %175 : vector<8x1x16xf32> to vector<8x8x16xf32>
    %178 = arith.mulf %176, %177 : vector<8x8x16xf32>
    %179 = arith.addf %172, %178 : vector<8x8x16xf32>
    %180 = vector.extract_strided_slice %124 {offsets = [0, 0, 8], sizes = [8, 8, 1], strides = [1, 1, 1]} : vector<8x8x16xf32> to vector<8x8x1xf32>
    %181 = vector.extract_strided_slice %123 {offsets = [0, 128], sizes = [8, 16], strides = [1, 1]} : vector<8x256xf32> to vector<8x16xf32>
    %182 = vector.shape_cast %181 : vector<8x16xf32> to vector<8x1x16xf32>
    %183 = vector.broadcast %180 : vector<8x8x1xf32> to vector<8x8x16xf32>
    %184 = vector.broadcast %182 : vector<8x1x16xf32> to vector<8x8x16xf32>
    %185 = arith.mulf %183, %184 : vector<8x8x16xf32>
    %186 = arith.addf %179, %185 : vector<8x8x16xf32>
    %187 = vector.extract_strided_slice %124 {offsets = [0, 0, 9], sizes = [8, 8, 1], strides = [1, 1, 1]} : vector<8x8x16xf32> to vector<8x8x1xf32>
    %188 = vector.extract_strided_slice %123 {offsets = [0, 144], sizes = [8, 16], strides = [1, 1]} : vector<8x256xf32> to vector<8x16xf32>
    %189 = vector.shape_cast %188 : vector<8x16xf32> to vector<8x1x16xf32>
    %190 = vector.broadcast %187 : vector<8x8x1xf32> to vector<8x8x16xf32>
    %191 = vector.broadcast %189 : vector<8x1x16xf32> to vector<8x8x16xf32>
    %192 = arith.mulf %190, %191 : vector<8x8x16xf32>
    %193 = arith.addf %186, %192 : vector<8x8x16xf32>
    %194 = vector.extract_strided_slice %124 {offsets = [0, 0, 10], sizes = [8, 8, 1], strides = [1, 1, 1]} : vector<8x8x16xf32> to vector<8x8x1xf32>
    %195 = vector.extract_strided_slice %123 {offsets = [0, 160], sizes = [8, 16], strides = [1, 1]} : vector<8x256xf32> to vector<8x16xf32>
    %196 = vector.shape_cast %195 : vector<8x16xf32> to vector<8x1x16xf32>
    %197 = vector.broadcast %194 : vector<8x8x1xf32> to vector<8x8x16xf32>
    %198 = vector.broadcast %196 : vector<8x1x16xf32> to vector<8x8x16xf32>
    %199 = arith.mulf %197, %198 : vector<8x8x16xf32>
    %200 = arith.addf %193, %199 : vector<8x8x16xf32>
    %201 = vector.extract_strided_slice %124 {offsets = [0, 0, 11], sizes = [8, 8, 1], strides = [1, 1, 1]} : vector<8x8x16xf32> to vector<8x8x1xf32>
    %202 = vector.extract_strided_slice %123 {offsets = [0, 176], sizes = [8, 16], strides = [1, 1]} : vector<8x256xf32> to vector<8x16xf32>
    %203 = vector.shape_cast %202 : vector<8x16xf32> to vector<8x1x16xf32>
    %204 = vector.broadcast %201 : vector<8x8x1xf32> to vector<8x8x16xf32>
    %205 = vector.broadcast %203 : vector<8x1x16xf32> to vector<8x8x16xf32>
    %206 = arith.mulf %204, %205 : vector<8x8x16xf32>
    %207 = arith.addf %200, %206 : vector<8x8x16xf32>
    %208 = vector.extract_strided_slice %124 {offsets = [0, 0, 12], sizes = [8, 8, 1], strides = [1, 1, 1]} : vector<8x8x16xf32> to vector<8x8x1xf32>
    %209 = vector.extract_strided_slice %123 {offsets = [0, 192], sizes = [8, 16], strides = [1, 1]} : vector<8x256xf32> to vector<8x16xf32>
    %210 = vector.shape_cast %209 : vector<8x16xf32> to vector<8x1x16xf32>
    %211 = vector.broadcast %208 : vector<8x8x1xf32> to vector<8x8x16xf32>
    %212 = vector.broadcast %210 : vector<8x1x16xf32> to vector<8x8x16xf32>
    %213 = arith.mulf %211, %212 : vector<8x8x16xf32>
    %214 = arith.addf %207, %213 : vector<8x8x16xf32>
    %215 = vector.extract_strided_slice %124 {offsets = [0, 0, 13], sizes = [8, 8, 1], strides = [1, 1, 1]} : vector<8x8x16xf32> to vector<8x8x1xf32>
    %216 = vector.extract_strided_slice %123 {offsets = [0, 208], sizes = [8, 16], strides = [1, 1]} : vector<8x256xf32> to vector<8x16xf32>
    %217 = vector.shape_cast %216 : vector<8x16xf32> to vector<8x1x16xf32>
    %218 = vector.broadcast %215 : vector<8x8x1xf32> to vector<8x8x16xf32>
    %219 = vector.broadcast %217 : vector<8x1x16xf32> to vector<8x8x16xf32>
    %220 = arith.mulf %218, %219 : vector<8x8x16xf32>
    %221 = arith.addf %214, %220 : vector<8x8x16xf32>
    %222 = vector.extract_strided_slice %124 {offsets = [0, 0, 14], sizes = [8, 8, 1], strides = [1, 1, 1]} : vector<8x8x16xf32> to vector<8x8x1xf32>
    %223 = vector.extract_strided_slice %123 {offsets = [0, 224], sizes = [8, 16], strides = [1, 1]} : vector<8x256xf32> to vector<8x16xf32>
    %224 = vector.shape_cast %223 : vector<8x16xf32> to vector<8x1x16xf32>
    %225 = vector.broadcast %222 : vector<8x8x1xf32> to vector<8x8x16xf32>
    %226 = vector.broadcast %224 : vector<8x1x16xf32> to vector<8x8x16xf32>
    %227 = arith.mulf %225, %226 : vector<8x8x16xf32>
    %228 = arith.addf %221, %227 : vector<8x8x16xf32>
    %229 = vector.extract_strided_slice %124 {offsets = [0, 0, 15], sizes = [8, 8, 1], strides = [1, 1, 1]} : vector<8x8x16xf32> to vector<8x8x1xf32>
    %230 = vector.extract_strided_slice %123 {offsets = [0, 240], sizes = [8, 16], strides = [1, 1]} : vector<8x256xf32> to vector<8x16xf32>
    %231 = vector.shape_cast %230 : vector<8x16xf32> to vector<8x1x16xf32>
    %232 = vector.broadcast %229 : vector<8x8x1xf32> to vector<8x8x16xf32>
    %233 = vector.broadcast %231 : vector<8x1x16xf32> to vector<8x8x16xf32>
    %234 = arith.mulf %232, %233 : vector<8x8x16xf32>
    %235 = arith.addf %228, %234 : vector<8x8x16xf32>
    %236 = vector.shape_cast %235 : vector<8x8x16xf32> to vector<64x16xf32>
    %237 = vector.extract_strided_slice %1 {offsets = [548, 0], sizes = [16, 64], strides = [1, 1]} : vector<565x64xf32> to vector<16x64xf32>
    %238 = vector.extract_strided_slice %1 {offsets = [564, 0], sizes = [1, 64], strides = [1, 1]} : vector<565x64xf32> to vector<1x64xf32>
    %cst_33 = arith.constant dense<0.000000e+00> : vector<64x64xf32>
    %239 = tpu.matmul %236, %237, %cst_33 {dimension_numbers = #tpu.dot_dimension_numbers<[1], [0], [0], [1], [0, 0, 1, 1], [], []>} : vector<64x16xf32>, vector<16x64xf32>, vector<64x64xf32> -> vector<64x64xf32>
    %240 = vector.broadcast %238 : vector<1x64xf32> to vector<64x64xf32>
    %241 = arith.addf %239, %240 : vector<64x64xf32>
    %cst_34 = arith.constant 0.000000e+00 : f32
    %242 = vector.broadcast %cst_34 : f32 to vector<64x64xf32>
    %243 = arith.maximumf %241, %242 : vector<64x64xf32>
    %244 = vector.extract_strided_slice %2 {offsets = [164, 0], sizes = [64, 256], strides = [1, 1]} : vector<229x256xf32> to vector<64x256xf32>
    %245 = vector.extract_strided_slice %2 {offsets = [228, 0], sizes = [1, 256], strides = [1, 1]} : vector<229x256xf32> to vector<1x256xf32>
    %cst_35 = arith.constant dense<0.000000e+00> : vector<64x256xf32>
    %246 = tpu.matmul %243, %244, %cst_35 {dimension_numbers = #tpu.dot_dimension_numbers<[1], [0], [0], [1], [0, 0, 1, 1], [], []>} : vector<64x64xf32>, vector<64x256xf32>, vector<64x256xf32> -> vector<64x256xf32>
    %247 = vector.broadcast %245 : vector<1x256xf32> to vector<64x256xf32>
    %248 = arith.addf %246, %247 : vector<64x256xf32>
    %249 = vector.shape_cast %248 : vector<64x256xf32> to vector<8x8x256xf32>
    %cst_36 = arith.constant dense<0xFF800000> : vector<8x256xf32>
    %250 = vector.multi_reduction <maximumf>, %249, %cst_36 [1] : vector<8x8x256xf32> to vector<8x256xf32>
    %c0_37 = arith.constant 0 : index
    %c0_38 = arith.constant 0 : index
    %251 = vector.load %arg5[%c0_37, %c0_38] : memref<8x256xf32, #tpu.memory_space<vmem>>, vector<8x256xf32>
    tpu.vector_store %arg5[%c0_37, %c0_38], %250 {strides = array<i32>} : memref<8x256xf32, #tpu.memory_space<vmem>>, vector<8x256xf32>,
    %c0_39 = arith.constant 0 : index
    %c0_40 = arith.constant 0 : index
    %252 = vector.load %arg6[%c0_39, %c0_40] : memref<8x256xf32, #tpu.memory_space<vmem>>, vector<8x256xf32>
    tpu.vector_store %arg6[%c0_39, %c0_40], %46 {strides = array<i32>} : memref<8x256xf32, #tpu.memory_space<vmem>>, vector<8x256xf32>,
    %c0_41 = arith.constant 0 : index
    %c0_42 = arith.constant 0 : index
    %253 = vector.load %arg7[%c0_41, %c0_42] : memref<8x256xf32, #tpu.memory_space<vmem>>, vector<8x256xf32>
    tpu.vector_store %arg7[%c0_41, %c0_42], %123 {strides = array<i32>} : memref<8x256xf32, #tpu.memory_space<vmem>>, vector<8x256xf32>,
    return
  }
  func.func @transform_0(%arg0: i32) -> (i32, i32, i32) {
    %c0_i32 = arith.constant 0 : i32
    %c0_i32_0 = arith.constant 0 : i32
    %c0_i32_1 = arith.constant 0 : i32
    return %arg0, %c0_i32, %c0_i32_0 : i32, i32, i32
  }
  func.func @transform_1(%arg0: i32) -> (i32, i32) {
    %c0_i32 = arith.constant 0 : i32
    %c0_i32_0 = arith.constant 0 : i32
    %c0_i32_1 = arith.constant 0 : i32
    return %c0_i32, %c0_i32_0 : i32, i32
  }
  func.func @transform_2(%arg0: i32) -> (i32, i32) {
    %c0_i32 = arith.constant 0 : i32
    %c0_i32_0 = arith.constant 0 : i32
    %c0_i32_1 = arith.constant 0 : i32
    return %c0_i32, %c0_i32_0 : i32, i32
  }
  func.func @transform_3(%arg0: i32) -> (i32, i32) {
    %c0_i32 = arith.constant 0 : i32
    %c0_i32_0 = arith.constant 0 : i32
    %c0_i32_1 = arith.constant 0 : i32
    return %c0_i32, %c0_i32_0 : i32, i32
  }
  func.func @transform_4(%arg0: i32) -> (i32, i32) {
    %c0_i32 = arith.constant 0 : i32
    %c0_i32_0 = arith.constant 0 : i32
    return %arg0, %c0_i32 : i32, i32
  }
  func.func @transform_5(%arg0: i32) -> (i32, i32) {
    %c0_i32 = arith.constant 0 : i32
    %c0_i32_0 = arith.constant 0 : i32
    return %arg0, %c0_i32 : i32, i32
  }
  func.func @transform_6(%arg0: i32) -> (i32, i32) {
    %c0_i32 = arith.constant 0 : i32
    %c0_i32_0 = arith.constant 0 : i32
    return %arg0, %c0_i32 : i32, i32
  }
}

</mosaic_0001>

<bundles_post_ra>
// kernel: tpu_custom_call.1
= control target key start
LH: loop header
LB: loop body
LE: loop exit
PB: predicated region body
PF: predicated region fallthrough
CT: control target
= control target key end

     0   :  { %12 = vsyncpa [#allocation3], 0  ;;  %vm208_vm0 = vcmask 1043456   ;;  %vm183_vm1 = vcmask 31744   ;;  %s7767_s0 = inlined_call_operand.vmem [shape: f32[8,8,4], index: 0, kind: input, shape index: {}]   ;;  %s7768_s1 = inlined_call_operand.vmem [shape: f32[157,16], index: 1, kind: input, shape index: {}]   ;;  %s7769_s2 = inlined_call_operand.vmem [shape: f32[565,64], index: 2, kind: input, shape index: {}]   ;;  %s7770_s3 = inlined_call_operand.vmem [shape: f32[229,256], index: 3, kind: input, shape index: {}]   ;;  %s7771_s4 = inlined_call_operand.hbm [shape: f32[8,256], index: 4, kind: output, shape index: {0}]   ;;  %s7772_s5 = inlined_call_operand.hbm [shape: f32[8,256], index: 5, kind: output, shape index: {1}]   ;;  %s7773_s6 = inlined_call_operand.hbm [shape: f32[8,256], index: 6, kind: output, shape index: {2}]  }
   0x1   :  { %v5545_v0 = vld [vmem:[%s7768_s1] sm:$0xff]  ;;  %v5556_v2 = vld [vmem:[%s7767_s0 + $0x8] sm:$0xff]  ;;  %v173_v3 = vld [vmem:[%s7767_s0 + $0x10] sm:$0xff] }
   0x2   :  { %v171_v1 = vld [vmem:[%s7767_s0] sm:$0xff]  ;;  %4922 = vmatprep.subr.msk.mxu0 %vm208_vm0, %v5545_v0 }
   0x3   :  { %4924 = vmatprep.mubr.msk.f32.mxu0 %vm183_vm1, %v171_v1  ;;  %4923 = vmatpush3.msk.msra.mxu0 %vm208_vm0, %v5545_v0 }
   0x4   :  { %4925 = vmatmul.mubr.msk.f32.vlgmr.msra.gmra.mrb[0].mxu0 %vm183_vm1, %v5556_v2 }
   0x5   :  { %13 = vsyncpa [#allocation5], 0  ;;  %4927 = vmatprep.mubr.msk.f32.mxu0 %vm183_vm1, %v173_v3  ;;  %v5569_v4 = vld [vmem:[%s7767_s0 + $0x18] sm:$0xff]  ;;  %v175_v5 = vld [vmem:[%s7767_s0 + $0x20] sm:$0xff]  ;;  %v179_v30 = vlaneseq  ;;  %vm329_vm2 = vcmask 130048   ;;  %v7774_v1 = vmov 0.0  }
   0x6   :  { %v176_v6 = vld [vmem:[%s7767_s0 + $0x28] sm:$0xff]  ;;  %v177_v7 = vld [vmem:[%s7767_s0 + $0x30] sm:$0xff]  ;;  %v178_v8 = vld [vmem:[%s7767_s0 + $0x38] sm:$0xff]  ;;  %vm475_vm3 = vcmask 523264   ;;  %vm801_vm4 = vcmask 1046528   ;;  %vm745_vm5 = vcmask 1041409  }
   0x7   :  { %v42_v9 = vld [vmem:[%s7769_s2] sm:$0xff]  ;;  %v43_v10 = vld [vmem:[%s7769_s2 + $0x8] sm:$0xff]  ;;  %v116_v13 = vld [vmem:[%s7770_s3 + $0x18] sm:$0xff]  ;;  %v5631_v31 = vshrl.u32 %v179_v30, 7  ;;  %vm747_vm6 = vcmask 1042434   ;;  %vm749_vm7 = vcmask 1043459  }
   0x8   :  { %4928 = vmatmul.mubr.msk.f32.gmra.mrb[2].mxu0 %vm183_vm1, %v5569_v4  ;;  %v5052_v11 = vpack.c.bf16 %v43_v10, %v42_v9  ;;  %v114_v12 = vld [vmem:[%s7770_s3 + $0x8] sm:$0xff]  ;;  %v113_v14 = vld [vmem:[%s7770_s3] sm:$0xff]  ;;  %v115_v16 = vld [vmem:[%s7770_s3 + $0x10] sm:$0xff]  ;;  %vm751_vm8 = vcmask 1044484   ;;  %vm753_vm9 = vcmask 1045509   ;;  %vm982_vm10 = vcmask 1042432  }
   0x9   :  { %4930 = vmatprep.mubr.msk.f32.mxu0 %vm183_vm1, %v175_v5  ;;  %v5056_v15 = vpack.c.bf16 %v116_v13, %v114_v12  ;;  %v118_v17 = vld [vmem:[%s7770_s3 + $0x28] sm:$0xff]  ;;  %v120_v18 = vld [vmem:[%s7770_s3 + $0x38] sm:$0xff]  ;;  %v5058_v19 = vpack.c.bf16 %v115_v16, %v113_v14  ;;  %v117_v21 = vld [vmem:[%s7770_s3 + $0x20] sm:$0xff]  ;;  %v5634_v32 = vsub.s32 4, %v5631_v31  ;;  %v5660_v3 = vsub.s32 0, %v5631_v31  ;;  %s5482_s18 = smov 124  }
   0xa   :  { %5053 = vmatprep.subr.bf16.mxu1 %v5052_v11  ;;  %v5060_v20 = vpack.c.bf16 %v120_v18, %v118_v17  ;;  %v119_v22 = vld [vmem:[%s7770_s3 + $0x30] sm:$0xff]  ;;  %v122_v23 = vld [vmem:[%s7770_s3 + $0x48] sm:$0xff]  ;;  %v124_v24 = vld [vmem:[%s7770_s3 + $0x58] sm:$0xff]  ;;  %vm755_vm11 = vcmask 1046534   ;;  %vm757_vm12 = vcmask 1047559   ;;  %vm5476_vm13 = vmmov 0  }
   0xb   :  { %5055 = vmatpush3.bf16.msra.mxu1 %v5052_v11  ;;  %5057 = vmatprep.subr.bf16.mxu0 %v5056_v15  ;;  %v5062_v25 = vpack.c.bf16 %v119_v22, %v117_v21  ;;  %v5064_v26 = vpack.c.bf16 %v124_v24, %v122_v23  ;;  %v121_v27 = vld [vmem:[%s7770_s3 + $0x40] sm:$0xff]  ;;  %v123_v28 = vld [vmem:[%s7770_s3 + $0x50] sm:$0xff]  ;;  %7779 = vst [vmem:[#allocation9_spill] sm:$0xff] %v5634_v32  ;;  %v126_v58 = vld [vmem:[%s7770_s3 + $0x68] sm:$0xff]  ;;  %vm1559_vm14 = vcmask 1041408   ;;  %s5483_s19 = smov 120  }
   0xc   :  { %4931 = vmatmul.mubr.msk.f32.gmra.mrb[4].mxu0 %vm183_vm1, %v176_v6  ;;  %v5066_v29 = vpack.c.bf16 %v123_v28, %v121_v27  ;;  %v182_v33 = vrot.slane %v5545_v0, %v5634_v32  ;;  %v128_v59 = vld [vmem:[%s7770_s3 + $0x78] sm:$0xff]  ;;  %v125_v61 = vld [vmem:[%s7770_s3 + $0x60] sm:$0xff]  ;;  %v127_v62 = vld [vmem:[%s7770_s3 + $0x70] sm:$0xff]  ;;  %s5484_s20 = smov 116   ;;  %vm1708_vm15 = vcmask 1044480   ;;  %s5497_s7 = smov 96  }
   0xd   :  { %4933 = vmatprep.mubr.msk.f32.mxu0 %vm183_vm1, %v177_v7  ;;  %5059 = vmatpush1.bf16.msra.mxu0 %v5058_v19  ;;  %v5068_v60 = vpack.c.bf16 %v128_v59, %v126_v58  ;;  %v5070_v63 = vpack.c.bf16 %v127_v62, %v125_v61  ;;  %v44_v5 = vld [vmem:[%s7769_s2 + $0x10] sm:$0xff]  ;;  %s5498_s8 = smov 112   ;;  %s5499_s9 = smov 80  }
   0xe   :  { %5061 = vmatprep.subr.bf16.mxu0 %v5060_v20  ;;  %v328_v6 = vrot.slane %v44_v5, %v5660_v3  ;;  %s5500_s10 = smov 64   ;;  %s5501_s11 = smov 32  }
   0xf   :  { %s5502_s12 = smov 48   ;;  %s5503_s13 = smov 16  }
  0x10   :  { %4934 = vmatmul.mubr.msk.f32.gmra.mrb[6].mxu0 %vm183_vm1, %v178_v8 }
  0x11   :  { %5063 = vmatpush1.bf16.msra.mxu0 %v5062_v25  ;;  %564 = vmatprep.mubr.f32.mxu0 %v7774_v1 }
  0x12   :  { %5065 = vmatprep.subr.bf16.mxu0 %v5064_v26 }
  0x15   :  { %5067 = vmatpush1.bf16.msra.mxu0 %v5066_v29 }
  0x16   :  { %5069 = vmatprep.subr.bf16.mxu0 %v5068_v60 }
  0x19   :  { %5071 = vmatpush1.bf16.msra.mxu0 %v5070_v63  ;;  %v65_v63 = vld [vmem:[%s7769_s2 + $0xb8] sm:$0xff] }
  0xd7   :  { %v4926_v34 = vpop.f32.mrb[0].mxu0 }
  0xd8   :  { %v284_v35 = vadd.f32 %v4926_v34, %v182_v33  ;;  %v278_v36 = vpop.f32.mrb[1].mxu0  ;;  %v61_v34 = vld [vmem:[%s7769_s2 + $0x98] sm:$0xff] }
  0xd9   :  { %v279_v37 = vadd.f32 %v278_v36, %v182_v33 }
  0xda   :  { %v318_v40 = vmax.f32 %v284_v35, 0.0  ;;  %v62_v35 = vld [vmem:[%s7769_s2 + $0xa0] sm:$0xff] }
  0xdb   :  { %v317_v38 = vmax.f32 %v279_v37, 0.0  ;;  %v4929_v39 = vpop.f32.mrb[2].mxu0  ;;  %v835_v37 = vrot.slane %v61_v34, 1 }
  0xdc   :  { %v294_v41 = vadd.f32 %v4929_v39, %v182_v33  ;;  %v288_v42 = vpop.f32.mrb[3].mxu0  ;;  %v45_v39 = vld [vmem:[%s7769_s2 + $0x18] sm:$0xff] }
  0xdd   :  { %v289_v43 = vadd.f32 %v288_v42, %v182_v33  ;;  %4940 = vmatprep.mubr.msk.f32.mxu1 %vm329_vm2, %v317_v38  ;;  %v837_v38 = vrot.slane %v62_v35, 1  ;;  %v803_v42 = vrot.slane %v45_v39, 1  ;;  %v69_v35 = vld [vmem:[%s7769_s2 + $0xd8] sm:$0xff] }
  0xde   :  { %v320_v44 = vmax.f32 %v294_v41, 0.0  ;;  %4941 = vmatmul.mubr.msk.f32.vlgmr.msra.gmra.mrb[0].mxu1 %vm329_vm2, %v318_v40  ;;  %v46_v40 = vld [vmem:[%s7769_s2 + $0x20] sm:$0xff]  ;;  %v802_v41 = vrot.slane %v44_v5, 1  ;;  %v851_v39 = vrot.slane %v69_v35, 1  ;;  %v5475_v35 = vmov 0.0|0.0  }
  0xdf   :  { %v319_v45 = vmax.f32 %v289_v43, 0.0  ;;  %v4932_v46 = vpop.f32.mrb[4].mxu0  ;;  %v805_v43 = vrot.slane %v46_v40, 1  ;;  %v66_v5 = vld [vmem:[%s7769_s2 + $0xc0] sm:$0xff] }
  0xe0   :  { %v304_v47 = vadd.f32 %v4932_v46, %v182_v33  ;;  %v298_v48 = vpop.f32.mrb[5].mxu0 }
  0xe1   :  { %4943 = vmatprep.mubr.msk.f32.mxu1 %vm329_vm2, %v319_v45  ;;  %v299_v49 = vadd.f32 %v298_v48, %v182_v33  ;;  %v838_v45 = vsel %vm801_vm4, %v835_v37, %v837_v38  ;;  %v806_v48 = vsel %vm801_vm4, %v803_v42, %v805_v43 }
  0xe2   :  { %4944 = vmatmul.mubr.msk.f32.gmra.mrb[2].mxu1 %vm329_vm2, %v320_v44  ;;  %v322_v50 = vmax.f32 %v304_v47, 0.0  ;;  %v804_v47 = vsel %vm801_vm4, %v802_v41, %v803_v42  ;;  %v53_v41 = vld [vmem:[%s7769_s2 + $0x58] sm:$0xff]  ;;  %v54_v42 = vld [vmem:[%s7769_s2 + $0x60] sm:$0xff] }
  0xe3   :  { %v321_v51 = vmax.f32 %v299_v49, 0.0  ;;  %v4935_v52 = vpop.f32.mrb[6].mxu0  ;;  %v63_v49 = vld [vmem:[%s7769_s2 + $0xa8] sm:$0xff] }
  0xe4   :  { %v314_v53 = vadd.f32 %v4935_v52, %v182_v33  ;;  %v308_v54 = vpop.f32.mrb[7].mxu0  ;;  %v839_v52 = vrot.slane %v63_v49, 1 }
  0xe5   :  { %4946 = vmatprep.mubr.msk.f32.mxu1 %vm329_vm2, %v321_v51  ;;  %v309_v55 = vadd.f32 %v308_v54, %v182_v33  ;;  %v5684_v33 = vld [vmem:[%s7769_s2 + $0x90] sm:$0xff]  ;;  %v5074_v51 = vpack.c.bf16 %v806_v48, %v804_v47 }
  0xe6   :  { %4947 = vmatmul.mubr.msk.f32.gmra.mrb[4].mxu1 %vm329_vm2, %v322_v50  ;;  %v324_v56 = vmax.f32 %v314_v53, 0.0  ;;  %v833_v36 = vrot.slane %v5684_v33, 1  ;;  %v64_v50 = vld [vmem:[%s7769_s2 + $0xb0] sm:$0xff]  ;;  %v840_v54 = vsel %vm801_vm4, %v837_v38, %v839_v52 }
  0xe7   :  { %v323_v57 = vmax.f32 %v309_v55, 0.0  ;;  %v841_v53 = vrot.slane %v64_v50, 1  ;;  %v71_v50 = vld [vmem:[%s7769_s2 + $0xe8] sm:$0xff] }
  0xe8   :  { %v836_v44 = vsel %vm801_vm4, %v833_v36, %v835_v37  ;;  %v70_v37 = vld [vmem:[%s7769_s2 + $0xe0] sm:$0xff] }
  0xe9   :  { %4949 = vmatprep.mubr.msk.f32.mxu1 %vm329_vm2, %v323_v57  ;;  %v5072_v46 = vpack.c.bf16 %v838_v45, %v836_v44  ;;  %v842_v55 = vsel %vm801_vm4, %v839_v52, %v841_v53  ;;  %v48_v57 = vld [vmem:[%s7769_s2 + $0x30] sm:$0xff]  ;;  %v853_v40 = vrot.slane %v70_v37, 1  ;;  %v821_v44 = vrot.slane %v54_v42, 1  ;;  %v5823_v37 = vld [vmem:[%s7770_s3 + $0x80] sm:$0xff] }
  0xea   :  { %4950 = vmatmul.mubr.msk.f32.gmra.mrb[6].mxu1 %vm329_vm2, %v324_v56  ;;  %v47_v56 = vld [vmem:[%s7769_s2 + $0x28] sm:$0xff]  ;;  %v5076_v58 = vpack.c.bf16 %v842_v55, %v840_v54  ;;  %v809_v60 = vrot.slane %v48_v57, 1  ;;  %v5832_v33 = vrot.slane %v5823_v37, %v5660_v3 }
  0xeb   :  { %5073 = vmatprep.subr.bf16.mxu0 %v5072_v46  ;;  %v807_v59 = vrot.slane %v47_v56, 1  ;;  %v854_v46 = vsel %vm801_vm4, %v851_v39, %v853_v40  ;;  %v55_v55 = vld [vmem:[%s7769_s2 + $0x68] sm:$0xff]  ;;  %v56_v56 = vld [vmem:[%s7769_s2 + $0x70] sm:$0xff] }
  0xec   :  { %v823_v57 = vrot.slane %v55_v55, 1 }
  0xed   :  { %v808_v61 = vsel %vm801_vm4, %v805_v43, %v807_v59  ;;  %v810_v62 = vsel %vm801_vm4, %v807_v59, %v809_v60  ;;  %v819_v43 = vrot.slane %v53_v41, 1 }
  0xef   :  { %v822_v49 = vsel %vm801_vm4, %v819_v43, %v821_v44 }
 0x1b1   :  { %v4942_v7 = vpop.f32.mrb[0].mxu1 }
 0x1b2   :  { %v420_v8 = vpop.f32.mrb[1].mxu1  ;;  %v426_v10 = vadd.f32 %v4942_v7, %v328_v6  ;;  %v843_v7 = vrot.slane %v65_v63, 1 }
 0x1b3   :  { %v421_v9 = vadd.f32 %v420_v8, %v328_v6  ;;  %v845_v8 = vrot.slane %v66_v5, 1  ;;  %v73_v5 = vld [vmem:[%s7769_s2 + $0xf8] sm:$0xff] }
 0x1b4   :  { %v460_v14 = vmax.f32 %v426_v10, 0.0  ;;  %v50_v10 = vld [vmem:[%s7769_s2 + $0x40] sm:$0xff] }
 0x1b5   :  { %v459_v11 = vmax.f32 %v421_v9, 0.0  ;;  %v4945_v12 = vpop.f32.mrb[2].mxu1  ;;  %v49_v9 = vld [vmem:[%s7769_s2 + $0x38] sm:$0xff] }
 0x1b6   :  { %v430_v13 = vpop.f32.mrb[3].mxu1  ;;  %v436_v18 = vadd.f32 %v4945_v12, %v328_v6  ;;  %v813_v12 = vrot.slane %v50_v10, 1  ;;  %v57_v10 = vld [vmem:[%s7769_s2 + $0x78] sm:$0xff] }
 0x1b7   :  { %4715 = vmatmul.mubr.msk.f32.vlgmr.msra.gmra.mrb[8].mxu0 %vm475_vm3, %v459_v11  ;;  %v431_v15 = vadd.f32 %v430_v13, %v328_v6  ;;  %v811_v11 = vrot.slane %v49_v9, 1  ;;  %v844_v13 = vsel %vm801_vm4, %v841_v53, %v843_v7  ;;  %v855_v53 = vrot.slane %v71_v50, 1 }
 0x1b8   :  { %570 = vmatprep.mubr.f32.mxu0 %v7774_v1  ;;  %v462_v22 = vmax.f32 %v436_v18, 0.0  ;;  %5075 = vmatpush3.bf16.msra.mxu0 %v5074_v51  ;;  %v67_v18 = vld [vmem:[%s7769_s2 + $0xc8] sm:$0xff]  ;;  %v72_v51 = vld [vmem:[%s7769_s2 + $0xf0] sm:$0xff] }
 0x1b9   :  { %v4948_v16 = vpop.f32.mrb[4].mxu1  ;;  %v461_v19 = vmax.f32 %v431_v15, 0.0  ;;  %5077 = vmatprep.subr.bf16.mxu0 %v5076_v58  ;;  %v857_v54 = vrot.slane %v72_v51, 1  ;;  %v825_v58 = vrot.slane %v56_v56, 1  ;;  %v856_v59 = vsel %vm801_vm4, %v853_v40, %v855_v53 }
 0x1ba   :  { %v440_v17 = vpop.f32.mrb[5].mxu1  ;;  %v446_v24 = vadd.f32 %v4948_v16, %v328_v6  ;;  %v812_v16 = vsel %vm801_vm4, %v809_v60, %v811_v11 }
 0x1bb   :  { %4716 = vmatmul.mubr.msk.f32.gmra.mrb[10].mxu0 %vm475_vm3, %v460_v14  ;;  %v441_v23 = vadd.f32 %v440_v17, %v328_v6  ;;  %v846_v14 = vsel %vm801_vm4, %v843_v7, %v845_v8  ;;  %v814_v17 = vsel %vm801_vm4, %v811_v11, %v813_v12  ;;  %v858_v60 = vsel %vm801_vm4, %v855_v53, %v857_v54  ;;  %v58_v11 = vld [vmem:[%s7769_s2 + $0x80] sm:$0xff] }
 0x1bc   :  { %576 = vmatprep.mubr.f32.mxu0 %v7774_v1  ;;  %v464_v26 = vmax.f32 %v446_v24, 0.0  ;;  %v5080_v15 = vpack.c.bf16 %v846_v14, %v844_v13  ;;  %v52_v24 = vld [vmem:[%s7769_s2 + $0x50] sm:$0xff]  ;;  %v826_v63 = vsel %vm801_vm4, %v823_v57, %v825_v58  ;;  %v829_v13 = vrot.slane %v58_v11, 1 }
 0x1bd   :  { %v4951_v20 = vpop.f32.mrb[6].mxu1  ;;  %v463_v25 = vmax.f32 %v441_v23, 0.0  ;;  %v51_v23 = vld [vmem:[%s7769_s2 + $0x48] sm:$0xff] }
 0x1be   :  { %v450_v21 = vpop.f32.mrb[7].mxu1  ;;  %v456_v28 = vadd.f32 %v4951_v20, %v328_v6  ;;  %v5082_v20 = vpack.c.bf16 %v814_v17, %v812_v16 }
 0x1bf   :  { %4717 = vmatmul.mubr.msk.f32.gmra.mrb[12].mxu0 %vm475_vm3, %v461_v19  ;;  %v451_v27 = vadd.f32 %v450_v21, %v328_v6  ;;  %v5078_v6 = vpack.c.bf16 %v810_v62, %v808_v61  ;;  %v68_v19 = vld [vmem:[%s7769_s2 + $0xd0] sm:$0xff]  ;;  %v847_v21 = vrot.slane %v67_v18, 1  ;;  %v5092_v61 = vpack.c.bf16 %v858_v60, %v856_v59 }
 0x1c0   :  { %582 = vmatprep.mubr.f32.mxu0 %v7774_v1  ;;  %v466_v30 = vmax.f32 %v456_v28, 0.0  ;;  %v824_v62 = vsel %vm801_vm4, %v821_v44, %v823_v57 }
 0x1c1   :  { %v465_v29 = vmax.f32 %v451_v27, 0.0  ;;  %5079 = vmatpush3.bf16.msra.mxu0 %v5078_v6  ;;  %v848_v27 = vsel %vm801_vm4, %v845_v8, %v847_v21  ;;  %v74_v6 = vld [vmem:[%s7769_s2 + $0x100] sm:$0xff]  ;;  %v5094_v7 = vpack.c.bf16 %v826_v63, %v824_v62  ;;  %v859_v8 = vrot.slane %v73_v5, 1 }
 0x1c2   :  { %5081 = vmatprep.subr.bf16.mxu0 %v5080_v15  ;;  %v861_v9 = vrot.slane %v74_v6, 1  ;;  %v983_v63 = vrot.slane %v5545_v0, 5 }
 0x1c3   :  { %4718 = vmatmul.mubr.msk.f32.gmra.mrb[14].mxu0 %vm475_vm3, %v462_v22  ;;  %v849_v22 = vrot.slane %v68_v19, 1  ;;  %v860_v14 = vsel %vm801_vm4, %v857_v54, %v859_v8  ;;  %v75_v19 = vld [vmem:[%s7769_s2 + $0x108] sm:$0xff] }
 0x1c4   :  { %588 = vmatprep.mubr.f32.mxu0 %v7774_v1  ;;  %v862_v15 = vsel %vm801_vm4, %v859_v8, %v861_v9 }
 0x1c5   :  { %5083 = vmatpush3.bf16.msra.mxu0 %v5082_v20  ;;  %v850_v28 = vsel %vm801_vm4, %v847_v21, %v849_v22  ;;  %v852_v45 = vsel %vm801_vm4, %v849_v22, %v851_v39  ;;  %v5096_v16 = vpack.c.bf16 %v862_v15, %v860_v14  ;;  %v5807_v20 = vld [vmem:[%s7769_s2 + $0x110] sm:$0xff]  ;;  %v863_v22 = vrot.slane %v75_v19, 1 }
 0x1c6   :  { %v5088_v47 = vpack.c.bf16 %v854_v46, %v852_v45 }
 0x1c7   :  { %4719 = vmatmul.mubr.msk.f32.gmra.mrb[16].mxu0 %vm475_vm3, %v463_v25  ;;  %v815_v25 = vrot.slane %v51_v23, 1  ;;  %v865_v23 = vrot.slane %v5807_v20, 1 }
 0x1c8   :  { %594 = vmatprep.mubr.f32.mxu0 %v7774_v1 }
 0x1cb   :  { %4720 = vmatmul.mubr.msk.f32.gmra.mrb[18].mxu0 %vm475_vm3, %v464_v26  ;;  %v817_v26 = vrot.slane %v52_v24, 1  ;;  %v59_v24 = vld [vmem:[%s7769_s2 + $0x88] sm:$0xff] }
 0x1cc   :  { %600 = vmatprep.mubr.f32.mxu0 %v7774_v1 }
 0x1cd   :  { %v818_v34 = vsel %vm801_vm4, %v815_v25, %v817_v26  ;;  %v820_v48 = vsel %vm801_vm4, %v817_v26, %v819_v43  ;;  %v864_v26 = vsel %vm801_vm4, %v861_v9, %v863_v22 }
 0x1ce   :  { %v5090_v52 = vpack.c.bf16 %v822_v49, %v820_v48 }
 0x1cf   :  { %4721 = vmatmul.mubr.msk.f32.gmra.mrb[20].mxu0 %vm475_vm3, %v465_v29  ;;  %v5084_v29 = vpack.c.bf16 %v850_v28, %v848_v27  ;;  %v866_v27 = vsel %vm801_vm4, %v863_v22, %v865_v23 }
 0x1d0   :  { %606 = vmatprep.mubr.f32.mxu0 %v7774_v1  ;;  %v5100_v28 = vpack.c.bf16 %v866_v27, %v864_v26 }
 0x1d1   :  { %5085 = vmatprep.subr.bf16.mxu0 %v5084_v29 }
 0x1d3   :  { %4722 = vmatmul.mubr.msk.f32.gmra.mrb[22].mxu0 %vm475_vm3, %v466_v30  ;;  %v816_v30 = vsel %vm801_vm4, %v813_v12, %v815_v25  ;;  %v827_v12 = vrot.slane %v57_v10, 1  ;;  %v831_v25 = vrot.slane %v59_v24, 1 }
 0x1d4   :  { %v5086_v38 = vpack.c.bf16 %v818_v34, %v816_v30 }
 0x1d5   :  { %v828_v17 = vsel %vm801_vm4, %v825_v58, %v827_v12  ;;  %v830_v18 = vsel %vm801_vm4, %v827_v12, %v829_v13  ;;  %v832_v29 = vsel %vm801_vm4, %v829_v13, %v831_v25  ;;  %v834_v30 = vsel %vm801_vm4, %v831_v25, %v833_v36 }
 0x1d6   :  { %5087 = vmatpush3.bf16.msra.mxu0 %v5086_v38  ;;  %v5098_v21 = vpack.c.bf16 %v830_v18, %v828_v17  ;;  %v5102_v34 = vpack.c.bf16 %v834_v30, %v832_v29  ;;  %v5828_v38 = vld [vmem:[%s7770_s3 + $0x88] sm:$0xff] }
 0x1d7   :  { %5089 = vmatprep.subr.bf16.mxu0 %v5088_v47  ;;  %v5836_v36 = vrot.slane %v5828_v38, %v5660_v3 }
 0x1da   :  { %5091 = vmatpush3.bf16.msra.mxu0 %v5090_v52 }
 0x1db   :  { %5093 = vmatprep.subr.bf16.mxu0 %v5092_v61 }
 0x1de   :  { %5095 = vmatpush3.bf16.msra.mxu0 %v5094_v7 }
 0x1df   :  { %5097 = vmatprep.subr.bf16.mxu0 %v5096_v16 }
 0x1e2   :  { %5099 = vmatpush3.bf16.msra.mxu0 %v5098_v21 }
 0x1e3   :  { %5101 = vmatprep.subr.bf16.mxu0 %v5100_v28 }
 0x1e6   :  { %5103 = vmatpush3.bf16.msra.mxu0 %v5102_v34 }
 0x1e7   :  { %5104 = vmatprep.subr.bf16.mxu0 %v5475_v35 }
 0x28a   :  { %v566_v39 = vpop.f32.mrb[8].mxu0 }
 0x28b   :  { %v567_v40 = vadd.f32 %v566_v39, %v5832_v33  ;;  %v568_v41 = vpop.f32.mrb[9].mxu0 }
 0x28c   :  { %v569_v42 = vadd.f32 %v568_v41, %v5836_v36 }
 0x28d   :  { %v613_v43 = vmax.f32 %v567_v40, 0.0 }
 0x28e   :  { %v614_v44 = vmax.f32 %v569_v42, 0.0  ;;  %v572_v45 = vpop.f32.mrb[10].mxu0 }
 0x28f   :  { %v629_v46 = vrot.slane %v613_v43, 4  ;;  %v573_v47 = vadd.f32 %v572_v45, %v5832_v33  ;;  %v574_v48 = vpop.f32.mrb[11].mxu0 }
 0x290   :  { %v635_v49 = vrot.slane %v614_v44, 4  ;;  %v575_v50 = vadd.f32 %v574_v48, %v5836_v36 }
 0x291   :  { %v630_v51 = vmax.f32 %v613_v43, %v629_v46  ;;  %v615_v52 = vmax.f32 %v573_v47, 0.0 }
 0x292   :  { %v636_v53 = vmax.f32 %v614_v44, %v635_v49  ;;  %v616_v54 = vmax.f32 %v575_v50, 0.0  ;;  %v578_v55 = vpop.f32.mrb[12].mxu0 }
 0x293   :  { %v631_v56 = vrot.slane %v630_v51, 2  ;;  %v641_v57 = vrot.slane %v615_v52, 4  ;;  %v579_v58 = vadd.f32 %v578_v55, %v5832_v33  ;;  %v580_v59 = vpop.f32.mrb[13].mxu0 }
 0x294   :  { %v637_v60 = vrot.slane %v636_v53, 2  ;;  %v647_v61 = vrot.slane %v616_v54, 4  ;;  %v581_v62 = vadd.f32 %v580_v59, %v5836_v36 }
 0x295   :  { %v632_v5 = vmax.f32 %v630_v51, %v631_v56  ;;  %v642_v6 = vmax.f32 %v615_v52, %v641_v57  ;;  %v617_v7 = vmax.f32 %v579_v58, 0.0 }
 0x296   :  { %v638_v8 = vmax.f32 %v636_v53, %v637_v60  ;;  %v648_v9 = vmax.f32 %v616_v54, %v647_v61  ;;  %v618_v10 = vmax.f32 %v581_v62, 0.0  ;;  %v584_v11 = vpop.f32.mrb[14].mxu0 }
 0x297   :  { %v633_v12 = vrot.slane %v632_v5, 1  ;;  %v643_v13 = vrot.slane %v642_v6, 2  ;;  %v653_v14 = vrot.slane %v617_v7, 4  ;;  %v585_v15 = vadd.f32 %v584_v11, %v5832_v33  ;;  %v586_v16 = vpop.f32.mrb[15].mxu0 }
 0x298   :  { %v639_v17 = vrot.slane %v638_v8, 1  ;;  %v649_v18 = vrot.slane %v648_v9, 2  ;;  %v659_v19 = vrot.slane %v618_v10, 4  ;;  %v587_v21 = vadd.f32 %v586_v16, %v5836_v36 }
 0x299   :  { %v634_v22 = vmax.f32 %v632_v5, %v633_v12  ;;  %v644_v23 = vmax.f32 %v642_v6, %v643_v13  ;;  %v654_v24 = vmax.f32 %v617_v7, %v653_v14  ;;  %v619_v25 = vmax.f32 %v585_v15, 0.0 }
 0x29a   :  { %v640_v26 = vmax.f32 %v638_v8, %v639_v17  ;;  %v650_v27 = vmax.f32 %v648_v9, %v649_v18  ;;  %v660_v28 = vmax.f32 %v618_v10, %v659_v19  ;;  %v620_v29 = vmax.f32 %v587_v21, 0.0  ;;  %v590_v30 = vpop.f32.mrb[16].mxu0 }
 0x29b   :  { %v645_v34 = vrot.slane %v644_v23, 1  ;;  %v655_v39 = vrot.slane %v654_v24, 2  ;;  %v665_v40 = vrot.slane %v619_v25, 4  ;;  %v591_v41 = vadd.f32 %v590_v30, %v5832_v33  ;;  %v592_v42 = vpop.f32.mrb[17].mxu0 }
 0x29c   :  { %v651_v43 = vrot.slane %v650_v27, 1  ;;  %v661_v44 = vrot.slane %v660_v28, 2  ;;  %v671_v45 = vrot.slane %v620_v29, 4  ;;  %v593_v46 = vadd.f32 %v592_v42, %v5836_v36 }
 0x29d   :  { %v646_v47 = vmax.f32 %v644_v23, %v645_v34  ;;  %v656_v48 = vmax.f32 %v654_v24, %v655_v39  ;;  %v666_v49 = vmax.f32 %v619_v25, %v665_v40  ;;  %v621_v50 = vmax.f32 %v591_v41, 0.0 }
 0x29e   :  { %v652_v51 = vmax.f32 %v650_v27, %v651_v43  ;;  %v662_v52 = vmax.f32 %v660_v28, %v661_v44  ;;  %v672_v53 = vmax.f32 %v620_v29, %v671_v45  ;;  %v622_v54 = vmax.f32 %v593_v46, 0.0  ;;  %v596_v55 = vpop.f32.mrb[18].mxu0 }
 0x29f   :  { %v746_v56 = vsel %vm745_vm5, %v646_v47, %v634_v22  ;;  %v657_v57 = vrot.slane %v656_v48, 1  ;;  %v667_v58 = vrot.slane %v666_v49, 2  ;;  %v677_v59 = vrot.slane %v621_v50, 4  ;;  %v598_v60 = vpop.f32.mrb[19].mxu0 }
 0x2a0   :  { %v759_v61 = vsel %vm745_vm5, %v652_v51, %v640_v26  ;;  %v663_v62 = vrot.slane %v662_v52, 1  ;;  %v673_v5 = vrot.slane %v672_v53, 2  ;;  %v683_v6 = vrot.slane %v622_v54, 4 }
 0x2a1   :  { %v658_v7 = vmax.f32 %v656_v48, %v657_v57  ;;  %v668_v8 = vmax.f32 %v666_v49, %v667_v58  ;;  %v678_v9 = vmax.f32 %v621_v50, %v677_v59  ;;  %v597_v10 = vadd.f32 %v596_v55, %v5832_v33 }
 0x2a2   :  { %v664_v11 = vmax.f32 %v662_v52, %v663_v62  ;;  %v674_v12 = vmax.f32 %v672_v53, %v673_v5  ;;  %v684_v13 = vmax.f32 %v622_v54, %v683_v6  ;;  %v599_v14 = vadd.f32 %v598_v60, %v5836_v36  ;;  %v602_v15 = vpop.f32.mrb[20].mxu0 }
 0x2a3   :  { %v748_v16 = vsel %vm747_vm6, %v658_v7, %v746_v56  ;;  %v669_v17 = vrot.slane %v668_v8, 1  ;;  %v679_v18 = vrot.slane %v678_v9, 2  ;;  %v623_v19 = vmax.f32 %v597_v10, 0.0  ;;  %v604_v21 = vpop.f32.mrb[21].mxu0 }
 0x2a4   :  { %v760_v22 = vsel %vm747_vm6, %v664_v11, %v759_v61  ;;  %v675_v23 = vrot.slane %v674_v12, 1  ;;  %v685_v24 = vrot.slane %v684_v13, 2  ;;  %v624_v25 = vmax.f32 %v599_v14, 0.0 }
 0x2a5   :  { %v670_v26 = vmax.f32 %v668_v8, %v669_v17  ;;  %v680_v27 = vmax.f32 %v678_v9, %v679_v18  ;;  %v689_v28 = vrot.slane %v623_v19, 4  ;;  %v603_v29 = vadd.f32 %v602_v15, %v5832_v33 }
 0x2a6   :  { %v676_v30 = vmax.f32 %v674_v12, %v675_v23  ;;  %v686_v34 = vmax.f32 %v684_v13, %v685_v24  ;;  %v695_v39 = vrot.slane %v624_v25, 4  ;;  %v605_v40 = vadd.f32 %v604_v21, %v5836_v36  ;;  %v608_v41 = vpop.f32.mrb[22].mxu0  ;;  %v24_v12 = vld [vmem:[%s7768_s1 + $0x10] sm:$0xff] }
 0x2a7   :  { %v750_v42 = vsel %vm749_vm7, %v670_v26, %v748_v16  ;;  %v681_v43 = vrot.slane %v680_v27, 1  ;;  %v690_v44 = vmax.f32 %v623_v19, %v689_v28  ;;  %v625_v45 = vmax.f32 %v603_v29, 0.0  ;;  %v610_v46 = vpop.f32.mrb[23].mxu0 }
 0x2a8   :  { %v687_v47 = vrot.slane %v686_v34, 1  ;;  %v696_v48 = vmax.f32 %v624_v25, %v695_v39  ;;  %v626_v49 = vmax.f32 %v605_v40, 0.0  ;;  %v609_v50 = vadd.f32 %v608_v41, %v5832_v33  ;;  %v23_v33 = vld [vmem:[%s7768_s1 + $0x8] sm:$0xff]  ;;  %v26_v39 = vld [vmem:[%s7768_s1 + $0x20] sm:$0xff] }
 0x2a9   :  { %v682_v51 = vmax.f32 %v680_v27, %v681_v43  ;;  %v691_v52 = vrot.slane %v690_v44, 2  ;;  %v701_v53 = vrot.slane %v625_v45, 4  ;;  %v611_v54 = vadd.f32 %v610_v46, %v5836_v36 }
 0x2aa   :  { %v688_v55 = vmax.f32 %v686_v34, %v687_v47  ;;  %v697_v56 = vrot.slane %v696_v48, 2  ;;  %v707_v57 = vrot.slane %v626_v49, 4  ;;  %v627_v58 = vmax.f32 %v609_v50, 0.0  ;;  %v25_v34 = vld [vmem:[%s7768_s1 + $0x18] sm:$0xff] }
 0x2ab   :  { %v752_v59 = vsel %vm751_vm8, %v682_v51, %v750_v42  ;;  %v692_v60 = vmax.f32 %v690_v44, %v691_v52  ;;  %v702_v61 = vmax.f32 %v625_v45, %v701_v53  ;;  %v628_v62 = vmax.f32 %v611_v54, 0.0 }
 0x2ac   :  { %v698_v5 = vmax.f32 %v696_v48, %v697_v56  ;;  %v708_v6 = vmax.f32 %v626_v49, %v707_v57  ;;  %v713_v7 = vrot.slane %v627_v58, 4  ;;  %v761_v8 = vsel %vm749_vm7, %v676_v30, %v760_v22  ;;  %v27_v57 = vld [vmem:[%s7768_s1 + $0x28] sm:$0xff] }
 0x2ad   :  { %v693_v9 = vrot.slane %v692_v60, 1  ;;  %v703_v36 = vrot.slane %v702_v61, 2  ;;  %v719_v10 = vrot.slane %v628_v62, 4  ;;  %v762_v11 = vsel %vm751_vm8, %v688_v55, %v761_v8 }
 0x2ae   :  { %v699_v13 = vrot.slane %v698_v5, 1  ;;  %v709_v14 = vrot.slane %v708_v6, 2  ;;  %v714_v15 = vmax.f32 %v627_v58, %v713_v7  ;;  %v984_v19 = vrot.slane %v23_v33, 5  ;;  %v28_v58 = vld [vmem:[%s7768_s1 + $0x30] sm:$0xff]  ;;  %v5903_v7 = vld [vmem:[%s7768_s1 + $0x40] sm:$0xff] }
 0x2af   :  { %v694_v16 = vmax.f32 %v692_v60, %v693_v9  ;;  %v704_v17 = vmax.f32 %v702_v61, %v703_v36  ;;  %v720_v18 = vmax.f32 %v628_v62, %v719_v10  ;;  %v986_v24 = vrot.slane %v24_v12, 5 }
 0x2b0   :  { %v700_v21 = vmax.f32 %v698_v5, %v699_v13  ;;  %v710_v22 = vmax.f32 %v708_v6, %v709_v14  ;;  %v715_v23 = vrot.slane %v714_v15, 2  ;;  %v985_v44 = vsel %vm982_vm10, %v983_v63, %v984_v19  ;;  %v29_v6 = vld [vmem:[%s7768_s1 + $0x38] sm:$0xff] }
 0x2b1   :  { %v705_v25 = vrot.slane %v704_v17, 1  ;;  %v721_v26 = vrot.slane %v720_v18, 2  ;;  %v754_v27 = vsel %vm753_vm9, %v694_v16, %v752_v59  ;;  %v987_v45 = vsel %vm982_vm10, %v984_v19, %v986_v24  ;;  %v5924_v19 = vld [vmem:[%s7770_s3 + $0xa8] sm:$0xff] }
 0x2b2   :  { %v711_v28 = vrot.slane %v710_v22, 1  ;;  %v716_v29 = vmax.f32 %v714_v15, %v715_v23  ;;  %v763_v30 = vsel %vm753_vm9, %v700_v21, %v762_v11  ;;  %v988_v48 = vrot.slane %v25_v34, 5  ;;  %v131_v23 = vld [vmem:[%s7770_s3 + $0x90] sm:$0xff] }
 0x2b3   :  { %v706_v40 = vmax.f32 %v704_v17, %v705_v25  ;;  %v722_v41 = vmax.f32 %v720_v18, %v721_v26  ;;  %v990_v49 = vrot.slane %v26_v39, 5  ;;  %v5105_v54 = vpack.c.bf16 %v987_v45, %v985_v44  ;;  %v132_v18 = vld [vmem:[%s7770_s3 + $0x98] sm:$0xff]  ;;  %v5392_v44 = vld [vmem:[%s7767_s0 + $0x10] sm:$0xff]  ;;  %v5395_v45 = vld [vmem:[%s7767_s0 + $0x28] sm:$0xff] }
 0x2b4   :  { %v712_v42 = vmax.f32 %v710_v22, %v711_v28  ;;  %v717_v43 = vrot.slane %v716_v29, 1  ;;  %v989_v0 = vsel %vm982_vm10, %v986_v24, %v988_v48  ;;  %v992_v59 = vrot.slane %v27_v57, 5  ;;  %v5934_v24 = vld [vmem:[%s7770_s3 + $0xa0] sm:$0xff] }
 0x2b5   :  { %v723_v46 = vrot.slane %v722_v41, 1  ;;  %v756_v47 = vsel %vm755_vm11, %v706_v40, %v754_v27  ;;  %v991_v63 = vsel %vm982_vm10, %v988_v48, %v990_v49  ;;  %v994_v60 = vrot.slane %v28_v58, 5 }
 0x2b6   :  { %v718_v50 = vmax.f32 %v716_v29, %v717_v43  ;;  %v764_v51 = vsel %vm755_vm11, %v712_v42, %v763_v30  ;;  %v5108_v56 = vpack.c.bf16 %v991_v63, %v989_v0  ;;  %v993_v61 = vsel %vm982_vm10, %v990_v49, %v992_v59  ;;  %v5391_v43 = vld [vmem:[%s7767_s0 + $0x8] sm:$0xff] }
 0x2b7   :  { %v724_v52 = vmax.f32 %v722_v41, %v723_v46  ;;  %v995_v62 = vsel %vm982_vm10, %v992_v59, %v994_v60  ;;  %v996_v8 = vrot.slane %v29_v6, 5  ;;  %v998_v33 = vrot.slane %v5903_v7, 5  ;;  %v5396_v46 = vld [vmem:[%s7767_s0 + $0x38] sm:$0xff] }
 0x2b8   :  { %v758_v53 = vsel %vm757_vm12, %v718_v50, %v756_v47  ;;  %v5111_v5 = vpack.c.bf16 %v995_v62, %v993_v61  ;;  %v5912_v11 = vsub.s32 1, %v5631_v31  ;;  %v1099_v21 = vrot.slane %v5828_v38, 1  ;;  %v5397_v47 = vld [vmem:[%s7767_s0 + $0x30] sm:$0xff] }
 0x2b9   :  { %v765_v55 = vsel %vm757_vm12, %v724_v52, %v764_v51  ;;  %v997_v9 = vsel %vm982_vm10, %v994_v60, %v996_v8  ;;  %v999_v36 = vsel %vm982_vm10, %v996_v8, %v998_v33  ;;  %v1104_v22 = vrot.slane %v5924_v19, 1 }
 0x2ba   :  { %963 = vmatprep.mubr.f32.mxu0 %v765_v55  ;;  %v5114_v10 = vpack.c.bf16 %v999_v36, %v997_v9  ;;  %v728_v13 = vrot.slane %v5807_v20, %v5912_v11  ;;  %v1100_v20 = vrot.slane %v132_v18, 1  ;;  %v1096_v25 = vrot.slane %v5823_v37, 1  ;;  %v5390_v37 = vld [vmem:[%s7767_s0] sm:$0xff] }
 0x2bb   :  { %964 = vmatmul.mubr.f32.vlgmr.msra.gmra.mrb[24].mxu0 %v758_v53  ;;  %v1097_v26 = vrot.slane %v131_v23, 1  ;;  %v1102_v27 = vrot.slane %v5934_v24, 1  ;;  %v5477_v40 = vmov 2   ;;  %v5478_v41 = vmov 1  }
 0x2bc   :  { %5106 = vmatpush3.bf16.msra.mxu0 %v5105_v54  ;;  %4968 = vmatprep.mubr.msk.f32.mxu0 %vm5476_vm13, %v7774_v1  ;;  %v1101_v28 = vsel %vm801_vm4, %v1099_v21, %v1100_v20  ;;  %v1105_v38 = vsel %vm801_vm4, %v1100_v20, %v1104_v22  ;;  %v5479_v42 = vmov 3   ;;  %v5480_v48 = vmov 0  }
 0x2bd   :  { %5107 = vmatprep.subr.bf16.mxu0 %v5475_v35  ;;  %v5116_v29 = vpack.c.bf16 %v1105_v38, %v1101_v28  ;;  %v1098_v30 = vsel %vm801_vm4, %v1096_v25, %v1097_v26  ;;  %v1103_v34 = vsel %vm801_vm4, %v1097_v26, %v1102_v27  ;;  %5246 = vset.pattern.permute.xlu1 %v5477_v40  ;;  %v972_v49 = vsub.s32 5, %v5631_v31 }
 0x2be   :  { %v5118_v39 = vpack.c.bf16 %v1103_v34, %v1098_v30  ;;  %5245 = vset.pattern.permute.xlu0 %v5478_v41  ;;  %1395 = vperm.xlu1 %5246, %v5390_v37   ;;  %v5481_v57 = vmov 1966171168   ;;  %v1085_v61 = vrot.slane %v5934_v24, %v5912_v11  ;;  %v1089_v62 = vrot.slane %v5924_v19, %v5912_v11  ;;  %v6002_v11 = vld [vmem:[%s7768_s1 + $0x48] sm:$0xff] }
 0x2bf   :  { %1315 = vperm.xlu0 %5245, %v5390_v37   ;;  %v973_v50 = vrot.slane %v5903_v7, %v972_v49  ;;  %v1187_v58 = vunpack.c.l.s4 %v5481_v57 }
 0x2c0   :  { %5109 = vmatpush3.bf16.msra.mxu0 %v5108_v56 }
 0x2c1   :  { %5110 = vmatprep.subr.bf16.mxu0 %v5475_v35  ;;  %v1188_v59 = vunpack.c.0.s8 %v1187_v58 }
 0x2c2   :  { %1399 = vperm.xlu1 %5246, %v5556_v2  }
 0x2c3   :  { %1319 = vperm.xlu0 %5245, %v5556_v2   ;;  %v5393_v2 = vld [vmem:[%s7767_s0 + $0x20] sm:$0xff] }
 0x2c4   :  { %5112 = vmatpush3.bf16.msra.mxu0 %v5111_v5  ;;  %v5995_v5 = vsub.s32 %v1188_v59, %v5631_v31 }
 0x2c5   :  { %5113 = vmatprep.subr.bf16.mxu0 %v5475_v35 }
 0x2c6   :  { %5247 = vset.pattern.permute.xlu1 %v5479_v42 }
 0x2c7   :  { %1327 = vperm.xlu0 %5245, %v5569_v4   ;;  %1479 = vperm.xlu1 %5247, %v5391_v43   ;;  %v5394_v4 = vld [vmem:[%s7767_s0 + $0x18] sm:$0xff] }
 0x2c8   :  { %5115 = vmatpush3.bf16.msra.mxu0 %v5114_v10 }
 0x2c9   :  { %5117 = vmatprep.subr.bf16.mxu0 %v5116_v29 }
 0x2cb   :  { %5249 = vset.pattern.permute.xlu0 %v5479_v42  ;;  %5248 = vset.pattern.permute.xlu1 %v5478_v41 }
 0x2cc   :  { %1475 = vperm.xlu0 %5249, %v5390_v37   ;;  %1323 = vperm.xlu1 %5248, %v5392_v44  }
 0x2d0   :  { %1483 = vperm.xlu0 %5249, %v5392_v44   ;;  %5250 = vset.pattern.permute.xlu1 %v5477_v40 }
 0x2d1   :  { %1403 = vperm.xlu1 %5250, %v5392_v44  }
 0x2d4   :  { %1491 = vperm.xlu0 %5249, %v5393_v2  }
 0x2d5   :  { %1407 = vperm.xlu1 %5250, %v5394_v4  }
 0x2d8   :  { %5254 = vset.pattern.permute.xlu0 %v5478_v41 }
 0x2d9   :  { %1335 = vperm.xlu0 %5254, %v5395_v45   ;;  %5251 = vset.pattern.permute.xlu1 %v5479_v42 }
 0x2da   :  { %1487 = vperm.xlu1 %5251, %v5394_v4  }
 0x2dd   :  { %1343 = vperm.xlu0 %5254, %v5396_v46  }
 0x2de   :  { %5252 = vset.pattern.permute.xlu1 %v5478_v41 }
 0x2df   :  { %1331 = vperm.xlu1 %5252, %v5393_v2  }
 0x2e1   :  { %5258 = vset.pattern.permute.xlu0 %v5479_v42 }
 0x2e2   :  { %1499 = vperm.xlu0 %5258, %v5397_v47  }
 0x2e3   :  { %5253 = vset.pattern.permute.xlu1 %v5477_v40 }
 0x2e4   :  { %1411 = vperm.xlu1 %5253, %v5393_v2  }
 0x2e6   :  { %5261 = vset.pattern.permute.xlu0 %v5480_v48 }
 0x2e7   :  { %1239 = vperm.xlu0 %5261, %v5391_v43  }
 0x2e8   :  { %1415 = vperm.xlu1 %5253, %v5395_v45  }
 0x2eb   :  { %1251 = vperm.xlu0 %5261, %v5393_v2  }
 0x2ec   :  { %5255 = vset.pattern.permute.xlu1 %v5479_v42 }
 0x2ed   :  { %1495 = vperm.xlu1 %5255, %v5395_v45  }
 0x2ef   :  { %1259 = vperm.xlu0 %5261, %v5397_v47  }
 0x2f1   :  { %5256 = vset.pattern.permute.xlu1 %v5478_v41 }
 0x2f2   :  { %1339 = vperm.xlu1 %5256, %v5397_v47  }
 0x2f3   :  { %5263 = vset.pattern.permute.xlu0 %v5477_v40 }
 0x2f6   :  { %5257 = vset.pattern.permute.xlu1 %v5477_v40 }
 0x2f7   :  { %1419 = vperm.xlu1 %5257, %v5397_v47  }
 0x2fb   :  { %1423 = vperm.xlu1 %5257, %v5396_v46  }
 0x2ff   :  { %5259 = vset.pattern.permute.xlu1 %v5479_v42 }
 0x300   :  { %1503 = vperm.xlu1 %5259, %v5396_v46  }
 0x304   :  { %5260 = vset.pattern.permute.xlu1 %v5480_v48 }
 0x305   :  { %1235 = vperm.xlu1 %5260, %v5390_v37  }
 0x309   :  { %1243 = vperm.xlu1 %5260, %v5392_v44  }
 0x30d   :  { %1247 = vperm.xlu1 %5260, %v5394_v4  }
 0x311   :  { %1255 = vperm.xlu1 %5260, %v5395_v45  }
 0x315   :  { %1263 = vperm.xlu1 %5260, %v5396_v46  }
 0x33d   :  { %v1396_v55 = vpop.permute.xlu1 %1395 }
 0x33e   :  { %v1316_v6 = vpop.permute.xlu0 %1315 }
 0x341   :  { %v1400_v0 = vpop.permute.xlu1 %1399 }
 0x346   :  { %v1480_v63 = vpop.permute.xlu1 %1479 }
 0x34b   :  { %v1324_v56 = vpop.permute.xlu1 %1323 }
 0x350   :  { %v1404_v60 = vpop.permute.xlu1 %1403 }
 0x354   :  { %v1408_v33 = vpop.permute.xlu1 %1407 }
 0x359   :  { %v1488_v18 = vpop.permute.xlu1 %1487 }
 0x35e   :  { %v1332_v25 = vpop.permute.xlu1 %1331 }
 0x363   :  { %v1412_v37 = vpop.permute.xlu1 %1411 }
 0x367   :  { %v1416_v49 = vpop.permute.xlu1 %1415 }
 0x38e   :  { %v4827_v12 = vpop.f32.mrb[24].mxu0 }
 0x38f   :  { %v4828_v14 = vpop.f32.mrb[25].mxu0 }
 0x390   :  { %v4829_v15 = vadd.f32 %v4828_v14, %v4827_v12 }
 0x392   :  { %v966_v16 = vadd.f32 %v4829_v15, %v728_v13  ;;  %v1320_v13 = vpop.permute.xlu0 %1319 }
 0x394   :  { %v969_v17 = vmax.f32 %v966_v16, 0.0  ;;  %v1560_v16 = vrot.slane %v5903_v7, 6 }
 0x396   :  { %4969 = vmatmul.mubr.msk.f32.vlgmr.msra.gmra.mrb[26].mxu0 %vm475_vm3, %v969_v17  ;;  %v1561_v17 = vrot.slane %v6002_v11, 6  ;;  %v1328_v24 = vpop.permute.xlu0 %1327 }
 0x397   :  { %1177 = vmatprep.mubr.f32.mxu0 %v7774_v1  ;;  %5119 = vmatpush1.bf16.msra.mxu0 %v5118_v39 }
 0x398   :  { %v1562_v20 = vsel %vm1559_vm14, %v1560_v16, %v1561_v17 }
 0x399   :  { %4971 = vmatprep.subr.msk.mxu1 %vm208_vm0, %v1562_v20 }
 0x39a   :  { %4972 = vmatpush3.msk.msra.mxu1 %vm208_vm0, %v1562_v20  ;;  %v1476_v30 = vpop.permute.xlu0 %1475 }
 0x39e   :  { %v1484_v45 = vpop.permute.xlu0 %1483 }
 0x469   :  { %v1077_v51 = vpop.f32.mrb[26].mxu0 }
 0x46a   :  { %v1078_v52 = vadd.f32 %v1077_v51, %v973_v50  ;;  %v4970_v53 = vpop.f32.mrb[27].mxu0 }
 0x46c   :  { %v1081_v54 = vmax.f32 %v1078_v52, 0.0 }
 0x46e   :  { %4724 = vmatmul.mubr.msk.f32.vlgmr.msra.gmra.mrb[28].mxu0 %vm329_vm2, %v1081_v54  ;;  %v1492_v54 = vpop.permute.xlu0 %1491 }
 0x472   :  { %v1336_v59 = vpop.permute.xlu0 %1335 }
 0x541   :  { %v1179_v8 = vpop.f32.mrb[28].mxu0 }
 0x542   :  { %v1180_v9 = vadd.f32 %v1179_v8, %v1085_v61  ;;  %v1181_v36 = vpop.f32.mrb[29].mxu0 }
 0x543   :  { %v1182_v10 = vadd.f32 %v1181_v36, %v1089_v62 }
 0x544   :  { %v1192_v12 = vrot.slane %v1180_v9, %v5995_v5  ;;  %4653 = vst [vmem:[#allocation4] sm:$0xff] %v1180_v9  ;;  %v1185_v28 = vcombine.high %v1180_v9, %v1180_v9 }
 0x545   :  { %4654 = vst [vmem:[#allocation4 + $0x8] sm:$0xff] %v1182_v10 }
 0x546   :  { %v1200_v14 = vcombine.high %v1192_v12, %v1192_v12  ;;  %v1208_v15 = vrot.slane %v1192_v12, %v5995_v5  ;;  %v1199_v43 = vrot.slane %v1185_v28, %v5995_v5 }
 0x548   :  { %v1222_v19 = vrot.slane %v1200_v14, %v5995_v5  ;;  %v6008_v21 = vrot.slane %v1208_v15, %v5660_v3  ;;  %v1230_v26 = vcombine.high %v1208_v15, %v1208_v15  ;;  %v1201_v46 = vcombine.high %v1199_v43, %v1199_v43  ;;  %v1344_v15 = vpop.permute.xlu0 %1343 }
 0x549   :  { %v1215_v50 = vrot.slane %v1199_v43, %v5995_v5 }
 0x54a   :  { %v6012_v22 = vrot.slane %v1222_v19, %v5660_v3  ;;  %v1346_v23 = vmul.f32 %v1316_v6, %v6008_v21  ;;  %v1426_v27 = vmul.f32 %v1396_v55, %v6008_v21  ;;  %v1232_v38 = vcombine.high %v1222_v19, %v1222_v19 }
 0x54b   :  { %v6023_v34 = vrot.slane %v1230_v26, %v5660_v3  ;;  %v1506_v39 = vmul.f32 %v1476_v30, %v6008_v21  ;;  %v1229_v52 = vrot.slane %v1201_v46, %v5995_v5  ;;  %v6044_v55 = vrot.slane %v1215_v50, %v5660_v3 }
 0x54c   :  { %1362 = vrot.lane.b32.xlu0 %v1346_v23, %s5482_s18  ;;  %v1347_v7 = vmul.f32 %v1320_v13, %v6012_v22  ;;  %v1427_v29 = vmul.f32 %v1400_v0, %v6012_v22  ;;  %v6029_v44 = vrot.slane %v1232_v38, %v5660_v3  ;;  %v1507_v2 = vmul.f32 %v1480_v63, %v6012_v22  ;;  %v1496_v63 = vpop.permute.xlu1 %1495  ;;  %v1500_v20 = vpop.permute.xlu0 %1499 }
 0x54d   :  { %v1348_v4 = vmul.f32 %v1324_v56, %v6023_v34  ;;  %v1428_v51 = vmul.f32 %v1404_v60, %v6023_v34  ;;  %v1508_v0 = vmul.f32 %v1484_v45, %v6023_v34  ;;  %v6049_v56 = vrot.slane %v1229_v52, %v5660_v3 }
 0x54e   :  { %1364 = vrot.lane.b32.xlu1 %v1347_v7, %s5482_s18  ;;  %v1349_v47 = vmul.f32 %v1328_v24, %v6029_v44  ;;  %v1429_v53 = vmul.f32 %v1408_v33, %v6029_v44  ;;  %v1509_v57 = vmul.f32 %v1488_v18, %v6029_v44  ;;  %v1350_v58 = vmul.f32 %v1332_v25, %v6044_v55 }
 0x54f   :  { %v1351_v60 = vmul.f32 %v1336_v59, %v6049_v56  ;;  %v1231_v62 = vcombine.high %v1215_v50, %v1215_v50  ;;  %v1430_v6 = vmul.f32 %v1412_v37, %v6044_v55  ;;  %v1233_v8 = vcombine.high %v1229_v52, %v1229_v52 }
 0x550   :  { %1442 = vrot.lane.b32.xlu0 %v1426_v27, %s5483_s19  ;;  %v1340_v61 = vpop.permute.xlu1 %1339  ;;  %v1431_v33 = vmul.f32 %v1416_v49, %v6049_v56  ;;  %v1510_v36 = vmul.f32 %v1492_v54, %v6044_v55  ;;  %v1511_v13 = vmul.f32 %v1496_v63, %v6049_v56  ;;  %v1240_v27 = vpop.permute.xlu0 %1239 }
 0x551   :  { %v6062_v9 = vrot.slane %v1231_v62, %v5660_v3  ;;  %v6067_v12 = vrot.slane %v1233_v8, %v5660_v3  ;;  %v1307_v45 = vmul.f32 %v6012_v22, %v1240_v27 }
 0x552   :  { %1444 = vrot.lane.b32.xlu1 %v1427_v29, %s5483_s19 }
 0x553   :  { %v1352_v14 = vmul.f32 %v1340_v61, %v6062_v9  ;;  %v1353_v16 = vmul.f32 %v1344_v15, %v6067_v12  ;;  %v1512_v23 = vmul.f32 %v1500_v20, %v6062_v9 }
 0x554   :  { %1522 = vrot.lane.b32.xlu0 %v1506_v39, %s5484_s20  ;;  %v1420_v10 = vpop.permute.xlu1 %1419  ;;  %v1252_v38 = vpop.permute.xlu0 %1251 }
 0x555   :  { %v1432_v18 = vmul.f32 %v1420_v10, %v6062_v9 }
 0x556   :  { %1524 = vrot.lane.b32.xlu1 %v1507_v2, %s5484_s20 }
 0x558   :  { %1366 = vrot.lane.b32.xlu0 %v1348_v4, %s5482_s18  ;;  %v1424_v17 = vpop.permute.xlu1 %1423  ;;  %v1260_v30 = vpop.permute.xlu0 %1259 }
 0x559   :  { %v1433_v19 = vmul.f32 %v1424_v17, %v6067_v12 }
 0x55a   :  { %1368 = vrot.lane.b32.xlu1 %v1349_v47, %s5482_s18 }
 0x55c   :  { %1446 = vrot.lane.b32.xlu0 %v1428_v51, %s5483_s19  ;;  %v1504_v24 = vpop.permute.xlu1 %1503 }
 0x55d   :  { %v1513_v7 = vmul.f32 %v1504_v24, %v6067_v12 }
 0x55e   :  { %1448 = vrot.lane.b32.xlu1 %v1429_v53, %s5483_s19 }
 0x560   :  { %1526 = vrot.lane.b32.xlu0 %v1508_v0, %s5484_s20  ;;  %v1236_v25 = vpop.permute.xlu1 %1235 }
 0x561   :  { %v1306_v2 = vmul.f32 %v6008_v21, %v1236_v25 }
 0x562   :  { %1528 = vrot.lane.b32.xlu1 %v1509_v57, %s5484_s20 }
 0x564   :  { %1370 = vrot.lane.b32.xlu0 %v1350_v58, %s5482_s18  ;;  %v1244_v26 = vpop.permute.xlu1 %1243 }
 0x565   :  { %v1308_v21 = vmul.f32 %v6023_v34, %v1244_v26  ;;  %v1310_v34 = vmul.f32 %v6044_v55, %v1252_v38  ;;  %v1312_v55 = vmul.f32 %v6062_v9, %v1260_v30  ;;  %v32_v9 = vld [vmem:[%s7768_s1 + $0x50] sm:$0xff]  ;;  %v1709_v30 = vrot.slane %v6002_v11, 3 }
 0x566   :  { %1372 = vrot.lane.b32.xlu1 %v1351_v60, %s5482_s18 }
 0x568   :  { %1450 = vrot.lane.b32.xlu0 %v1430_v6, %s5483_s19  ;;  %v1248_v28 = vpop.permute.xlu1 %1247 }
 0x569   :  { %v1309_v22 = vmul.f32 %v6029_v44, %v1248_v28 }
 0x56a   :  { %1452 = vrot.lane.b32.xlu1 %v1431_v33, %s5483_s19 }
 0x56c   :  { %1530 = vrot.lane.b32.xlu0 %v1510_v36, %s5484_s20  ;;  %v1256_v29 = vpop.permute.xlu1 %1255 }
 0x56d   :  { %v1311_v44 = vmul.f32 %v6049_v56, %v1256_v29 }
 0x56e   :  { %1532 = vrot.lane.b32.xlu1 %v1511_v13, %s5484_s20 }
 0x570   :  { %1374 = vrot.lane.b32.xlu0 %v1352_v14, %s5482_s18  ;;  %v1264_v39 = vpop.permute.xlu1 %1263 }
 0x571   :  { %v1313_v56 = vmul.f32 %v6067_v12, %v1264_v39  ;;  %v6106_v12 = vld [vmem:[%s7768_s1 + $0x58] sm:$0xff]  ;;  %v1710_v39 = vrot.slane %v32_v9, 3 }
 0x572   :  { %1376 = vrot.lane.b32.xlu1 %v1353_v16, %s5482_s18 }
 0x574   :  { %1454 = vrot.lane.b32.xlu0 %v1432_v18, %s5483_s19 }
 0x576   :  { %1456 = vrot.lane.b32.xlu1 %v1433_v19, %s5483_s19 }
 0x578   :  { %1534 = vrot.lane.b32.xlu0 %v1512_v23, %s5484_s20 }
 0x57a   :  { %1536 = vrot.lane.b32.xlu1 %v1513_v7, %s5484_s20 }
 0x5be   :  { %v1363_v37 = vpop.permute.xlu0 %1362 }
 0x5bf   :  { %v1386_v46 = vadd.f32 %v1363_v37, %v1306_v2 }
 0x5c0   :  { %v1365_v43 = vpop.permute.xlu1 %1364 }
 0x5c1   :  { %v1387_v49 = vadd.f32 %v1365_v43, %v1307_v45 }
 0x5c2   :  { %v1443_v4 = vpop.permute.xlu0 %1442 }
 0x5c3   :  { %v1466_v50 = vadd.f32 %v1443_v4, %v1386_v46 }
 0x5c4   :  { %v1445_v47 = vpop.permute.xlu1 %1444 }
 0x5c5   :  { %v1467_v52 = vadd.f32 %v1445_v47, %v1387_v49  ;;  %v1712_v49 = vrot.slane %v6106_v12, 3 }
 0x5c6   :  { %v1523_v51 = vpop.permute.xlu0 %1522 }
 0x5c7   :  { %v1546_v53 = vadd.f32 %v1523_v51, %v1466_v50  ;;  %v1711_v50 = vsel %vm1708_vm15, %v1709_v30, %v1710_v39  ;;  %v1713_v51 = vsel %vm1708_vm15, %v1710_v39, %v1712_v49  ;;  %v6340_v30 = vsub.s32 3, %v5631_v31 }
 0x5c8   :  { %v1525_v54 = vpop.permute.xlu1 %1524 }
 0x5c9   :  { %v1547_v0 = vadd.f32 %v1525_v54, %v1467_v52  ;;  %4973 = vmatprep.mubr.msk.f32.mxu1 %vm183_vm1, %v1546_v53  ;;  %v5120_v52 = vpack.c.bf16 %v1713_v51, %v1711_v50  ;;  %v6113_v53 = vsub.s32 2, %v5631_v31  ;;  %v6346_v39 = vrot.slane %v6106_v12, %v6340_v30 }
 0x5ca   :  { %v1367_v63 = vpop.permute.xlu0 %1366 }
 0x5cb   :  { %4974 = vmatmul.mubr.msk.f32.vlgmr.msra.gmra.mrb[8].mxu1 %vm183_vm1, %v1547_v0  ;;  %v1388_v59 = vadd.f32 %v1367_v63, %v1308_v21  ;;  %5121 = vmatprep.subr.bf16.mxu0 %v5120_v52  ;;  %v6117_v54 = vrot.slane %v6002_v11, %v6113_v53  ;;  %v5485_v11 = vmov 4  }
 0x5cc   :  { %v1369_v57 = vpop.permute.xlu1 %1368  ;;  %5123 = vmatpush3.bf16.msra.mxu0 %v5120_v52 }
 0x5cd   :  { %v1389_v61 = vadd.f32 %v1369_v57, %v1309_v22 }
 0x5ce   :  { %v1447_v58 = vpop.permute.xlu0 %1446 }
 0x5cf   :  { %v1468_v62 = vadd.f32 %v1447_v58, %v1388_v59 }
 0x5d0   :  { %v1449_v60 = vpop.permute.xlu1 %1448 }
 0x5d1   :  { %v1469_v8 = vadd.f32 %v1449_v60, %v1389_v61 }
 0x5d2   :  { %v1527_v6 = vpop.permute.xlu0 %1526 }
 0x5d3   :  { %v1548_v33 = vadd.f32 %v1527_v6, %v1468_v62  ;;  %v5486_v6 = vmov 10  }
 0x5d4   :  { %v1529_v36 = vpop.permute.xlu1 %1528 }
 0x5d5   :  { %v1549_v10 = vadd.f32 %v1529_v36, %v1469_v8  ;;  %4976 = vmatprep.mubr.msk.f32.mxu1 %vm183_vm1, %v1548_v33  ;;  %v5487_v36 = vmov 11  }
 0x5d6   :  { %v1371_v13 = vpop.permute.xlu0 %1370 }
 0x5d7   :  { %4977 = vmatmul.mubr.msk.f32.gmra.mrb[10].mxu1 %vm183_vm1, %v1549_v10  ;;  %v1390_v16 = vadd.f32 %v1371_v13, %v1310_v34  ;;  %v5488_v10 = vmov 5   ;;  %v5489_v13 = vmov 13   ;;  %v5490_v34 = vmov 6  }
 0x5d8   :  { %v1373_v14 = vpop.permute.xlu1 %1372 }
 0x5d9   :  { %v1391_v18 = vadd.f32 %v1373_v14, %v1311_v44 }
 0x5da   :  { %v1451_v15 = vpop.permute.xlu0 %1450 }
 0x5db   :  { %v1470_v19 = vadd.f32 %v1451_v15, %v1390_v16 }
 0x5dc   :  { %v1453_v17 = vpop.permute.xlu1 %1452 }
 0x5dd   :  { %v1471_v23 = vadd.f32 %v1453_v17, %v1391_v18  ;;  %v5491_v18 = vmov 14  }
 0x5de   :  { %v1531_v20 = vpop.permute.xlu0 %1530 }
 0x5df   :  { %v1550_v24 = vadd.f32 %v1531_v20, %v1470_v19  ;;  %v5492_v20 = vmov 7  }
 0x5e0   :  { %v1533_v7 = vpop.permute.xlu1 %1532 }
 0x5e1   :  { %v1551_v25 = vadd.f32 %v1533_v7, %v1471_v23  ;;  %4979 = vmatprep.mubr.msk.f32.mxu1 %vm183_vm1, %v1550_v24  ;;  %v5493_v23 = vmov 15   ;;  %v5494_v24 = vmov 9  }
 0x5e2   :  { %v1375_v26 = vpop.permute.xlu0 %1374 }
 0x5e3   :  { %4980 = vmatmul.mubr.msk.f32.gmra.mrb[12].mxu1 %vm183_vm1, %v1551_v25  ;;  %v1392_v38 = vadd.f32 %v1375_v26, %v1312_v55 }
 0x5e4   :  { %v1377_v27 = vpop.permute.xlu1 %1376 }
 0x5e5   :  { %v1393_v37 = vadd.f32 %v1377_v27, %v1313_v56 }
 0x5e6   :  { %v1455_v28 = vpop.permute.xlu0 %1454 }
 0x5e7   :  { %v1472_v43 = vadd.f32 %v1455_v28, %v1392_v38  ;;  %v5495_v28 = vmov 12   ;;  %v5496_v38 = vmov 8  }
 0x5e8   :  { %v1457_v29 = vpop.permute.xlu1 %1456 }
 0x5e9   :  { %v1473_v4 = vadd.f32 %v1457_v29, %v1393_v37  ;;  %v77_v29 = vld [vmem:[%s7769_s2 + $0x118] sm:$0xff]  ;;  %v6237_v37 = vld [vmem:[%s7769_s2 + $0x120] sm:$0xff] }
 0x5ea   :  { %v1535_v2 = vpop.permute.xlu0 %1534 }
 0x5eb   :  { %v1552_v45 = vadd.f32 %v1535_v2, %v1472_v43  ;;  %v5398_v43 = vld [vmem:[%s7769_s2 + $0x110] sm:$0xff] }
 0x5ec   :  { %v1537_v46 = vpop.permute.xlu1 %1536  ;;  %v1860_v2 = vrot.slane %v5398_v43, 2 }
 0x5ed   :  { %v1553_v47 = vadd.f32 %v1537_v46, %v1473_v4  ;;  %4982 = vmatprep.mubr.msk.f32.mxu1 %vm183_vm1, %v1552_v45  ;;  %v1861_v4 = vrot.slane %v77_v29, 2  ;;  %v1863_v45 = vrot.slane %v6237_v37, 2 }
 0x5ef   :  { %4983 = vmatmul.mubr.msk.f32.gmra.mrb[14].mxu1 %vm183_vm1, %v1553_v47  ;;  %vm1859_vm1 = vcmask 1045504  }
 0x5f0   :  { %v1862_v46 = vsel %vm1859_vm1, %v1860_v2, %v1861_v4  ;;  %v1864_v47 = vsel %vm1859_vm1, %v1861_v4, %v1863_v45 }
 0x5f1   :  { %v5124_v9 = vpack.c.bf16 %v1864_v47, %v1862_v46 }
 0x5f3   :  { %5125 = vmatprep.subr.bf16.mxu1 %v5124_v9 }
 0x5f4   :  { %5127 = vmatpush3.bf16.msra.mxu1 %v5124_v9 }
 0x69e   :  { %v4975_v0 = vpop.f32.mrb[8].mxu1 }
 0x69f   :  { %v1661_v63 = vadd.f32 %v4975_v0, %v6117_v54  ;;  %v1655_v57 = vpop.f32.mrb[9].mxu1 }
 0x6a0   :  { %v1656_v21 = vadd.f32 %v1655_v57, %v6117_v54 }
 0x6a1   :  { %v6121_v58 = vmax.f32 %v1661_v63, 0.0 }
 0x6a2   :  { %v6123_v22 = vmax.f32 %v1656_v21, 0.0 }
 0x6a3   :  { %2989 = vperm.xlu0 %5263, %v6121_v58   ;;  %2829 = vperm.xlu1 %5260, %v6121_v58  }
 0x6a4   :  { %4989 = vmatprep.mubr.msk.f32.mxu0 %vm329_vm2, %v6123_v22 }
 0x6a5   :  { %4990 = vmatmul.mubr.msk.f32.vlgmr.msra.gmra.mrb[30].mxu0 %vm329_vm2, %v6121_v58 }
 0x6a7   :  { %5265 = vset.pattern.permute.xlu0 %v5485_v11  ;;  %5262 = vset.pattern.permute.xlu1 %v5478_v41 }
 0x6a8   :  { %3149 = vperm.xlu0 %5265, %v6121_v58   ;;  %2909 = vperm.xlu1 %5262, %v6121_v58  }
 0x6aa   :  { %v4978_v59 = vpop.f32.mrb[10].mxu1 }
 0x6ab   :  { %v1671_v60 = vadd.f32 %v4978_v59, %v6117_v54  ;;  %v1665_v61 = vpop.f32.mrb[11].mxu1 }
 0x6ac   :  { %v1666_v62 = vadd.f32 %v1665_v61, %v6117_v54  ;;  %5270 = vset.pattern.permute.xlu0 %v5486_v6  ;;  %5264 = vset.pattern.permute.xlu1 %v5479_v42 }
 0x6ad   :  { %3687 = vperm.xlu0 %5270, %v6121_v58   ;;  %3069 = vperm.xlu1 %5264, %v6121_v58   ;;  %v6143_v33 = vmax.f32 %v1671_v60, 0.0 }
 0x6ae   :  { %v6141_v8 = vmax.f32 %v1666_v62, 0.0 }
 0x6b0   :  { %4992 = vmatprep.mubr.msk.f32.mxu0 %vm329_vm2, %v6141_v8 }
 0x6b1   :  { %4993 = vmatmul.mubr.msk.f32.gmra.mrb[32].mxu0 %vm329_vm2, %v6143_v33  ;;  %5271 = vset.pattern.permute.xlu0 %v5487_v36 }
 0x6b2   :  { %5266 = vset.pattern.permute.xlu1 %v5488_v10  ;;  %3767 = vperm.xlu0 %5271, %v6121_v58  }
 0x6b3   :  { %3229 = vperm.xlu1 %5266, %v6121_v58  }
 0x6b6   :  { %5273 = vset.pattern.permute.xlu0 %v5489_v13  ;;  %v4981_v14 = vpop.f32.mrb[12].mxu1 }
 0x6b7   :  { %5267 = vset.pattern.permute.xlu1 %v5490_v34  ;;  %3927 = vperm.xlu0 %5273, %v6121_v58   ;;  %v1675_v15 = vpop.f32.mrb[13].mxu1  ;;  %v1681_v44 = vadd.f32 %v4981_v14, %v6117_v54 }
 0x6b8   :  { %v1676_v16 = vadd.f32 %v1675_v15, %v6117_v54  ;;  %3309 = vperm.xlu1 %5267, %v6121_v58  }
 0x6b9   :  { %v6162_v19 = vmax.f32 %v1681_v44, 0.0 }
 0x6ba   :  { %v6159_v17 = vmax.f32 %v1676_v16, 0.0 }
 0x6bb   :  { %5274 = vset.pattern.permute.xlu0 %v5491_v18 }
 0x6bc   :  { %5268 = vset.pattern.permute.xlu1 %v5492_v20  ;;  %4007 = vperm.xlu0 %5274, %v6121_v58  }
 0x6bd   :  { %4995 = vmatprep.mubr.msk.f32.mxu0 %vm329_vm2, %v6159_v17  ;;  %3389 = vperm.xlu1 %5268, %v6121_v58  }
 0x6be   :  { %4996 = vmatmul.mubr.msk.f32.gmra.mrb[34].mxu0 %vm329_vm2, %v6162_v19 }
 0x6c0   :  { %5275 = vset.pattern.permute.xlu0 %v5493_v23 }
 0x6c1   :  { %5269 = vset.pattern.permute.xlu1 %v5494_v24  ;;  %4087 = vperm.xlu0 %5275, %v6121_v58  }
 0x6c2   :  { %3607 = vperm.xlu1 %5269, %v6121_v58   ;;  %v4984_v7 = vpop.f32.mrb[14].mxu1 }
 0x6c3   :  { %v1691_v25 = vadd.f32 %v4984_v7, %v6117_v54  ;;  %v1685_v26 = vpop.f32.mrb[15].mxu1 }
 0x6c4   :  { %v1686_v27 = vadd.f32 %v1685_v26, %v6117_v54 }
 0x6c5   :  { %5277 = vset.pattern.permute.xlu0 %v5480_v48  ;;  %v6182_v56 = vmax.f32 %v1691_v25, 0.0 }
 0x6c6   :  { %v6178_v55 = vmax.f32 %v1686_v27, 0.0  ;;  %5272 = vset.pattern.permute.xlu1 %v5495_v28  ;;  %2825 = vperm.xlu0 %5277, %v6123_v22  }
 0x6c7   :  { %3847 = vperm.xlu1 %5272, %v6121_v58  }
 0x6c8   :  { %4998 = vmatprep.mubr.msk.f32.mxu0 %vm329_vm2, %v6178_v55 }
 0x6c9   :  { %4999 = vmatmul.mubr.msk.f32.gmra.mrb[36].mxu0 %vm329_vm2, %v6182_v56 }
 0x6ca   :  { %5278 = vset.pattern.permute.xlu0 %v5478_v41  ;;  %2166 = vmatprep.mubr.f32.mxu0 %v7774_v1 }
 0x6cb   :  { %5276 = vset.pattern.permute.xlu1 %v5496_v38  ;;  %2905 = vperm.xlu0 %5278, %v6123_v22  }
 0x6cc   :  { %3519 = vperm.xlu1 %5276, %v6121_v58  }
 0x6cf   :  { %5280 = vset.pattern.permute.xlu0 %v5479_v42 }
 0x6d0   :  { %5279 = vset.pattern.permute.xlu1 %v5477_v40  ;;  %3065 = vperm.xlu0 %5280, %v6123_v22  }
 0x6d1   :  { %2985 = vperm.xlu1 %5279, %v6123_v22  }
 0x6d4   :  { %5283 = vset.pattern.permute.xlu0 %v5490_v34 }
 0x6d5   :  { %5281 = vset.pattern.permute.xlu1 %v5485_v11  ;;  %3305 = vperm.xlu0 %5283, %v6123_v22  }
 0x6d6   :  { %3145 = vperm.xlu1 %5281, %v6123_v22  }
 0x6d9   :  { %5284 = vset.pattern.permute.xlu0 %v5492_v20 }
 0x6da   :  { %5282 = vset.pattern.permute.xlu1 %v5488_v10  ;;  %3385 = vperm.xlu0 %5284, %v6123_v22  }
 0x6db   :  { %3225 = vperm.xlu1 %5282, %v6123_v22  }
 0x6de   :  { %5285 = vset.pattern.permute.xlu0 %v5494_v24 }
 0x6df   :  { %5286 = vset.pattern.permute.xlu1 %v5486_v6  ;;  %3603 = vperm.xlu0 %5285, %v6123_v22  }
 0x6e0   :  { %3683 = vperm.xlu1 %5286, %v6123_v22  }
 0x6e3   :  { %5287 = vset.pattern.permute.xlu0 %v5487_v36 }
 0x6e4   :  { %5289 = vset.pattern.permute.xlu1 %v5489_v13  ;;  %3763 = vperm.xlu0 %5287, %v6123_v22  }
 0x6e5   :  { %3923 = vperm.xlu1 %5289, %v6123_v22  }
 0x6e8   :  { %5288 = vset.pattern.permute.xlu0 %v5495_v28 }
 0x6e9   :  { %5291 = vset.pattern.permute.xlu1 %v5493_v23  ;;  %3843 = vperm.xlu0 %5288, %v6123_v22  }
 0x6ea   :  { %4083 = vperm.xlu1 %5291, %v6123_v22  }
 0x6ed   :  { %5290 = vset.pattern.permute.xlu0 %v5491_v18 }
 0x6ee   :  { %5293 = vset.pattern.permute.xlu1 %v5480_v48  ;;  %4003 = vperm.xlu0 %5290, %v6123_v22  }
 0x6ef   :  { %2837 = vperm.xlu1 %5293, %v6143_v33  }
 0x6f2   :  { %5292 = vset.pattern.permute.xlu0 %v5496_v38 }
 0x6f3   :  { %5295 = vset.pattern.permute.xlu1 %v5477_v40  ;;  %3515 = vperm.xlu0 %5292, %v6123_v22  }
 0x6f4   :  { %2997 = vperm.xlu1 %5295, %v6143_v33  }
 0x6f7   :  { %5294 = vset.pattern.permute.xlu0 %v5478_v41 }
 0x6f8   :  { %5296 = vset.pattern.permute.xlu1 %v5479_v42  ;;  %2917 = vperm.xlu0 %5294, %v6143_v33  }
 0x6f9   :  { %3077 = vperm.xlu1 %5296, %v6143_v33  }
 0x6fc   :  { %5306 = vset.pattern.permute.xlu0 %v5491_v18 }
 0x6fd   :  { %5297 = vset.pattern.permute.xlu1 %v5485_v11  ;;  %4015 = vperm.xlu0 %5306, %v6143_v33  }
 0x6fe   :  { %3157 = vperm.xlu1 %5297, %v6143_v33  }
 0x701   :  { %5307 = vset.pattern.permute.xlu0 %v5493_v23 }
 0x702   :  { %5298 = vset.pattern.permute.xlu1 %v5488_v10  ;;  %4095 = vperm.xlu0 %5307, %v6143_v33  }
 0x703   :  { %3237 = vperm.xlu1 %5298, %v6143_v33  }
 0x706   :  { %5309 = vset.pattern.permute.xlu0 %v5480_v48 }
 0x707   :  { %5299 = vset.pattern.permute.xlu1 %v5490_v34  ;;  %2833 = vperm.xlu0 %5309, %v6141_v8  }
 0x708   :  { %3317 = vperm.xlu1 %5299, %v6143_v33  }
 0x70b   :  { %5313 = vset.pattern.permute.xlu0 %v5485_v11 }
 0x70c   :  { %5300 = vset.pattern.permute.xlu1 %v5492_v20  ;;  %3153 = vperm.xlu0 %5313, %v6141_v8  }
 0x70d   :  { %3397 = vperm.xlu1 %5300, %v6143_v33  }
 0x710   :  { %5315 = vset.pattern.permute.xlu0 %v5490_v34 }
 0x711   :  { %5301 = vset.pattern.permute.xlu1 %v5494_v24  ;;  %3313 = vperm.xlu0 %5315, %v6141_v8  }
 0x712   :  { %3615 = vperm.xlu1 %5301, %v6143_v33  }
 0x715   :  { %5323 = vset.pattern.permute.xlu0 %v5493_v23 }
 0x716   :  { %5302 = vset.pattern.permute.xlu1 %v5486_v6  ;;  %4091 = vperm.xlu0 %5323, %v6141_v8  }
 0x717   :  { %3695 = vperm.xlu1 %5302, %v6143_v33  }
 0x71a   :  { %5326 = vset.pattern.permute.xlu0 %v5478_v41 }
 0x71b   :  { %5303 = vset.pattern.permute.xlu1 %v5487_v36  ;;  %2925 = vperm.xlu0 %5326, %v6162_v19  }
 0x71c   :  { %3775 = vperm.xlu1 %5303, %v6143_v33  }
 0x71f   :  { %5330 = vset.pattern.permute.xlu0 %v5488_v10 }
 0x720   :  { %5304 = vset.pattern.permute.xlu1 %v5495_v28  ;;  %3245 = vperm.xlu0 %5330, %v6162_v19  }
 0x721   :  { %3855 = vperm.xlu1 %5304, %v6143_v33  }
 0x722   :  { %v6353_v31 = vpop.permute.xlu1 %2829 }
 0x723   :  { %7780 = vst [vmem:[#allocation10_spill] sm:$0xff] %v6353_v31 }
 0x724   :  { %5333 = vset.pattern.permute.xlu0 %v5494_v24 }
 0x725   :  { %5305 = vset.pattern.permute.xlu1 %v5489_v13  ;;  %3623 = vperm.xlu0 %5333, %v6162_v19  }
 0x726   :  { %3935 = vperm.xlu1 %5305, %v6143_v33  }
 0x727   :  { %v6363_v0 = vpop.permute.xlu1 %2909 }
 0x729   :  { %5336 = vset.pattern.permute.xlu0 %v5495_v28 }
 0x72a   :  { %5308 = vset.pattern.permute.xlu1 %v5496_v38  ;;  %3863 = vperm.xlu0 %5336, %v6162_v19  }
 0x72b   :  { %3527 = vperm.xlu1 %5308, %v6143_v33  }
 0x72c   :  { %v6371_v21 = vpop.permute.xlu1 %3069 }
 0x72e   :  { %5339 = vset.pattern.permute.xlu0 %v5493_v23 }
 0x72f   :  { %5310 = vset.pattern.permute.xlu1 %v5478_v41  ;;  %4103 = vperm.xlu0 %5339, %v6162_v19  }
 0x730   :  { %2913 = vperm.xlu1 %5310, %v6141_v8  }
 0x732   :  { %v6380_v61 = vpop.permute.xlu1 %3229 }
 0x733   :  { %5341 = vset.pattern.permute.xlu0 %v5480_v48 }
 0x734   :  { %5311 = vset.pattern.permute.xlu1 %v5477_v40  ;;  %2841 = vperm.xlu0 %5341, %v6159_v17  }
 0x735   :  { %2993 = vperm.xlu1 %5311, %v6141_v8  }
 0x738   :  { %5343 = vset.pattern.permute.xlu0 %v5477_v40 }
 0x739   :  { %5312 = vset.pattern.permute.xlu1 %v5479_v42  ;;  %3001 = vperm.xlu0 %5343, %v6159_v17  }
 0x73a   :  { %3073 = vperm.xlu1 %5312, %v6141_v8  }
 0x73d   :  { %5346 = vset.pattern.permute.xlu0 %v5488_v10 }
 0x73e   :  { %5314 = vset.pattern.permute.xlu1 %v5488_v10  ;;  %3241 = vperm.xlu0 %5346, %v6159_v17  }
 0x73f   :  { %3233 = vperm.xlu1 %5314, %v6141_v8  }
 0x742   :  { %5348 = vset.pattern.permute.xlu0 %v5492_v20 }
 0x743   :  { %5316 = vset.pattern.permute.xlu1 %v5492_v20  ;;  %3401 = vperm.xlu0 %5348, %v6159_v17  }
 0x744   :  { %3393 = vperm.xlu1 %5316, %v6141_v8  }
 0x747   :  { %5349 = vset.pattern.permute.xlu0 %v5494_v24 }
 0x748   :  { %5317 = vset.pattern.permute.xlu1 %v5494_v24  ;;  %3619 = vperm.xlu0 %5349, %v6159_v17  }
 0x749   :  { %3611 = vperm.xlu1 %5317, %v6141_v8  }
 0x74c   :  { %5354 = vset.pattern.permute.xlu0 %v5491_v18 }
 0x74d   :  { %5318 = vset.pattern.permute.xlu1 %v5486_v6  ;;  %4019 = vperm.xlu0 %5354, %v6159_v17  }
 0x74e   :  { %3691 = vperm.xlu1 %5318, %v6141_v8  }
 0x751   :  { %5356 = vset.pattern.permute.xlu0 %v5496_v38 }
 0x752   :  { %5319 = vset.pattern.permute.xlu1 %v5487_v36  ;;  %3531 = vperm.xlu0 %5356, %v6159_v17  }
 0x753   :  { %3771 = vperm.xlu1 %5319, %v6141_v8  }
 0x756   :  { %5358 = vset.pattern.permute.xlu0 %v5478_v41 }
 0x757   :  { %5320 = vset.pattern.permute.xlu1 %v5495_v28  ;;  %2933 = vperm.xlu0 %5358, %v6182_v56  }
 0x758   :  { %3851 = vperm.xlu1 %5320, %v6141_v8  }
 0x75b   :  { %5360 = vset.pattern.permute.xlu0 %v5479_v42 }
 0x75c   :  { %5321 = vset.pattern.permute.xlu1 %v5489_v13  ;;  %3093 = vperm.xlu0 %5360, %v6182_v56  }
 0x75d   :  { %3931 = vperm.xlu1 %5321, %v6141_v8  }
 0x760   :  { %5361 = vset.pattern.permute.xlu0 %v5485_v11 }
 0x761   :  { %5322 = vset.pattern.permute.xlu1 %v5491_v18  ;;  %3173 = vperm.xlu0 %5361, %v6182_v56  }
 0x762   :  { %4011 = vperm.xlu1 %5322, %v6141_v8  }
 0x765   :  { %5363 = vset.pattern.permute.xlu0 %v5490_v34 }
 0x766   :  { %5324 = vset.pattern.permute.xlu1 %v5496_v38  ;;  %3333 = vperm.xlu0 %5363, %v6182_v56  }
 0x767   :  { %3523 = vperm.xlu1 %5324, %v6141_v8   ;;  %v6386_v8 = vpop.permute.xlu1 %3309 }
 0x76a   :  { %5365 = vset.pattern.permute.xlu0 %v5494_v24 }
 0x76b   :  { %5325 = vset.pattern.permute.xlu1 %v5480_v48  ;;  %3631 = vperm.xlu0 %5365, %v6182_v56   ;;  %v6393_v7 = vpop.permute.xlu1 %3389 }
 0x76c   :  { %2845 = vperm.xlu1 %5325, %v6162_v19  }
 0x76f   :  { %5370 = vset.pattern.permute.xlu0 %v5491_v18  ;;  %v6400_v29 = vpop.permute.xlu1 %3607 }
 0x770   :  { %5327 = vset.pattern.permute.xlu1 %v5477_v40  ;;  %4031 = vperm.xlu0 %5370, %v6182_v56  }
 0x771   :  { %3005 = vperm.xlu1 %5327, %v6162_v19  }
 0x773   :  { %v6408_v45 = vpop.permute.xlu1 %3847 }
 0x774   :  { %5373 = vset.pattern.permute.xlu0 %v5480_v48 }
 0x775   :  { %5328 = vset.pattern.permute.xlu1 %v5479_v42  ;;  %2849 = vperm.xlu0 %5373, %v6178_v55  }
 0x776   :  { %3085 = vperm.xlu1 %5328, %v6162_v19  }
 0x777   :  { %v6412_v46 = vpop.permute.xlu1 %3519 }
 0x778   :  { %v4991_v49 = vpop.f32.mrb[30].mxu0  ;;  %7781 = vst [vmem:[#allocation11_spill] sm:$0xff] %v6412_v46 }
 0x779   :  { %v1812_v50 = vadd.f32 %v4991_v49, %v6346_v39  ;;  %v1806_v51 = vpop.f32.mrb[31].mxu0  ;;  %5375 = vset.pattern.permute.xlu0 %v5477_v40  ;;  %v138_v49 = vld [vmem:[%s7770_s3 + $0xc8] sm:$0xff] }
 0x77a   :  { %v1807_v52 = vadd.f32 %v1806_v51, %v6346_v39  ;;  %5329 = vset.pattern.permute.xlu1 %v5485_v11  ;;  %3009 = vperm.xlu0 %5375, %v6178_v55  }
 0x77b   :  { %3165 = vperm.xlu1 %5329, %v6162_v19   ;;  %v1846_v54 = vmax.f32 %v1812_v50, 0.0  ;;  %v5399_v50 = vld [vmem:[%s7770_s3 + $0xa8] sm:$0xff] }
 0x77c   :  { %v1845_v12 = vmax.f32 %v1807_v52, 0.0  ;;  %v2031_v51 = vrot.slane %v5399_v50, 2  ;;  %v135_v52 = vld [vmem:[%s7770_s3 + $0xb0] sm:$0xff] }
 0x77e   :  { %5005 = vmatprep.mubr.msk.f32.mxu1 %vm329_vm2, %v1845_v12  ;;  %5379 = vset.pattern.permute.xlu0 %v5490_v34  ;;  %v5400_v12 = vld [vmem:[%s7770_s3 + $0xa0] sm:$0xff] }
 0x77f   :  { %5331 = vset.pattern.permute.xlu1 %v5490_v34  ;;  %5006 = vmatmul.mubr.msk.f32.vlgmr.msra.gmra.mrb[16].mxu1 %vm329_vm2, %v1846_v54  ;;  %v2028_v54 = vrot.slane %v5400_v12, 2 }
 0x780   :  { %3325 = vperm.xlu1 %5331, %v6162_v19   ;;  %3329 = vperm.xlu0 %5379, %v6178_v55  }
 0x784   :  { %5332 = vset.pattern.permute.xlu1 %v5492_v20  ;;  %5383 = vset.pattern.permute.xlu0 %v5487_v36  ;;  %v4994_v63 = vpop.f32.mrb[32].mxu0 }
 0x785   :  { %3405 = vperm.xlu1 %5332, %v6162_v19   ;;  %3787 = vperm.xlu0 %5383, %v6178_v55   ;;  %v1816_v57 = vpop.f32.mrb[33].mxu0  ;;  %v1822_v58 = vadd.f32 %v4994_v63, %v6346_v39 }
 0x786   :  { %v1817_v22 = vadd.f32 %v1816_v57, %v6346_v39  ;;  %v2036_v57 = vrot.slane %v138_v49, 2 }
 0x787   :  { %v1848_v60 = vmax.f32 %v1822_v58, 0.0  ;;  %v137_v58 = vld [vmem:[%s7770_s3 + $0xc0] sm:$0xff] }
 0x788   :  { %v1847_v59 = vmax.f32 %v1817_v22, 0.0  ;;  %v2029_v22 = vrot.slane %v135_v52, 2 }
 0x789   :  { %5334 = vset.pattern.permute.xlu1 %v5486_v6  ;;  %5385 = vset.pattern.permute.xlu0 %v5489_v13 }
 0x78a   :  { %3703 = vperm.xlu1 %5334, %v6162_v19   ;;  %3947 = vperm.xlu0 %5385, %v6178_v55  }
 0x78b   :  { %5008 = vmatprep.mubr.msk.f32.mxu1 %vm329_vm2, %v1847_v59  ;;  %v2034_v59 = vrot.slane %v137_v58, 2  ;;  %v144_v58 = vld [vmem:[%s7770_s3 + $0xf8] sm:$0xff] }
 0x78c   :  { %5009 = vmatmul.mubr.msk.f32.gmra.mrb[18].mxu1 %vm329_vm2, %v1848_v60 }
 0x78e   :  { %5335 = vset.pattern.permute.xlu1 %v5487_v36  ;;  %5389 = vset.pattern.permute.xlu0 %v5493_v23 }
 0x78f   :  { %3783 = vperm.xlu1 %5335, %v6162_v19  }
 0x791   :  { %v4997_v62 = vpop.f32.mrb[34].mxu0 }
 0x792   :  { %v1832_v33 = vadd.f32 %v4997_v62, %v6346_v39  ;;  %v1826_v14 = vpop.f32.mrb[35].mxu0 }
 0x793   :  { %v1827_v15 = vadd.f32 %v1826_v14, %v6346_v39  ;;  %5337 = vset.pattern.permute.xlu1 %v5489_v13  ;;  %v2030_v14 = vsel %vm1859_vm1, %v2028_v54, %v2029_v22 }
 0x794   :  { %3943 = vperm.xlu1 %5337, %v6162_v19   ;;  %v1850_v16 = vmax.f32 %v1832_v33, 0.0 }
 0x795   :  { %v1849_v44 = vmax.f32 %v1827_v15, 0.0 }
 0x797   :  { %5011 = vmatprep.mubr.msk.f32.mxu1 %vm329_vm2, %v1849_v44  ;;  %v2035_v44 = vsel %vm1859_vm1, %v2029_v22, %v2034_v59  ;;  %v143_v22 = vld [vmem:[%s7770_s3 + $0xf0] sm:$0xff] }
 0x798   :  { %5338 = vset.pattern.permute.xlu1 %v5491_v18  ;;  %5012 = vmatmul.mubr.msk.f32.gmra.mrb[20].mxu1 %vm329_vm2, %v1850_v16  ;;  %v5130_v16 = vpack.c.bf16 %v2035_v44, %v2030_v14 }
 0x799   :  { %4023 = vperm.xlu1 %5338, %v6162_v19  }
 0x79c   :  { %v5000_v25 = vpop.f32.mrb[36].mxu0 }
 0x79d   :  { %5340 = vset.pattern.permute.xlu1 %v5496_v38  ;;  %v1842_v26 = vadd.f32 %v5000_v25, %v6346_v39  ;;  %v1836_v27 = vpop.f32.mrb[37].mxu0  ;;  %v140_v25 = vld [vmem:[%s7770_s3 + $0xd8] sm:$0xff] }
 0x79e   :  { %3535 = vperm.xlu1 %5340, %v6162_v19   ;;  %v1837_v43 = vadd.f32 %v1836_v27, %v6346_v39  ;;  %v6416_v19 = vpop.permute.xlu1 %2985  ;;  %v139_v27 = vld [vmem:[%s7770_s3 + $0xd0] sm:$0xff] }
 0x79f   :  { %v1852_v4 = vmax.f32 %v1842_v26, 0.0  ;;  %v142_v26 = vld [vmem:[%s7770_s3 + $0xe8] sm:$0xff] }
 0x7a0   :  { %v1851_v2 = vmax.f32 %v1837_v43, 0.0  ;;  %v2040_v43 = vrot.slane %v140_v25, 2 }
 0x7a2   :  { %5342 = vset.pattern.permute.xlu1 %v5478_v41  ;;  %5014 = vmatprep.mubr.msk.f32.mxu1 %vm329_vm2, %v1851_v2  ;;  %v6420_v47 = vpop.permute.xlu1 %3145  ;;  %v2044_v2 = vrot.slane %v142_v26, 2  ;;  %v2041_v50 = vsel %vm1859_vm1, %v2036_v57, %v2040_v43 }
 0x7a3   :  { %2921 = vperm.xlu1 %5342, %v6159_v17   ;;  %5015 = vmatmul.mubr.msk.f32.gmra.mrb[22].mxu1 %vm329_vm2, %v1852_v4  ;;  %v141_v4 = vld [vmem:[%s7770_s3 + $0xe0] sm:$0xff] }
 0x7a4   :  { %v2042_v49 = vrot.slane %v141_v4, 2  ;;  %v6506_v4 = vld [vmem:[%s7770_s3 + $0x128] sm:$0xff] }
 0x7a6   :  { %v6425_v9 = vpop.permute.xlu1 %3225 }
 0x7a7   :  { %5344 = vset.pattern.permute.xlu1 %v5479_v42 }
 0x7a8   :  { %3081 = vperm.xlu1 %5344, %v6159_v17  }
 0x7aa   :  { %v6430_v39 = vpop.permute.xlu1 %3683 }
 0x7ac   :  { %5345 = vset.pattern.permute.xlu1 %v5485_v11 }
 0x7ad   :  { %3161 = vperm.xlu1 %5345, %v6159_v17  }
 0x7ae   :  { %v6452_v60 = vpop.permute.xlu1 %3923 }
 0x7b1   :  { %5347 = vset.pattern.permute.xlu1 %v5490_v34  ;;  %v136_v34 = vld [vmem:[%s7770_s3 + $0xb8] sm:$0xff] }
 0x7b2   :  { %3321 = vperm.xlu1 %5347, %v6159_v17   ;;  %v2032_v63 = vrot.slane %v136_v34, 2  ;;  %v2038_v34 = vrot.slane %v139_v27, 2  ;;  %v6475_v12 = vpop.permute.xlu1 %4083 }
 0x7b4   :  { %v2033_v62 = vsel %vm1859_vm1, %v2031_v51, %v2032_v63  ;;  %v2037_v33 = vsel %vm1859_vm1, %v2032_v63, %v2036_v57  ;;  %v2045_v51 = vsel %vm1859_vm1, %v2040_v43, %v2044_v2  ;;  %v2039_v52 = vsel %vm1859_vm1, %v2034_v59, %v2038_v34  ;;  %v146_v57 = vld [vmem:[%s7770_s3 + $0x108] sm:$0xff] }
 0x7b5   :  { %v5128_v15 = vpack.c.bf16 %v2037_v33, %v2033_v62  ;;  %v5132_v54 = vpack.c.bf16 %v2045_v51, %v2041_v50  ;;  %v2048_v59 = vrot.slane %v144_v58, 2  ;;  %v2052_v62 = vrot.slane %v146_v57, 2  ;;  %v6515_v50 = vld [vmem:[%s7770_s3 + $0x120] sm:$0xff] }
 0x7b6   :  { %5350 = vset.pattern.permute.xlu1 %v5486_v6  ;;  %v2046_v33 = vrot.slane %v143_v22, 2  ;;  %v6496_v27 = vpop.permute.xlu1 %2837 }
 0x7b7   :  { %3699 = vperm.xlu1 %5350, %v6159_v17   ;;  %5129 = vmatprep.subr.bf16.mxu0 %v5128_v15  ;;  %v2049_v15 = vsel %vm1859_vm1, %v2044_v2, %v2048_v59  ;;  %v2053_v44 = vsel %vm1859_vm1, %v2048_v59, %v2052_v62  ;;  %7782 = vst [vmem:[#allocation12_spill] sm:$0xff] %v6496_v27  ;;  %v148_v2 = vld [vmem:[%s7770_s3 + $0x118] sm:$0xff] }
 0x7b8   :  { %5131 = vmatpush1.bf16.msra.mxu0 %v5130_v16  ;;  %v2047_v16 = vsel %vm1859_vm1, %v2042_v49, %v2046_v33  ;;  %v5136_v25 = vpack.c.bf16 %v2053_v44, %v2049_v15 }
 0x7b9   :  { %5133 = vmatprep.subr.bf16.mxu0 %v5132_v54 }
 0x7ba   :  { %v6522_v58 = vpop.permute.xlu1 %2997 }
 0x7bb   :  { %5351 = vset.pattern.permute.xlu1 %v5487_v36  ;;  %7783 = vst [vmem:[#allocation13_spill] sm:$0xff] %v6522_v58 }
 0x7bc   :  { %3779 = vperm.xlu1 %5351, %v6159_v17  }
 0x7c0   :  { %5352 = vset.pattern.permute.xlu1 %v5495_v28 }
 0x7c1   :  { %3859 = vperm.xlu1 %5352, %v6159_v17  }
 0x7c5   :  { %5353 = vset.pattern.permute.xlu1 %v5489_v13 }
 0x7c6   :  { %3939 = vperm.xlu1 %5353, %v6159_v17  }
 0x7ca   :  { %5355 = vset.pattern.permute.xlu1 %v5493_v23 }
 0x7cb   :  { %4099 = vperm.xlu1 %5355, %v6159_v17   ;;  %v2043_v17 = vsel %vm1859_vm1, %v2038_v34, %v2042_v49  ;;  %v147_v34 = vld [vmem:[%s7770_s3 + $0x110] sm:$0xff]  ;;  %v2056_v49 = vrot.slane %v148_v2, 2 }
 0x7cc   :  { %v5134_v63 = vpack.c.bf16 %v2043_v17, %v2039_v52  ;;  %v2054_v51 = vrot.slane %v147_v34, 2  ;;  %v2058_v52 = vrot.slane %v6515_v50, 2 }
 0x7cd   :  { %v2057_v54 = vsel %vm1859_vm1, %v2052_v62, %v2056_v49  ;;  %v6529_v62 = vpop.permute.xlu1 %3077 }
 0x7ce   :  { %5135 = vmatpush1.bf16.msra.mxu0 %v5134_v63  ;;  %v2059_v22 = vsel %vm1859_vm1, %v2054_v51, %v2058_v52  ;;  %7784 = vst [vmem:[#allocation14_spill] sm:$0xff] %v6529_v62 }
 0x7cf   :  { %5357 = vset.pattern.permute.xlu1 %v5480_v48  ;;  %v145_v48 = vld [vmem:[%s7770_s3 + $0x100] sm:$0xff]  ;;  %5137 = vmatprep.subr.bf16.mxu0 %v5136_v25 }
 0x7d0   :  { %2853 = vperm.xlu1 %5357, %v6182_v56   ;;  %v2050_v14 = vrot.slane %v145_v48, 2 }
 0x7d1   :  { %v6533_v48 = vpop.permute.xlu1 %3157 }
 0x7d2   :  { %v2051_v26 = vsel %vm1859_vm1, %v2046_v33, %v2050_v14  ;;  %v2055_v63 = vsel %vm1859_vm1, %v2050_v14, %v2054_v51  ;;  %7785 = vst [vmem:[#allocation15_spill] sm:$0xff] %v6533_v48 }
 0x7d3   :  { %v5138_v43 = vpack.c.bf16 %v2051_v26, %v2047_v16  ;;  %v5142_v59 = vpack.c.bf16 %v2059_v22, %v2055_v63 }
 0x7d4   :  { %5359 = vset.pattern.permute.xlu1 %v5477_v40  ;;  %v2060_v40 = vrot.slane %v6506_v4, 2 }
 0x7d5   :  { %3013 = vperm.xlu1 %5359, %v6182_v56   ;;  %5139 = vmatpush1.bf16.msra.mxu0 %v5138_v43  ;;  %v6537_v33 = vpop.permute.xlu1 %3237 }
 0x7d6   :  { %v2061_v17 = vsel %vm1859_vm1, %v2056_v49, %v2060_v40  ;;  %7786 = vst [vmem:[#allocation16_spill] sm:$0xff] %v6537_v33 }
 0x7d7   :  { %v5140_v57 = vpack.c.bf16 %v2061_v17, %v2057_v54 }
 0x7d9   :  { %5362 = vset.pattern.permute.xlu1 %v5488_v10  ;;  %5141 = vmatprep.subr.bf16.mxu0 %v5140_v57  ;;  %v6541_v14 = vpop.permute.xlu1 %3317 }
 0x7da   :  { %3253 = vperm.xlu1 %5362, %v6182_v56   ;;  %5143 = vmatpush1.bf16.msra.mxu0 %v5142_v59  ;;  %7787 = vst [vmem:[#allocation17_spill] sm:$0xff] %v6541_v14 }
 0x7db   :  { %5176 = vmatprep.subr.bf16.mxu0 %v5475_v35 }
 0x7dd   :  { %v6546_v15 = vpop.permute.xlu1 %3397 }
 0x7de   :  { %5364 = vset.pattern.permute.xlu1 %v5492_v20  ;;  %7788 = vst [vmem:[#allocation18_spill] sm:$0xff] %v6546_v15 }
 0x7df   :  { %3413 = vperm.xlu1 %5364, %v6182_v56  }
 0x7e3   :  { %5366 = vset.pattern.permute.xlu1 %v5486_v6 }
 0x7e4   :  { %3711 = vperm.xlu1 %5366, %v6182_v56  }
 0x7e8   :  { %5367 = vset.pattern.permute.xlu1 %v5487_v36  ;;  %v6551_v36 = vpop.permute.xlu1 %3615 }
 0x7e9   :  { %3791 = vperm.xlu1 %5367, %v6182_v56   ;;  %7789 = vst [vmem:[#allocation19_spill] sm:$0xff] %v6551_v36 }
 0x7ec   :  { %v6555_v44 = vpop.permute.xlu1 %3695 }
 0x7ed   :  { %5368 = vset.pattern.permute.xlu1 %v5495_v28  ;;  %7790 = vst [vmem:[#allocation20_spill] sm:$0xff] %v6555_v44 }
 0x7ee   :  { %3871 = vperm.xlu1 %5368, %v6182_v56  }
 0x7f2   :  { %5369 = vset.pattern.permute.xlu1 %v5489_v13  ;;  %v6559_v13 = vpop.permute.xlu1 %3775 }
 0x7f3   :  { %3951 = vperm.xlu1 %5369, %v6182_v56   ;;  %7791 = vst [vmem:[#allocation21_spill] sm:$0xff] %v6559_v13 }
 0x7f6   :  { %v6563_v16 = vpop.permute.xlu1 %3855 }
 0x7f7   :  { %5371 = vset.pattern.permute.xlu1 %v5493_v23  ;;  %7792 = vst [vmem:[#allocation22_spill] sm:$0xff] %v6563_v16 }
 0x7f8   :  { %4111 = vperm.xlu1 %5371, %v6182_v56  }
 0x7fc   :  { %5372 = vset.pattern.permute.xlu1 %v5496_v38 }
 0x7fd   :  { %3543 = vperm.xlu1 %5372, %v6182_v56  }
 0x801   :  { %5374 = vset.pattern.permute.xlu1 %v5478_v41  ;;  %v6568_v41 = vpop.permute.xlu1 %3935 }
 0x802   :  { %2929 = vperm.xlu1 %5374, %v6178_v55   ;;  %7793 = vst [vmem:[#allocation23_spill] sm:$0xff] %v6568_v41 }
 0x806   :  { %5376 = vset.pattern.permute.xlu1 %v5479_v42  ;;  %v6573_v42 = vpop.permute.xlu1 %3527 }
 0x807   :  { %3089 = vperm.xlu1 %5376, %v6178_v55   ;;  %7794 = vst [vmem:[#allocation24_spill] sm:$0xff] %v6573_v42 }
 0x80b   :  { %5377 = vset.pattern.permute.xlu1 %v5485_v11  ;;  %v6577_v11 = vpop.permute.xlu1 %2913 }
 0x80c   :  { %3169 = vperm.xlu1 %5377, %v6178_v55  }
 0x810   :  { %5378 = vset.pattern.permute.xlu1 %v5488_v10  ;;  %v6581_v10 = vpop.permute.xlu1 %2993 }
 0x811   :  { %3249 = vperm.xlu1 %5378, %v6178_v55  }
 0x815   :  { %5380 = vset.pattern.permute.xlu1 %v5492_v20  ;;  %v6585_v20 = vpop.permute.xlu1 %3073 }
 0x816   :  { %3409 = vperm.xlu1 %5380, %v6178_v55  }
 0x81a   :  { %5381 = vset.pattern.permute.xlu1 %v5494_v24  ;;  %v1856_v24 = vrot.slane %v6237_v37, %v6113_v53 }
 0x81b   :  { %3627 = vperm.xlu1 %5381, %v6178_v55  }
 0x81f   :  { %5382 = vset.pattern.permute.xlu1 %v5486_v6  ;;  %v6590_v6 = vpop.permute.xlu1 %3233 }
 0x820   :  { %3707 = vperm.xlu1 %5382, %v6178_v55  }
 0x824   :  { %5384 = vset.pattern.permute.xlu1 %v5495_v28 }
 0x825   :  { %3867 = vperm.xlu1 %5384, %v6178_v55  }
 0x829   :  { %5386 = vset.pattern.permute.xlu1 %v5491_v18 }
 0x82a   :  { %4027 = vperm.xlu1 %5386, %v6178_v55  }
 0x82e   :  { %5387 = vset.pattern.permute.xlu1 %v5493_v23 }
 0x82f   :  { %4107 = vperm.xlu1 %5387, %v6178_v55  }
 0x833   :  { %5388 = vset.pattern.permute.xlu1 %v5496_v38 }
 0x834   :  { %3539 = vperm.xlu1 %5388, %v6178_v55  }
 0x852   :  { %v5007_v28 = vpop.f32.mrb[16].mxu1 }
 0x853   :  { %v1957_v56 = vpop.f32.mrb[17].mxu1  ;;  %v1963_v25 = vadd.f32 %v5007_v28, %v1856_v24 }
 0x854   :  { %v1958_v18 = vadd.f32 %v1957_v56, %v1856_v24 }
 0x855   :  { %v1997_v23 = vmax.f32 %v1963_v25, 0.0  ;;  %v6615_v25 = vld [vmem:[%s7769_s2 + $0x1a0] sm:$0xff] }
 0x856   :  { %v1996_v26 = vmax.f32 %v1958_v18, 0.0 }
 0x858   :  { %4750 = vmatmul.mubr.msk.f32.vlgmr.msra.gmra.mrb[38].mxu0 %vm475_vm3, %v1996_v26  ;;  %v96_v26 = vld [vmem:[%s7769_s2 + $0x1b0] sm:$0xff] }
 0x859   :  { %2172 = vmatprep.mubr.f32.mxu0 %v7774_v1 }
 0x85c   :  { %4751 = vmatmul.mubr.msk.f32.gmra.mrb[40].mxu0 %vm475_vm3, %v1997_v23  ;;  %v2426_v23 = vrot.slane %v6615_v25, 3 }
 0x85d   :  { %2178 = vmatprep.mubr.f32.mxu0 %v7774_v1 }
 0x85f   :  { %v5010_v38 = vpop.f32.mrb[18].mxu1 }
 0x860   :  { %v1967_v43 = vpop.f32.mrb[19].mxu1  ;;  %v1973_v2 = vadd.f32 %v5010_v38, %v1856_v24 }
 0x861   :  { %v1968_v55 = vadd.f32 %v1967_v43, %v1856_v24  ;;  %v2430_v43 = vrot.slane %v96_v26, 3 }
 0x862   :  { %v1999_v49 = vmax.f32 %v1973_v2, 0.0  ;;  %v80_v2 = vld [vmem:[%s7769_s2 + $0x130] sm:$0xff] }
 0x863   :  { %v1998_v34 = vmax.f32 %v1968_v55, 0.0  ;;  %v79_v55 = vld [vmem:[%s7769_s2 + $0x128] sm:$0xff] }
 0x865   :  { %4752 = vmatmul.mubr.msk.f32.gmra.mrb[42].mxu0 %vm475_vm3, %v1998_v34  ;;  %v2395_v34 = vrot.slane %v6237_v37, 3  ;;  %v98_v37 = vld [vmem:[%s7769_s2 + $0x1c0] sm:$0xff] }
 0x866   :  { %2184 = vmatprep.mubr.f32.mxu0 %v7774_v1 }
 0x869   :  { %4753 = vmatmul.mubr.msk.f32.gmra.mrb[44].mxu0 %vm475_vm3, %v1999_v49  ;;  %v2396_v49 = vrot.slane %v79_v55, 3 }
 0x86a   :  { %2190 = vmatprep.mubr.f32.mxu0 %v7774_v1 }
 0x86b   :  { %v5013_v40 = vpop.f32.mrb[20].mxu1 }
 0x86c   :  { %v1977_v51 = vpop.f32.mrb[21].mxu1  ;;  %v1983_v54 = vadd.f32 %v5013_v40, %v1856_v24  ;;  %v2398_v40 = vrot.slane %v80_v2, 3 }
 0x86d   :  { %v1978_v52 = vadd.f32 %v1977_v51, %v1856_v24 }
 0x86e   :  { %v2001_v63 = vmax.f32 %v1983_v54, 0.0 }
 0x86f   :  { %v2000_v17 = vmax.f32 %v1978_v52, 0.0 }
 0x871   :  { %4754 = vmatmul.mubr.msk.f32.gmra.mrb[46].mxu0 %vm475_vm3, %v2000_v17  ;;  %v2397_v17 = vsel %vm1708_vm15, %v2395_v34, %v2396_v49 }
 0x872   :  { %2196 = vmatprep.mubr.f32.mxu0 %v7774_v1 }
 0x875   :  { %4755 = vmatmul.mubr.msk.f32.gmra.mrb[48].mxu0 %vm475_vm3, %v2001_v63  ;;  %v2399_v63 = vsel %vm1708_vm15, %v2396_v49, %v2398_v40 }
 0x876   :  { %v5016_v57 = vpop.f32.mrb[22].mxu1  ;;  %2202 = vmatprep.mubr.f32.mxu0 %v7774_v1 }
 0x877   :  { %v1987_v22 = vpop.f32.mrb[23].mxu1  ;;  %v1993_v28 = vadd.f32 %v5016_v57, %v1856_v24  ;;  %v97_v57 = vld [vmem:[%s7769_s2 + $0x1b8] sm:$0xff] }
 0x878   :  { %v1988_v59 = vadd.f32 %v1987_v22, %v1856_v24  ;;  %v95_v24 = vld [vmem:[%s7769_s2 + $0x1a8] sm:$0xff]  ;;  %v5146_v22 = vpack.c.bf16 %v2399_v63, %v2397_v17 }
 0x879   :  { %v2003_v18 = vmax.f32 %v1993_v28, 0.0  ;;  %v2428_v38 = vrot.slane %v95_v24, 3  ;;  %v2434_v28 = vrot.slane %v98_v37, 3 }
 0x87a   :  { %v2002_v56 = vmax.f32 %v1988_v59, 0.0  ;;  %v2432_v59 = vrot.slane %v97_v57, 3 }
 0x87b   :  { %v2429_v51 = vsel %vm1708_vm15, %v2426_v23, %v2428_v38  ;;  %v2431_v52 = vsel %vm1708_vm15, %v2428_v38, %v2430_v43 }
 0x87c   :  { %4756 = vmatmul.mubr.msk.f32.gmra.mrb[50].mxu0 %vm475_vm3, %v2002_v56  ;;  %v5144_v54 = vpack.c.bf16 %v2431_v52, %v2429_v51  ;;  %v81_v56 = vld [vmem:[%s7769_s2 + $0x138] sm:$0xff]  ;;  %v2433_v38 = vsel %vm1708_vm15, %v2430_v43, %v2432_v59  ;;  %v2435_v55 = vsel %vm1708_vm15, %v2432_v59, %v2434_v28  ;;  %v99_v51 = vld [vmem:[%s7769_s2 + $0x1c8] sm:$0xff]  ;;  %v100_v52 = vld [vmem:[%s7769_s2 + $0x1d0] sm:$0xff] }
 0x87d   :  { %2208 = vmatprep.mubr.f32.mxu0 %v7774_v1  ;;  %v2400_v24 = vrot.slane %v81_v56, 3  ;;  %v5148_v2 = vpack.c.bf16 %v2435_v55, %v2433_v38  ;;  %v2436_v17 = vrot.slane %v99_v51, 3  ;;  %v2438_v63 = vrot.slane %v100_v52, 3  ;;  %v83_v43 = vld [vmem:[%s7769_s2 + $0x148] sm:$0xff]  ;;  %v101_v38 = vld [vmem:[%s7769_s2 + $0x1d8] sm:$0xff]  ;;  %v102_v55 = vld [vmem:[%s7769_s2 + $0x1e0] sm:$0xff] }
 0x87e   :  { %5145 = vmatprep.subr.bf16.mxu1 %v5144_v54  ;;  %v2404_v57 = vrot.slane %v83_v43, 3 }
 0x87f   :  { %5147 = vmatpush3.bf16.msra.mxu1 %v5146_v22  ;;  %v2401_v34 = vsel %vm1708_vm15, %v2398_v40, %v2400_v24  ;;  %v84_v40 = vld [vmem:[%s7769_s2 + $0x150] sm:$0xff]  ;;  %v2437_v22 = vsel %vm1708_vm15, %v2434_v28, %v2436_v17  ;;  %v2439_v59 = vsel %vm1708_vm15, %v2436_v17, %v2438_v63  ;;  %v85_v28 = vld [vmem:[%s7769_s2 + $0x158] sm:$0xff] }
 0x880   :  { %4757 = vmatmul.mubr.msk.f32.gmra.mrb[52].mxu0 %vm475_vm3, %v2003_v18  ;;  %v82_v18 = vld [vmem:[%s7769_s2 + $0x140] sm:$0xff]  ;;  %5149 = vmatprep.subr.bf16.mxu1 %v5148_v2  ;;  %v2406_v37 = vrot.slane %v84_v40, 3  ;;  %v5152_v56 = vpack.c.bf16 %v2439_v59, %v2437_v22  ;;  %v2408_v51 = vrot.slane %v85_v28, 3  ;;  %v103_v22 = vld [vmem:[%s7769_s2 + $0x1e8] sm:$0xff]  ;;  %v104_v59 = vld [vmem:[%s7769_s2 + $0x1f0] sm:$0xff] }
 0x881   :  { %5033 = vmatprep.mubr.msk.f32.mxu0 %vm5476_vm13, %v7774_v1  ;;  %v2402_v26 = vrot.slane %v82_v18, 3 }
 0x882   :  { %v2409_v40 = vsel %vm1708_vm15, %v2406_v37, %v2408_v51 }
 0x883   :  { %v2403_v49 = vsel %vm1708_vm15, %v2400_v24, %v2402_v26  ;;  %v2405_v18 = vsel %vm1708_vm15, %v2402_v26, %v2404_v57  ;;  %v2407_v24 = vsel %vm1708_vm15, %v2404_v57, %v2406_v37  ;;  %v86_v26 = vld [vmem:[%s7769_s2 + $0x160] sm:$0xff]  ;;  %v88_v37 = vld [vmem:[%s7769_s2 + $0x170] sm:$0xff] }
 0x884   :  { %v5150_v54 = vpack.c.bf16 %v2403_v49, %v2401_v34  ;;  %v5154_v2 = vpack.c.bf16 %v2407_v24, %v2405_v18  ;;  %v2440_v34 = vrot.slane %v101_v38, 3  ;;  %v2442_v49 = vrot.slane %v102_v55, 3 }
 0x885   :  { %v2410_v52 = vrot.slane %v86_v26, 3  ;;  %v2444_v18 = vrot.slane %v103_v22, 3  ;;  %v2446_v24 = vrot.slane %v104_v59, 3  ;;  %v2414_v55 = vrot.slane %v88_v37, 3 }
 0x886   :  { %5151 = vmatpush3.bf16.msra.mxu1 %v5150_v54  ;;  %v2441_v54 = vsel %vm1708_vm15, %v2438_v63, %v2440_v34  ;;  %v2443_v17 = vsel %vm1708_vm15, %v2440_v34, %v2442_v49  ;;  %v87_v63 = vld [vmem:[%s7769_s2 + $0x168] sm:$0xff] }
 0x887   :  { %5153 = vmatprep.subr.bf16.mxu1 %v5152_v56  ;;  %v5156_v43 = vpack.c.bf16 %v2443_v17, %v2441_v54  ;;  %v2411_v57 = vsel %vm1708_vm15, %v2408_v51, %v2410_v52  ;;  %v2412_v38 = vrot.slane %v87_v63, 3  ;;  %v2447_v34 = vsel %vm1708_vm15, %v2444_v18, %v2446_v24  ;;  %v105_v54 = vld [vmem:[%s7769_s2 + $0x1f8] sm:$0xff]  ;;  %v106_v17 = vld [vmem:[%s7769_s2 + $0x200] sm:$0xff] }
 0x888   :  { %v5158_v56 = vpack.c.bf16 %v2411_v57, %v2409_v40  ;;  %v2448_v40 = vrot.slane %v105_v54, 3  ;;  %v2450_v57 = vrot.slane %v106_v17, 3  ;;  %v109_v17 = vld [vmem:[%s7769_s2 + $0x218] sm:$0xff] }
 0x889   :  { %v2413_v26 = vsel %vm1708_vm15, %v2410_v52, %v2412_v38  ;;  %v2415_v51 = vsel %vm1708_vm15, %v2412_v38, %v2414_v55  ;;  %v90_v52 = vld [vmem:[%s7769_s2 + $0x180] sm:$0xff] }
 0x88a   :  { %5155 = vmatpush3.bf16.msra.mxu1 %v5154_v2  ;;  %v2445_v2 = vsel %vm1708_vm15, %v2442_v49, %v2444_v18  ;;  %v89_v49 = vld [vmem:[%s7769_s2 + $0x178] sm:$0xff]  ;;  %v2418_v59 = vrot.slane %v90_v52, 3  ;;  %v2451_v18 = vsel %vm1708_vm15, %v2448_v40, %v2450_v57 }
 0x88b   :  { %5157 = vmatprep.subr.bf16.mxu1 %v5156_v43  ;;  %v5160_v28 = vpack.c.bf16 %v2447_v34, %v2445_v2  ;;  %v5162_v43 = vpack.c.bf16 %v2415_v51, %v2413_v26  ;;  %v2416_v22 = vrot.slane %v89_v49, 3  ;;  %v107_v2 = vld [vmem:[%s7769_s2 + $0x208] sm:$0xff]  ;;  %v108_v34 = vld [vmem:[%s7769_s2 + $0x210] sm:$0xff]  ;;  %v2456_v49 = vrot.slane %v109_v17, 3 }
 0x88c   :  { %v2452_v26 = vrot.slane %v107_v2, 3  ;;  %v2454_v51 = vrot.slane %v108_v34, 3 }
 0x88d   :  { %v2417_v37 = vsel %vm1708_vm15, %v2414_v55, %v2416_v22  ;;  %v2419_v38 = vsel %vm1708_vm15, %v2416_v22, %v2418_v59  ;;  %v92_v55 = vld [vmem:[%s7769_s2 + $0x190] sm:$0xff]  ;;  %v93_v22 = vld [vmem:[%s7769_s2 + $0x198] sm:$0xff] }
 0x88e   :  { %5159 = vmatpush3.bf16.msra.mxu1 %v5158_v56  ;;  %v2449_v56 = vsel %vm1708_vm15, %v2446_v24, %v2448_v40  ;;  %v5166_v24 = vpack.c.bf16 %v2419_v38, %v2417_v37  ;;  %v2422_v40 = vrot.slane %v92_v55, 3  ;;  %v2424_v38 = vrot.slane %v93_v22, 3 }
 0x88f   :  { %5161 = vmatprep.subr.bf16.mxu1 %v5160_v28  ;;  %v5164_v63 = vpack.c.bf16 %v2451_v18, %v2449_v56  ;;  %v91_v28 = vld [vmem:[%s7769_s2 + $0x188] sm:$0xff]  ;;  %v2453_v56 = vsel %vm1708_vm15, %v2450_v57, %v2452_v26  ;;  %v2455_v18 = vsel %vm1708_vm15, %v2452_v26, %v2454_v51  ;;  %v36_v26 = vld [vmem:[%s7768_s1 + $0x70] sm:$0xff] }
 0x890   :  { %v2420_v54 = vrot.slane %v91_v28, 3  ;;  %v5168_v2 = vpack.c.bf16 %v2455_v18, %v2453_v56  ;;  %v2425_v1 = vsel %vm1708_vm15, %v2422_v40, %v2424_v38  ;;  %v2427_v57 = vsel %vm1708_vm15, %v2424_v38, %v2426_v23 }
 0x891   :  { %v5174_v22 = vpack.c.bf16 %v2427_v57, %v2425_v1  ;;  %v2580_v56 = vrot.slane %v36_v26, 4  ;;  %v6788_v57 = vrot.slane %v6515_v50, %v6113_v53  ;;  %v6792_v26 = vrot.slane %v6506_v4, %v6113_v53 }
 0x892   :  { %5163 = vmatpush3.bf16.msra.mxu1 %v5162_v43  ;;  %v6735_v43 = vld [vmem:[%s7769_s2 + $0x220] sm:$0xff]  ;;  %v2421_v37 = vsel %vm1708_vm15, %v2418_v59, %v2420_v54  ;;  %v2423_v34 = vsel %vm1708_vm15, %v2420_v54, %v2422_v40  ;;  %v37_v40 = vld [vmem:[%s7768_s1 + $0x78] sm:$0xff] }
 0x893   :  { %5165 = vmatprep.subr.bf16.mxu1 %v5164_v63  ;;  %v2458_v52 = vrot.slane %v6735_v43, 3  ;;  %v2457_v63 = vsel %vm1708_vm15, %v2454_v51, %v2456_v49  ;;  %v5170_v55 = vpack.c.bf16 %v2423_v34, %v2421_v37  ;;  %v34_v59 = vld [vmem:[%s7768_s1 + $0x60] sm:$0xff]  ;;  %v5401_v51 = vld [vmem:[%s7768_s1 + $0x58] sm:$0xff]  ;;  %v2582_v18 = vrot.slane %v37_v40, 4 }
 0x894   :  { %v2575_v25 = vrot.slane %v5401_v51, 4  ;;  %v2576_v54 = vrot.slane %v34_v59, 4 }
 0x895   :  { %v2459_v28 = vsel %vm1708_vm15, %v2456_v49, %v2458_v52  ;;  %v38_v49 = vld [vmem:[%s7768_s1 + $0x80] sm:$0xff]  ;;  %v6772_v52 = vld [vmem:[%s7768_s1 + $0x88] sm:$0xff]  ;;  %v2583_v59 = vsel %vm208_vm0, %v2580_v56, %v2582_v18 }
 0x896   :  { %5167 = vmatpush3.bf16.msra.mxu1 %v5166_v24  ;;  %v5172_v17 = vpack.c.bf16 %v2459_v28, %v2457_v63  ;;  %v35_v24 = vld [vmem:[%s7768_s1 + $0x68] sm:$0xff]  ;;  %v2577_v37 = vsel %vm208_vm0, %v2575_v25, %v2576_v54  ;;  %v7776_v34 = vrot.slane %v6772_v52, 4 }
 0x897   :  { %5169 = vmatprep.subr.bf16.mxu1 %v5168_v2  ;;  %v2578_v23 = vrot.slane %v35_v24, 4  ;;  %v2584_v2 = vrot.slane %v38_v49, 4 }
 0x899   :  { %v2579_v38 = vsel %vm208_vm0, %v2576_v54, %v2578_v23  ;;  %v2581_v28 = vsel %vm208_vm0, %v2578_v23, %v2580_v56  ;;  %v2585_v1 = vsel %vm208_vm0, %v2582_v18, %v2584_v2 }
 0x89a   :  { %5171 = vmatpush3.bf16.msra.mxu1 %v5170_v55  ;;  %v5177_v63 = vpack.c.bf16 %v2579_v38, %v2577_v37  ;;  %v5180_v24 = vpack.c.bf16 %v2583_v59, %v2581_v28  ;;  %v2587_v55 = vsel %vm208_vm0, %v2584_v2, %v7776_v34 }
 0x89b   :  { %5173 = vmatprep.subr.bf16.mxu1 %v5172_v17  ;;  %v5183_v17 = vpack.c.bf16 %v2587_v55, %v2585_v1 }
 0x89c   :  { %5178 = vmatpush3.bf16.msra.mxu0 %v5177_v63 }
 0x89d   :  { %5179 = vmatprep.subr.bf16.mxu0 %v5475_v35 }
 0x89e   :  { %5175 = vmatpush3.bf16.msra.mxu1 %v5174_v22 }
 0x8a0   :  { %5181 = vmatpush3.bf16.msra.mxu0 %v5180_v24 }
 0x8a1   :  { %5182 = vmatprep.subr.bf16.mxu0 %v5475_v35 }
 0x8a4   :  { %5184 = vmatpush3.bf16.msra.mxu0 %v5183_v17 }
 0x8a5   :  { %5185 = vmatprep.subr.bf16.mxu0 %v5475_v35 }
 0x92b   :  { %v2168_v51 = vpop.f32.mrb[38].mxu0 }
 0x92c   :  { %v2169_v25 = vadd.f32 %v2168_v51, %v6788_v57  ;;  %v2170_v54 = vpop.f32.mrb[39].mxu0 }
 0x92d   :  { %v2171_v23 = vadd.f32 %v2170_v54, %v6792_v26 }
 0x92e   :  { %v2215_v40 = vmax.f32 %v2169_v25, 0.0 }
 0x92f   :  { %v2216_v49 = vmax.f32 %v2171_v23, 0.0  ;;  %v2174_v22 = vpop.f32.mrb[40].mxu0 }
 0x930   :  { %v2231_v56 = vrot.slane %v2215_v40, 4  ;;  %v2175_v35 = vadd.f32 %v2174_v22, %v6788_v57  ;;  %v2176_v18 = vpop.f32.mrb[41].mxu0 }
 0x931   :  { %v2237_v37 = vrot.slane %v2216_v49, 4  ;;  %v2177_v38 = vadd.f32 %v2176_v18, %v6792_v26 }
 0x932   :  { %v2232_v2 = vmax.f32 %v2215_v40, %v2231_v56  ;;  %v2217_v63 = vmax.f32 %v2175_v35, 0.0 }
 0x933   :  { %v2238_v53 = vmax.f32 %v2216_v49, %v2237_v37  ;;  %v2218_v28 = vmax.f32 %v2177_v38, 0.0 }
 0x934   :  { %v2233_v59 = vrot.slane %v2232_v2, 2  ;;  %v2243_v24 = vrot.slane %v2217_v63, 4 }
 0x935   :  { %v2239_v1 = vrot.slane %v2238_v53, 2  ;;  %v2249_v55 = vrot.slane %v2218_v28, 4 }
 0x936   :  { %v2234_v17 = vmax.f32 %v2232_v2, %v2233_v59  ;;  %v2244_v51 = vmax.f32 %v2217_v63, %v2243_v24 }
 0x937   :  { %v2240_v25 = vmax.f32 %v2238_v53, %v2239_v1  ;;  %v2250_v54 = vmax.f32 %v2218_v28, %v2249_v55 }
 0x938   :  { %v2245_v23 = vrot.slane %v2244_v51, 2  ;;  %v2180_v34 = vpop.f32.mrb[42].mxu0  ;;  %v2235_v41 = vrot.slane %v2234_v17, 1 }
 0x939   :  { %v2251_v42 = vrot.slane %v2250_v54, 2  ;;  %v2181_v22 = vadd.f32 %v2180_v34, %v6788_v57  ;;  %v2182_v27 = vpop.f32.mrb[43].mxu0  ;;  %v2241_v49 = vrot.slane %v2240_v25, 1 }
 0x93a   :  { %v2246_v18 = vmax.f32 %v2244_v51, %v2245_v23  ;;  %v2183_v40 = vadd.f32 %v2182_v27, %v6792_v26  ;;  %v2236_v59 = vmax.f32 %v2234_v17, %v2235_v41 }
 0x93b   :  { %v2252_v56 = vmax.f32 %v2250_v54, %v2251_v42  ;;  %v2219_v35 = vmax.f32 %v2181_v22, 0.0  ;;  %v2242_v55 = vmax.f32 %v2240_v25, %v2241_v49 }
 0x93c   :  { %v2247_v37 = vrot.slane %v2246_v18, 1  ;;  %v2220_v38 = vmax.f32 %v2183_v40, 0.0  ;;  %v2186_v16 = vpop.f32.mrb[44].mxu0 }
 0x93d   :  { %v2253_v2 = vrot.slane %v2252_v56, 1  ;;  %v2255_v63 = vrot.slane %v2219_v35, 4  ;;  %v2187_v53 = vadd.f32 %v2186_v16, %v6788_v57  ;;  %v2188_v28 = vpop.f32.mrb[45].mxu0 }
 0x93e   :  { %v2248_v24 = vmax.f32 %v2246_v18, %v2247_v37  ;;  %v2261_v1 = vrot.slane %v2220_v38, 4  ;;  %v2189_v34 = vadd.f32 %v2188_v28, %v6792_v26 }
 0x93f   :  { %v2254_v51 = vmax.f32 %v2252_v56, %v2253_v2  ;;  %v2256_v23 = vmax.f32 %v2219_v35, %v2255_v63  ;;  %v2221_v27 = vmax.f32 %v2187_v53, 0.0 }
 0x940   :  { %v2347_v42 = vsel %vm745_vm5, %v2248_v24, %v2236_v59  ;;  %v2262_v54 = vmax.f32 %v2220_v38, %v2261_v1  ;;  %v2222_v22 = vmax.f32 %v2189_v34, 0.0 }
 0x941   :  { %v2354_v40 = vsel %vm745_vm5, %v2254_v51, %v2242_v55  ;;  %v2257_v46 = vrot.slane %v2256_v23, 2  ;;  %v2267_v13 = vrot.slane %v2221_v27, 4 }
 0x942   :  { %v2263_v44 = vrot.slane %v2262_v54, 2  ;;  %v2273_v16 = vrot.slane %v2222_v22, 4 }
 0x943   :  { %v2258_v31 = vmax.f32 %v2256_v23, %v2257_v46  ;;  %v2268_v41 = vmax.f32 %v2221_v27, %v2267_v13 }
 0x944   :  { %v2264_v17 = vmax.f32 %v2262_v54, %v2263_v44  ;;  %v2274_v18 = vmax.f32 %v2222_v22, %v2273_v16  ;;  %v2192_v37 = vpop.f32.mrb[46].mxu0 }
 0x945   :  { %v2259_v28 = vrot.slane %v2258_v31, 1  ;;  %v2269_v25 = vrot.slane %v2268_v41, 2  ;;  %v2193_v49 = vadd.f32 %v2192_v37, %v6788_v57  ;;  %v2194_v56 = vpop.f32.mrb[47].mxu0 }
 0x946   :  { %v2265_v35 = vrot.slane %v2264_v17, 1  ;;  %v2275_v2 = vrot.slane %v2274_v18, 2  ;;  %v2195_v38 = vadd.f32 %v2194_v56, %v6792_v26 }
 0x947   :  { %v2260_v63 = vmax.f32 %v2258_v31, %v2259_v28  ;;  %v2270_v53 = vmax.f32 %v2268_v41, %v2269_v25  ;;  %v2223_v59 = vmax.f32 %v2193_v49, 0.0 }
 0x948   :  { %v2266_v24 = vmax.f32 %v2264_v17, %v2265_v35  ;;  %v2276_v1 = vmax.f32 %v2274_v18, %v2275_v2  ;;  %v2224_v34 = vmax.f32 %v2195_v38, 0.0  ;;  %v2198_v46 = vpop.f32.mrb[48].mxu0 }
 0x949   :  { %v2348_v44 = vsel %vm747_vm6, %v2260_v63, %v2347_v42  ;;  %v2271_v13 = vrot.slane %v2270_v53, 1  ;;  %v2279_v55 = vrot.slane %v2223_v59, 4  ;;  %v2199_v51 = vadd.f32 %v2198_v46, %v6788_v57  ;;  %v2200_v23 = vpop.f32.mrb[49].mxu0 }
 0x94a   :  { %v2355_v27 = vsel %vm747_vm6, %v2266_v24, %v2354_v40  ;;  %v2277_v54 = vrot.slane %v2276_v1, 1  ;;  %v2285_v22 = vrot.slane %v2224_v34, 4  ;;  %v2201_v16 = vadd.f32 %v2200_v23, %v6792_v26 }
 0x94b   :  { %v2272_v31 = vmax.f32 %v2270_v53, %v2271_v13  ;;  %v2280_v41 = vmax.f32 %v2223_v59, %v2279_v55  ;;  %v2225_v37 = vmax.f32 %v2199_v51, 0.0 }
 0x94c   :  { %v2278_v17 = vmax.f32 %v2276_v1, %v2277_v54  ;;  %v2286_v18 = vmax.f32 %v2224_v34, %v2285_v22  ;;  %v2226_v28 = vmax.f32 %v2201_v16, 0.0 }
 0x94d   :  { %v2349_v25 = vsel %vm749_vm7, %v2272_v31, %v2348_v44  ;;  %v2281_v42 = vrot.slane %v2280_v41, 2  ;;  %v2291_v49 = vrot.slane %v2225_v37, 4 }
 0x94e   :  { %v2287_v56 = vrot.slane %v2286_v18, 2  ;;  %v2297_v35 = vrot.slane %v2226_v28, 4  ;;  %v2356_v2 = vsel %vm749_vm7, %v2278_v17, %v2355_v27 }
 0x94f   :  { %v2282_v38 = vmax.f32 %v2280_v41, %v2281_v42  ;;  %v2292_v40 = vmax.f32 %v2225_v37, %v2291_v49  ;;  %v2204_v63 = vpop.f32.mrb[50].mxu0 }
 0x950   :  { %v2288_v24 = vmax.f32 %v2286_v18, %v2287_v56  ;;  %v2298_v46 = vmax.f32 %v2226_v28, %v2297_v35  ;;  %v2205_v53 = vadd.f32 %v2204_v63, %v6788_v57  ;;  %v2206_v59 = vpop.f32.mrb[51].mxu0 }
 0x951   :  { %v2283_v13 = vrot.slane %v2282_v38, 1  ;;  %v2293_v1 = vrot.slane %v2292_v40, 2  ;;  %v2207_v34 = vadd.f32 %v2206_v59, %v6792_v26 }
 0x952   :  { %v2289_v55 = vrot.slane %v2288_v24, 1  ;;  %v2299_v44 = vrot.slane %v2298_v46, 2  ;;  %v2227_v51 = vmax.f32 %v2205_v53, 0.0 }
 0x953   :  { %v2284_v23 = vmax.f32 %v2282_v38, %v2283_v13  ;;  %v2294_v54 = vmax.f32 %v2292_v40, %v2293_v1  ;;  %v2228_v22 = vmax.f32 %v2207_v34, 0.0  ;;  %v2210_v16 = vpop.f32.mrb[52].mxu0 }
 0x954   :  { %v2290_v27 = vmax.f32 %v2288_v24, %v2289_v55  ;;  %v2300_v31 = vmax.f32 %v2298_v46, %v2299_v44  ;;  %v2303_v41 = vrot.slane %v2227_v51, 4  ;;  %v2211_v37 = vadd.f32 %v2210_v16, %v6788_v57  ;;  %v2212_v17 = vpop.f32.mrb[53].mxu0 }
 0x955   :  { %v2350_v18 = vsel %vm751_vm8, %v2284_v23, %v2349_v25  ;;  %v2295_v28 = vrot.slane %v2294_v54, 1  ;;  %v2309_v42 = vrot.slane %v2228_v22, 4  ;;  %v2213_v49 = vadd.f32 %v2212_v17, %v6792_v26 }
 0x956   :  { %v2301_v56 = vrot.slane %v2300_v31, 1  ;;  %v2304_v35 = vmax.f32 %v2227_v51, %v2303_v41  ;;  %v2229_v63 = vmax.f32 %v2211_v37, 0.0  ;;  %v2357_v38 = vsel %vm751_vm8, %v2290_v27, %v2356_v2 }
 0x957   :  { %v2296_v40 = vmax.f32 %v2294_v54, %v2295_v28  ;;  %v2310_v53 = vmax.f32 %v2228_v22, %v2309_v42  ;;  %v2230_v59 = vmax.f32 %v2213_v49, 0.0 }
 0x958   :  { %v2302_v24 = vmax.f32 %v2300_v31, %v2301_v56  ;;  %v2305_v46 = vrot.slane %v2304_v35, 2  ;;  %v2315_v13 = vrot.slane %v2229_v63, 4 }
 0x959   :  { %v2311_v1 = vrot.slane %v2310_v53, 2  ;;  %v2321_v57 = vrot.slane %v2230_v59, 4  ;;  %v2351_v34 = vsel %vm753_vm9, %v2296_v40, %v2350_v18  ;;  %v41_v40 = vld [vmem:[%s7768_s1 + $0x98] sm:$0x1f] }
 0x95a   :  { %v2306_v25 = vmax.f32 %v2304_v35, %v2305_v46  ;;  %v2316_v55 = vmax.f32 %v2229_v63, %v2315_v13  ;;  %v2358_v44 = vsel %vm753_vm9, %v2302_v24, %v2357_v38  ;;  %v7795_v63 = vmov 0.0   ;;  %v40_v38 = vld [vmem:[%s7768_s1 + $0x90] sm:$0xff] }
 0x95b   :  { %v2312_v26 = vmax.f32 %v2310_v53, %v2311_v1  ;;  %v2322_v23 = vmax.f32 %v2230_v59, %v2321_v57  ;;  %v2588_v53 = vrot.slane %v40_v38, 4  ;;  %v2590_v59 = vrot.slane %v41_v40, 4 }
 0x95c   :  { %v2307_v51 = vrot.slane %v2306_v25, 1  ;;  %v2317_v16 = vrot.slane %v2316_v55, 2  ;;  %v7796_v24 = vrot.slane %v6772_v52, 4  ;;  %v152_v52 = vld [vmem:[%s7770_s3 + $0x138] sm:$0xff] }
 0x95d   :  { %v2313_v41 = vrot.slane %v2312_v26, 1  ;;  %v2323_v2 = vrot.slane %v2322_v23, 2  ;;  %v2591_v13 = vsel %vm208_vm0, %v2588_v53, %v2590_v59 }
 0x95e   :  { %v2308_v54 = vmax.f32 %v2306_v25, %v2307_v51  ;;  %v2318_v22 = vmax.f32 %v2316_v55, %v2317_v16  ;;  %v2589_v46 = vsel %vm208_vm0, %v7796_v24, %v2588_v53  ;;  %v2689_v51 = vrot.slane %v6506_v4, 3  ;;  %v151_v16 = vld [vmem:[%s7770_s3 + $0x130] sm:$0xff]  ;;  %v6864_v53 = vpop.permute.xlu1 %3393  ;;  %v6868_v24 = vpop.permute.xlu0 %2989 }
 0x95f   :  { %v2314_v27 = vmax.f32 %v2312_v26, %v2313_v41  ;;  %v2324_v31 = vmax.f32 %v2322_v23, %v2323_v2  ;;  %v5186_v1 = vpack.c.bf16 %v2591_v13, %v2589_v46  ;;  %v6844_v23 = vld [vmem:[%s7770_s3 + $0x148] sm:$0xff]  ;;  %v2686_v41 = vrot.slane %v6515_v50, 3 }
 0x960   :  { %v2319_v37 = vrot.slane %v2318_v22, 1  ;;  %v2352_v17 = vsel %vm755_vm11, %v2308_v54, %v2351_v34  ;;  %v2330_v34 = vrot.slane %v6735_v43, %v6340_v30  ;;  %v2690_v2 = vrot.slane %v152_v52, 3 }
 0x961   :  { %v2325_v28 = vrot.slane %v2324_v31, 1  ;;  %v2359_v18 = vsel %vm755_vm11, %v2314_v27, %v2358_v44  ;;  %5187 = vmatpush3.bf16.msra.mxu0 %v5186_v1  ;;  %v2694_v54 = vrot.slane %v6844_v23, 3  ;;  %v2687_v27 = vrot.slane %v151_v16, 3 }
 0x962   :  { %v2320_v42 = vmax.f32 %v2318_v22, %v2319_v37  ;;  %v6855_v22 = vld [vmem:[%s7770_s3 + $0x140] sm:$0xff]  ;;  %v2691_v37 = vsel %vm1708_vm15, %v2689_v51, %v2690_v2  ;;  %v6866_v59 = vpop.permute.xlu1 %3611  ;;  %v6872_v13 = vpop.permute.xlu0 %3149  ;;  %v2681_v15 = vrot.slane %v6844_v23, %v6340_v30 }
 0x963   :  { %v2326_v49 = vmax.f32 %v2324_v31, %v2325_v28  ;;  %v2692_v31 = vrot.slane %v6855_v22, 3  ;;  %v2695_v4 = vsel %vm1708_vm15, %v2690_v2, %v2694_v54 }
 0x964   :  { %v2353_v56 = vsel %vm757_vm12, %v2320_v42, %v2352_v17  ;;  %v2688_v17 = vsel %vm1708_vm15, %v2686_v41, %v2687_v27  ;;  %v5188_v28 = vpack.c.bf16 %v2695_v4, %v2691_v37  ;;  %v2566_v42 = vrot.slane %v41_v40, %v5634_v32 }
 0x965   :  { %v2360_v35 = vsel %vm757_vm12, %v2326_v49, %v2359_v18  ;;  %v2693_v50 = vsel %vm1708_vm15, %v2687_v27, %v2692_v31 }
 0x966   :  { %2556 = vmatprep.mubr.f32.mxu1 %v2360_v35  ;;  %v5190_v18 = vpack.c.bf16 %v2693_v50, %v2688_v17  ;;  %5189 = vmatprep.subr.bf16.mxu1 %v5188_v28  ;;  %v6870_v46 = vpop.permute.xlu1 %3691 }
 0x967   :  { %2557 = vmatmul.mubr.f32.vlgmr.msra.gmra.mrb[24].mxu1 %v2353_v56 }
 0x968   :  { %2767 = vmatprep.mubr.f32.mxu1 %v7795_v63  ;;  %5191 = vmatpush1.bf16.msra.mxu1 %v5190_v18 }
 0x96a   :  { %v6874_v1 = vpop.permute.xlu1 %3771 }
 0x96e   :  { %v6878_v40 = vpop.permute.xlu1 %3851 }
 0xa3a   :  { %v4900_v57 = vpop.f32.mrb[24].mxu1 }
 0xa3b   :  { %v4901_v25 = vpop.f32.mrb[25].mxu1 }
 0xa3c   :  { %v4902_v55 = vadd.f32 %v4901_v25, %v4900_v57  ;;  %v6876_v57 = vpop.permute.xlu0 %3687  ;;  %v6882_v25 = vpop.permute.xlu1 %3931 }
 0xa3e   :  { %v2559_v44 = vadd.f32 %v4902_v55, %v2330_v34 }
 0xa40   :  { %v2562_v26 = vmax.f32 %v2559_v44, 0.0  ;;  %v6880_v34 = vpop.permute.xlu0 %3767  ;;  %v6886_v44 = vpop.permute.xlu1 %4011 }
 0xa42   :  { %5034 = vmatmul.mubr.msk.f32.vlgmr.msra.gmra.mrb[54].mxu0 %vm475_vm3, %v2562_v26 }
 0xa44   :  { %v6884_v55 = vpop.permute.xlu0 %3927  ;;  %v6890_v52 = vpop.permute.xlu1 %3523 }
 0xa45   :  { %7797 = vst [vmem:[#allocation25_spill] sm:$0xff] %v6890_v52 }
 0xa48   :  { %v6888_v26 = vpop.permute.xlu0 %4007  ;;  %v6894_v16 = vpop.permute.xlu1 %2845 }
 0xa49   :  { %7798 = vst [vmem:[#allocation26_spill] sm:$0xff] %v6894_v16 }
 0xa4c   :  { %v6892_v51 = vpop.permute.xlu0 %4087  ;;  %v6898_v2 = vpop.permute.xlu1 %3005 }
 0xa4d   :  { %7800 = vst [vmem:[#allocation28_spill] sm:$0xff] %v6898_v2 }
 0xa50   :  { %v6896_v41 = vpop.permute.xlu0 %2825  ;;  %v6900_v27 = vpop.permute.xlu1 %3085 }
 0xa51   :  { %7799 = vst [vmem:[#allocation27_spill] sm:$0xff] %v6896_v41  ;;  %7801 = vst [vmem:[#allocation29_spill] sm:$0xff] %v6900_v27 }
 0xa54   :  { %v2906_v54 = vpop.permute.xlu0 %2905  ;;  %v6902_v37 = vpop.permute.xlu1 %3165 }
 0xa55   :  { %7802 = vst [vmem:[#allocation30_spill] sm:$0xff] %v6902_v37 }
 0xa58   :  { %v3066_v31 = vpop.permute.xlu0 %3065  ;;  %v6906_v17 = vpop.permute.xlu1 %3325 }
 0xa59   :  { %7803 = vst [vmem:[#allocation31_spill] sm:$0xff] %v6906_v17 }
 0xa5c   :  { %v6904_v4 = vpop.permute.xlu0 %3305  ;;  %v6910_v50 = vpop.permute.xlu1 %3405 }
 0xa5d   :  { %7804 = vst [vmem:[#allocation32_spill] sm:$0xff] %v6910_v50 }
 0xa60   :  { %v6908_v28 = vpop.permute.xlu0 %3385 }
 0xa64   :  { %v6912_v18 = vpop.permute.xlu0 %3603 }
 0xb15   :  { %v2669_v49 = vpop.f32.mrb[54].mxu0 }
 0xb16   :  { %v2670_v56 = vadd.f32 %v2669_v49, %v2566_v42  ;;  %v5035_v35 = vpop.f32.mrb[55].mxu0  ;;  %v6914_v42 = vpop.permute.xlu1 %3703 }
 0xb17   :  { %7805 = vst [vmem:[#allocation33_spill] sm:$0xff] %v6914_v42  ;;  %v6916_v49 = vpop.permute.xlu0 %3763 }
 0xb18   :  { %v2673_v38 = vmax.f32 %v2670_v56, 0.0 }
 0xb1a   :  { %4759 = vmatmul.mubr.msk.f32.vlgmr.msra.gmra.mrb[26].mxu1 %vm329_vm2, %v2673_v38  ;;  %v6918_v56 = vpop.permute.xlu1 %3783 }
 0xb1b   :  { %7806 = vst [vmem:[#allocation34_spill] sm:$0xff] %v6918_v56  ;;  %v6920_v35 = vpop.permute.xlu0 %3843 }
 0xb1e   :  { %v6922_v38 = vpop.permute.xlu1 %3943 }
 0xb1f   :  { %7807 = vst [vmem:[#allocation35_spill] sm:$0xff] %v6922_v38  ;;  %v6924_v32 = vpop.permute.xlu0 %4003 }
 0xb22   :  { %v6926_v63 = vpop.permute.xlu1 %4023 }
 0xb23   :  { %7808 = vst [vmem:[#allocation36_spill] sm:$0xff] %v6926_v63  ;;  %v6928_v16 = vpop.permute.xlu0 %3515 }
 0xb24   :  { %7809 = vst [vmem:[#allocation37_spill] sm:$0xff] %v6928_v16 }
 0xb26   :  { %v6930_v52 = vpop.permute.xlu1 %3535 }
 0xb27   :  { %7810 = vst [vmem:[#allocation38_spill] sm:$0xff] %v6930_v52  ;;  %v6932_v50 = vpop.permute.xlu0 %2917 }
 0xb28   :  { %7811 = vst [vmem:[#allocation39_spill] sm:$0xff] %v6932_v50 }
 0xb2a   :  { %v6934_v17 = vpop.permute.xlu1 %2921 }
 0xb2b   :  { %v6936_v42 = vpop.permute.xlu0 %4015 }
 0xb2c   :  { %7812 = vst [vmem:[#allocation40_spill] sm:$0xff] %v6936_v42 }
 0xb2e   :  { %v6938_v27 = vpop.permute.xlu1 %3081 }
 0xb2f   :  { %v6940_v56 = vpop.permute.xlu0 %4095 }
 0xb30   :  { %7813 = vst [vmem:[#allocation41_spill] sm:$0xff] %v6940_v56 }
 0xb32   :  { %v6942_v36 = vpop.permute.xlu1 %3161 }
 0xb33   :  { %v6944_v38 = vpop.permute.xlu0 %2833 }
 0xb34   :  { %7814 = vst [vmem:[#allocation42_spill] sm:$0xff] %v6944_v38  ;;  %v2677_v38 = vrot.slane %v6855_v22, %v6340_v30 }
 0xb36   :  { %v6946_v2 = vpop.permute.xlu1 %3321 }
 0xb37   :  { %v6948_v63 = vpop.permute.xlu0 %3153 }
 0xb3a   :  { %v6950_v48 = vpop.permute.xlu1 %3699 }
 0xb3b   :  { %7815 = vst [vmem:[#allocation43_spill] sm:$0xff] %v6950_v48  ;;  %v6952_v52 = vpop.permute.xlu0 %3313 }
 0xb3e   :  { %v6954_v16 = vpop.permute.xlu1 %3779 }
 0xb3f   :  { %7816 = vst [vmem:[#allocation44_spill] sm:$0xff] %v6954_v16  ;;  %v6956_v50 = vpop.permute.xlu0 %4091 }
 0xb42   :  { %v6958_v42 = vpop.permute.xlu1 %3859 }
 0xb43   :  { %v6960_v37 = vpop.permute.xlu0 %2925 }
 0xb44   :  { %7817 = vst [vmem:[#allocation45_spill] sm:$0xff] %v6960_v37 }
 0xb46   :  { %v6962_v56 = vpop.permute.xlu1 %3939 }
 0xb47   :  { %v6968_v41 = vpop.permute.xlu0 %3245 }
 0xb48   :  { %7818 = vst [vmem:[#allocation46_spill] sm:$0xff] %v6968_v41 }
 0xb4a   :  { %v6970_v33 = vpop.permute.xlu1 %4099 }
 0xb4b   :  { %v6976_v37 = vpop.permute.xlu0 %3623 }
 0xb4c   :  { %7819 = vst [vmem:[#allocation47_spill] sm:$0xff] %v6976_v37 }
 0xb4e   :  { %v6978_v22 = vpop.permute.xlu1 %2853 }
 0xb4f   :  { %7820 = vst [vmem:[#allocation48_spill] sm:$0xff] %v6978_v22  ;;  %v6984_v41 = vpop.permute.xlu0 %3863 }
 0xb50   :  { %7821 = vst [vmem:[#allocation49_spill] sm:$0xff] %v6984_v41 }
 0xb53   :  { %v6997_v22 = vpop.permute.xlu0 %4103 }
 0xbed   :  { %v2769_v14 = vpop.f32.mrb[26].mxu1 }
 0xbee   :  { %v2770_v16 = vadd.f32 %v2769_v14, %v2677_v38  ;;  %v2771_v48 = vpop.f32.mrb[27].mxu1  ;;  %v6986_v14 = vpop.permute.xlu1 %3013 }
 0xbef   :  { %v6972_v62 = vadd.f32 %v2771_v48, %v2681_v15  ;;  %7822 = vst [vmem:[#allocation50_spill] sm:$0xff] %v6986_v14 }
 0xbf0   :  { %v2782_v58 = vrot.slane %v2770_v16, %v5995_v5  ;;  %4655 = vst [vmem:[#allocation6] sm:$0xff] %v2770_v16 }
 0xbf1   :  { %4656 = vst [vmem:[#allocation6 + $0x8] sm:$0xff] %v6972_v62  ;;  %v6990_v48 = vrot.slane %v6972_v62, %v5995_v5 }
 0xbf2   :  { %v2798_v30 = vrot.slane %v2782_v58, %v5995_v5  ;;  %v6999_v41 = vpop.permute.xlu1 %3253 }
 0xbf3   :  { %7823 = vst [vmem:[#allocation51_spill] sm:$0xff] %v6999_v41  ;;  %v7003_v14 = vrot.slane %v6990_v48, %v5995_v5 }
 0xbf4   :  { %v6982_v23 = vrot.slane %v2798_v30, %v5660_v3 }
 0xbf6   :  { %v3016_v15 = vmul.f32 %v6416_v19, %v6982_v23  ;;  %v2936_v38 = vmul.f32 %v2906_v54, %v6982_v23  ;;  %v3096_v37 = vmul.f32 %v3066_v31, %v6982_v23  ;;  %v3176_v19 = vmul.f32 %v6420_v47, %v6982_v23  ;;  %v7018_v31 = vpop.permute.xlu0 %2841  ;;  %v7020_v41 = vpop.permute.xlu1 %3413 }
 0xbf7   :  { %v7012_v54 = vrot.slane %v7003_v14, %v5660_v3  ;;  %7824 = vst [vmem:[#allocation52_spill] sm:$0xff] %v7020_v41  ;;  %v2775_v47 = vcombine.high %v2770_v16, %v2770_v16  ;;  %v2820_v41 = vcombine.high %v2798_v30, %v2798_v30 }
 0xbf8   :  { %3032 = vrot.lane.b32.xlu0 %v3016_v15, %s5497_s7  ;;  %2952 = vrot.lane.b32.xlu1 %v2936_v38, %s5498_s8  ;;  %v3336_v15 = vmul.f32 %v6904_v4, %v6982_v23  ;;  %v3256_v38 = vmul.f32 %v6425_v9, %v6982_v23 }
 0xbf9   :  { %v3714_v4 = vmul.f32 %v6430_v39, %v7012_v54  ;;  %v3634_v16 = vmul.f32 %v6912_v18, %v7012_v54  ;;  %v2790_v39 = vcombine.high %v2782_v58, %v2782_v58  ;;  %v3874_v30 = vmul.f32 %v6920_v35, %v7012_v54 }
 0xbfa   :  { %v3002_v9 = vpop.permute.xlu0 %3001  ;;  %v3954_v18 = vmul.f32 %v6452_v60, %v7012_v54  ;;  %v4034_v35 = vmul.f32 %v6924_v32, %v7012_v54 }
 0xbfb   :  { %v7057_v58 = vrot.slane %v2790_v39, %v5995_v5  ;;  %v4114_v39 = vmul.f32 %v6475_v12, %v7012_v54 }
 0xbfc   :  { %3112 = vrot.lane.b32.xlu0 %v3096_v37, %s5499_s9  ;;  %3192 = vrot.lane.b32.xlu1 %v3176_v19, %s5500_s10  ;;  %v3416_v37 = vmul.f32 %v6908_v28, %v6982_v23  ;;  %v7030_v19 = vpop.permute.xlu1 %3711  ;;  %v3794_v28 = vmul.f32 %v6916_v49, %v7012_v54 }
 0xc00   :  { %3352 = vrot.lane.b32.xlu0 %v3336_v15, %s5501_s11  ;;  %3272 = vrot.lane.b32.xlu1 %v3256_v38, %s5502_s12  ;;  %v7033_v15 = vrot.slane %v2775_v47, %v5995_v5  ;;  %v3242_v47 = vpop.permute.xlu0 %3241  ;;  %v7052_v49 = vpop.permute.xlu1 %3791 }
 0xc02   :  { %v7043_v38 = vrot.slane %v7033_v15, %v5995_v5 }
 0xc04   :  { %3432 = vrot.lane.b32.xlu0 %v3416_v37, %s5503_s13  ;;  %3730 = vrot.lane.b32.xlu1 %v3714_v4, %s5497_s7  ;;  %v7046_v37 = vrot.slane %v2820_v41, %v5660_v3  ;;  %v7061_v41 = vrot.slane %v7043_v38, %v5660_v3  ;;  %v7069_v4 = vpop.permute.xlu0 %3401 }
 0xc06   :  { %v2938_v60 = vmul.f32 %v6577_v11, %v7046_v37  ;;  %v2940_v32 = vmul.f32 %v6934_v17, %v7061_v41 }
 0xc08   :  { %3650 = vrot.lane.b32.xlu0 %v3634_v16, %s5498_s8  ;;  %3810 = vrot.lane.b32.xlu1 %v3794_v28, %s5499_s9  ;;  %v7071_v16 = vpop.permute.xlu1 %3871  ;;  %v7075_v28 = vrot.slane %v7057_v58, %v5660_v3 }
 0xc0a   :  { %v2937_v11 = vmul.f32 %v6363_v0, %v7075_v28  ;;  %v3177_v12 = vmul.f32 %v6872_v13, %v7075_v28  ;;  %v3097_v17 = vmul.f32 %v6371_v21, %v7075_v28  ;;  %v3337_v21 = vmul.f32 %v6386_v8, %v7075_v28 }
 0xc0b   :  { %v3098_v13 = vmul.f32 %v6585_v20, %v7046_v37 }
 0xc0c   :  { %3890 = vrot.lane.b32.xlu0 %v3874_v30, %s5500_s10  ;;  %3970 = vrot.lane.b32.xlu1 %v3954_v18, %s5502_s12  ;;  %v3017_v30 = vmul.f32 %v6868_v24, %v7075_v28  ;;  %v7087_v18 = vpop.permute.xlu0 %3619 }
 0xc10   :  { %4050 = vrot.lane.b32.xlu0 %v4034_v35, %s5501_s11  ;;  %2956 = vrot.lane.b32.xlu1 %v2938_v60, %s5498_s8  ;;  %v7089_v35 = vpop.permute.xlu1 %3951  ;;  %v7099_v0 = vpop.permute.xlu0 %4019  ;;  %v3257_v60 = vmul.f32 %v6380_v61, %v7075_v28  ;;  %v3417_v61 = vmul.f32 %v6393_v7, %v7075_v28 }
 0xc14   :  { %4130 = vrot.lane.b32.xlu0 %v4114_v39, %s5503_s13  ;;  %2960 = vrot.lane.b32.xlu1 %v2940_v32, %s5498_s8  ;;  %v7101_v24 = vpop.permute.xlu1 %4111  ;;  %v3018_v39 = vmul.f32 %v6581_v10, %v7046_v37  ;;  %v7113_v32 = vpop.permute.xlu0 %3531  ;;  %v3258_v10 = vmul.f32 %v6590_v6, %v7046_v37  ;;  %v3338_v6 = vmul.f32 %v6952_v52, %v7046_v37 }
 0xc15   :  { %v3418_v52 = vmul.f32 %v6864_v53, %v7046_v37  ;;  %v3340_v53 = vmul.f32 %v6946_v2, %v7061_v41 }
 0xc18   :  { %2954 = vrot.lane.b32.xlu0 %v2937_v11, %s5498_s8  ;;  %3034 = vrot.lane.b32.xlu1 %v3017_v30, %s5497_s7  ;;  %v7115_v11 = vpop.permute.xlu1 %3543  ;;  %v7125_v8 = vpop.permute.xlu0 %2933  ;;  %v3480_v30 = vcombine.high %v6990_v48, %v6990_v48 }
 0xc1a   :  { %v7137_v7 = vrot.slane %v3480_v30, %v5995_v5 }
 0xc1c   :  { %3194 = vrot.lane.b32.xlu0 %v3177_v12, %s5500_s10  ;;  %3114 = vrot.lane.b32.xlu1 %v3097_v17, %s5499_s9  ;;  %v7127_v20 = vpop.permute.xlu1 %2929  ;;  %v3178_v12 = vmul.f32 %v6948_v63, %v7046_v37  ;;  %v3020_v17 = vmul.f32 %v3002_v9, %v7061_v41  ;;  %v3510_v63 = vcombine.high %v7003_v14, %v7003_v14 }
 0xc1d   :  { %v7153_v9 = vrot.slane %v7137_v7, %v5660_v3  ;;  %v3180_v14 = vmul.f32 %v6942_v36, %v7061_v41  ;;  %v3420_v36 = vmul.f32 %v7069_v4, %v7061_v41 }
 0xc1f   :  { %v4115_v4 = vmul.f32 %v6892_v51, %v7153_v9  ;;  %v3875_v51 = vmul.f32 %v6408_v45, %v7153_v9  ;;  %v7236_v45 = vld [vmem:[%s7769_s2 + $0x230] sm:$0x1f] }
 0xc20   :  { %3274 = vrot.lane.b32.xlu0 %v3257_v60, %s5502_s12  ;;  %3036 = vrot.lane.b32.xlu1 %v3018_v39, %s5497_s7  ;;  %v3100_v60 = vmul.f32 %v6938_v27, %v7061_v41  ;;  %v7143_v39 = vpop.permute.xlu0 %3093  ;;  %v7145_v48 = vpop.permute.xlu1 %3089  ;;  %v3260_v27 = vmul.f32 %v3242_v47, %v7061_v41 }
 0xc24   :  { %3354 = vrot.lane.b32.xlu0 %v3337_v21, %s5501_s11  ;;  %3116 = vrot.lane.b32.xlu1 %v3098_v13, %s5499_s9  ;;  %v7160_v21 = vpop.permute.xlu0 %3173  ;;  %v7162_v13 = vpop.permute.xlu1 %3169 }
 0xc28   :  { %3434 = vrot.lane.b32.xlu0 %v3417_v61, %s5503_s13  ;;  %3276 = vrot.lane.b32.xlu1 %v3258_v10, %s5502_s12  ;;  %v7165_v61 = vrot.slane %v3510_v63, %v5660_v3  ;;  %v3795_v10 = vmul.f32 %v6880_v34, %v7153_v9  ;;  %v7177_v30 = vpop.permute.xlu0 %3333 }
 0xc2a   :  { %v3716_v47 = vmul.f32 %v6870_v46, %v7165_v61  ;;  %v3796_v34 = vmul.f32 %v6874_v1, %v7165_v61  ;;  %v3465_v46 = vcombine.high %v6972_v62, %v6972_v62  ;;  %v3715_v62 = vmul.f32 %v6876_v57, %v7153_v9 }
 0xc2b   :  { %v4036_v57 = vmul.f32 %v6886_v44, %v7165_v61  ;;  %v4168_v44 = vrot.slane %v6735_v43, 4 }
 0xc2c   :  { %3196 = vrot.lane.b32.xlu0 %v3178_v12, %s5500_s10  ;;  %3040 = vrot.lane.b32.xlu1 %v3020_v17, %s5497_s7  ;;  %v7179_v12 = vpop.permute.xlu1 %3249  ;;  %v7191_v2 = vpop.permute.xlu0 %3631  ;;  %v7202_v1 = vrot.slane %v3465_v46, %v5995_v5 }
 0xc30   :  { %3356 = vrot.lane.b32.xlu0 %v3338_v6, %s5501_s11  ;;  %3120 = vrot.lane.b32.xlu1 %v3100_v60, %s5499_s9  ;;  %v7193_v17 = vpop.permute.xlu1 %3409  ;;  %v3635_v6 = vmul.f32 %v6400_v29, %v7153_v9  ;;  %v3956_v60 = vmul.f32 %v6882_v25, %v7165_v61  ;;  %v7208_v63 = vpop.permute.xlu0 %4031  ;;  %v7216_v29 = vrot.slane %v7202_v1, %v5995_v5 }
 0xc31   :  { %v2821_v25 = vcombine.high %v7043_v38, %v7043_v38  ;;  %v3636_v38 = vmul.f32 %v6866_v59, %v7165_v61 }
 0xc33   :  { %v7255_v59 = vrot.slane %v2821_v25, %v5660_v3 }
 0xc34   :  { %3436 = vrot.lane.b32.xlu0 %v3418_v52, %s5503_s13  ;;  %3280 = vrot.lane.b32.xlu1 %v3260_v27, %s5502_s12  ;;  %v7210_v52 = vpop.permute.xlu1 %3627  ;;  %v7228_v27 = vrot.slane %v7216_v29, %v5660_v3 }
 0xc38   :  { %3200 = vrot.lane.b32.xlu0 %v3180_v14, %s5500_s10  ;;  %3812 = vrot.lane.b32.xlu1 %v3795_v10, %s5499_s9  ;;  %v111_v14 = vld [vmem:[%s7769_s2 + $0x228] sm:$0xff]  ;;  %v7239_v10 = vpop.permute.xlu0 %2849 }
 0xc3c   :  { %3360 = vrot.lane.b32.xlu0 %v3340_v53, %s5501_s11  ;;  %3734 = vrot.lane.b32.xlu1 %v3716_v47, %s5497_s7  ;;  %v7241_v53 = vpop.permute.xlu1 %3707  ;;  %v4116_v47 = vmul.f32 %v6956_v50, %v7165_v61  ;;  %v3955_v50 = vmul.f32 %v6884_v55, %v7153_v9  ;;  %v2942_v55 = vmul.f32 %v7127_v20, %v7255_v59  ;;  %v7826_v20 = vld [vmem:[#allocation14_spill] sm:$0xff] }
 0xc40   :  { %3440 = vrot.lane.b32.xlu0 %v3420_v36, %s5503_s13  ;;  %3814 = vrot.lane.b32.xlu1 %v3796_v34, %s5499_s9  ;;  %v4169_v36 = vrot.slane %v111_v14, 4  ;;  %v4171_v34 = vrot.slane %v7236_v45, 4  ;;  %v3876_v14 = vmul.f32 %v6878_v40, %v7165_v61  ;;  %v2791_v40 = vcombine.high %v7033_v15, %v7033_v15 }
 0xc42   :  { %v4170_v46 = vsel %vm208_vm0, %v4168_v44, %v4169_v36  ;;  %v4172_v43 = vsel %vm208_vm0, %v4169_v36, %v4171_v34  ;;  %v7825_v44 = vld [vmem:[#allocation13_spill] sm:$0xff] }
 0xc44   :  { %3652 = vrot.lane.b32.xlu0 %v3635_v6, %s5498_s8  ;;  %4132 = vrot.lane.b32.xlu1 %v4115_v4, %s5503_s13  ;;  %v5192_v6 = vpack.c.bf16 %v4172_v43, %v4170_v46  ;;  %v2822_v4 = vcombine.high %v7057_v58, %v7057_v58  ;;  %v7827_v46 = vld [vmem:[#allocation43_spill] sm:$0xff] }
 0xc45   :  { %v3718_v43 = vmul.f32 %v7827_v46, %v7228_v27  ;;  %v7832_v46 = vld [vmem:[#allocation18_spill] sm:$0xff] }
 0xc46   :  { %5193 = vmatprep.subr.bf16.mxu1 %v5192_v6  ;;  %v7266_v58 = vrot.slane %v2822_v4, %v5660_v3 }
 0xc47   :  { %5195 = vmatpush3.bf16.msra.mxu1 %v5192_v6  ;;  %v7828_v6 = vld [vmem:[#allocation16_spill] sm:$0xff] }
 0xc48   :  { %3732 = vrot.lane.b32.xlu0 %v3715_v62, %s5497_s7  ;;  %3974 = vrot.lane.b32.xlu1 %v3956_v60, %s5502_s12  ;;  %v3878_v62 = vmul.f32 %v6958_v42, %v7228_v27  ;;  %v3010_v60 = vpop.permute.xlu0 %3009 }
 0xc4c   :  { %3892 = vrot.lane.b32.xlu0 %v3875_v51, %s5500_s10  ;;  %4054 = vrot.lane.b32.xlu1 %v4036_v57, %s5501_s11  ;;  %v7261_v51 = vpop.permute.xlu1 %3867  ;;  %v4035_v57 = vmul.f32 %v6888_v26, %v7153_v9  ;;  %v7274_v42 = vpop.permute.xlu0 %3329  ;;  %v3638_v26 = vmul.f32 %v7087_v18, %v7228_v27  ;;  %v3259_v18 = vmul.f32 %v7828_v6, %v7266_v58 }
 0xc50   :  { %3654 = vrot.lane.b32.xlu0 %v3636_v38, %s5498_s8  ;;  %4134 = vrot.lane.b32.xlu1 %v4116_v47, %s5503_s13  ;;  %v7276_v25 = vpop.permute.xlu1 %4027  ;;  %v3019_v38 = vmul.f32 %v7825_v44, %v7266_v58  ;;  %v3099_v47 = vmul.f32 %v7826_v20, %v7266_v58  ;;  %v7288_v36 = vpop.permute.xlu0 %3787  ;;  %v7831_v44 = vld [vmem:[#allocation27_spill] sm:$0xff] }
 0xc54   :  { %3972 = vrot.lane.b32.xlu0 %v3955_v50, %s5502_s12  ;;  %3898 = vrot.lane.b32.xlu1 %v3878_v62, %s5500_s10  ;;  %v7290_v34 = vpop.permute.xlu1 %4107  ;;  %v7302_v4 = vpop.permute.xlu0 %3947  ;;  %v7307_v62 = vrot.slane %v2791_v40, %v5995_v5  ;;  %v3958_v40 = vmul.f32 %v6962_v56, %v7228_v27 }
 0xc58   :  { %4052 = vrot.lane.b32.xlu0 %v4035_v57, %s5501_s11  ;;  %2964 = vrot.lane.b32.xlu1 %v2942_v55, %s5498_s8  ;;  %v7304_v50 = vpop.permute.xlu1 %3539  ;;  %v7829_v57 = vld [vmem:[#allocation44_spill] sm:$0xff]  ;;  %v7830_v55 = vld [vmem:[#allocation17_spill] sm:$0xff] }
 0xc59   :  { %v3798_v15 = vmul.f32 %v7829_v57, %v7228_v27 }
 0xc5c   :  { %3894 = vrot.lane.b32.xlu0 %v3876_v14, %s5500_s10  ;;  %3038 = vrot.lane.b32.xlu1 %v3019_v38, %s5497_s7  ;;  %v3339_v14 = vmul.f32 %v7830_v55, %v7266_v58  ;;  %v2896_v38 = vmul.f32 %v6982_v23, %v7831_v44  ;;  %v7833_v55 = vld [vmem:[#allocation30_spill] sm:$0xff] }
 0xc60   :  { %3658 = vrot.lane.b32.xlu0 %v3638_v26, %s5498_s8  ;;  %3118 = vrot.lane.b32.xlu1 %v3099_v47, %s5499_s9  ;;  %v7319_v26 = vrot.slane %v7307_v62, %v5660_v3 }
 0xc64   :  { %3738 = vrot.lane.b32.xlu0 %v3718_v43, %s5497_s7  ;;  %3278 = vrot.lane.b32.xlu1 %v3259_v18, %s5502_s12  ;;  %v3419_v43 = vmul.f32 %v7832_v46, %v7266_v58 }
 0xc68   :  { %3818 = vrot.lane.b32.xlu0 %v3798_v15, %s5499_s9  ;;  %3358 = vrot.lane.b32.xlu1 %v3339_v14, %s5501_s11  ;;  %v4038_v15 = vmul.f32 %v7099_v0, %v7228_v27  ;;  %v3181_v14 = vmul.f32 %v7833_v55, %v7319_v26  ;;  %v7835_v55 = vld [vmem:[#allocation37_spill] sm:$0xff] }
 0xc6a   :  { %v3033_v20 = vpop.permute.xlu0 %3032  ;;  %v2953_v47 = vpop.permute.xlu1 %2952 }
 0xc6b   :  { %v2976_v6 = vadd.f32 %v2953_v47, %v2896_v38 }
 0xc6c   :  { %3978 = vrot.lane.b32.xlu0 %v3958_v40, %s5502_s12  ;;  %3438 = vrot.lane.b32.xlu1 %v3419_v43, %s5503_s13  ;;  %v4118_v40 = vmul.f32 %v6970_v33, %v7228_v27  ;;  %v3586_v33 = vmul.f32 %v7012_v54, %v7835_v55  ;;  %v3512_v54 = vcombine.high %v7137_v7, %v7137_v7  ;;  %v7838_v55 = vld [vmem:[#allocation28_spill] sm:$0xff] }
 0xc6d   :  { %v3056_v18 = vadd.f32 %v3033_v20, %v2976_v6  ;;  %v3022_v20 = vmul.f32 %v3010_v60, %v7255_v59 }
 0xc6e   :  { %v3113_v57 = vpop.permute.xlu0 %3112  ;;  %v3193_v23 = vpop.permute.xlu1 %3192 }
 0xc6f   :  { %v3136_v44 = vadd.f32 %v3113_v57, %v3056_v18  ;;  %v7834_v18 = vld [vmem:[#allocation39_spill] sm:$0xff] }
 0xc70   :  { %4058 = vrot.lane.b32.xlu0 %v4038_v15, %s5501_s11  ;;  %3202 = vrot.lane.b32.xlu1 %v3181_v14, %s5500_s10  ;;  %v2939_v57 = vmul.f32 %v7834_v18, %v7266_v58 }
 0xc71   :  { %v3216_v56 = vadd.f32 %v3193_v23, %v3136_v44  ;;  %v3102_v23 = vmul.f32 %v7145_v48, %v7255_v59 }
 0xc72   :  { %v3353_v38 = vpop.permute.xlu0 %3352  ;;  %v3273_v47 = vpop.permute.xlu1 %3272 }
 0xc73   :  { %v3296_v46 = vadd.f32 %v3273_v47, %v3216_v56  ;;  %v3262_v56 = vmul.f32 %v7179_v12, %v7255_v59 }
 0xc74   :  { %4138 = vrot.lane.b32.xlu0 %v4118_v40, %s5503_s13  ;;  %3044 = vrot.lane.b32.xlu1 %v3022_v20, %s5497_s7 }
 0xc75   :  { %v3376_v0 = vadd.f32 %v3353_v38, %v3296_v46  ;;  %v7836_v38 = vld [vmem:[#allocation45_spill] sm:$0xff] }
 0xc76   :  { %v3433_v43 = vpop.permute.xlu0 %3432  ;;  %v3731_v6 = vpop.permute.xlu1 %3730  ;;  %v2941_v47 = vmul.f32 %v7836_v38, %v7319_v26 }
 0xc77   :  { %v3456_v15 = vadd.f32 %v3433_v43, %v3376_v0  ;;  %v3342_v0 = vmul.f32 %v7274_v42, %v7255_v59  ;;  %v7837_v43 = vld [vmem:[#allocation15_spill] sm:$0xff]  ;;  %v3422_v42 = vmul.f32 %v7193_v17, %v7255_v59 }
 0xc78   :  { %2958 = vrot.lane.b32.xlu0 %v2939_v57, %s5498_s8  ;;  %3124 = vrot.lane.b32.xlu1 %v3102_v23, %s5499_s9  ;;  %v3179_v12 = vmul.f32 %v7837_v43, %v7266_v58  ;;  %v7363_v23 = vrot.slane %v3512_v54, %v5660_v3  ;;  %v7842_v43 = vld [vmem:[#allocation20_spill] sm:$0xff] }
 0xc79   :  { %v3594_v60 = vadd.f32 %v3586_v33, %v3456_v15  ;;  %v3021_v33 = vmul.f32 %v7838_v55, %v7319_v26  ;;  %v7844_v55 = vld [vmem:[#allocation47_spill] sm:$0xff] }
 0xc7a   :  { %v3651_v14 = vpop.permute.xlu0 %3650  ;;  %v3811_v44 = vpop.permute.xlu1 %3810 }
 0xc7b   :  { %v3674_v40 = vadd.f32 %v3651_v14, %v3594_v60 }
 0xc7c   :  { %3284 = vrot.lane.b32.xlu1 %v3262_v56, %s5502_s12  ;;  %2962 = vrot.lane.b32.xlu0 %v2941_v47, %s5498_s8  ;;  %v7839_v47 = vld [vmem:[#allocation19_spill] sm:$0xff] }
 0xc7d   :  { %v3754_v48 = vadd.f32 %v3731_v6, %v3674_v40  ;;  %v3481_v6 = vcombine.high %v7202_v1, %v7202_v1  ;;  %v2900_v1 = vmul.f32 %v7061_v41, %v7018_v31  ;;  %v3637_v17 = vmul.f32 %v7839_v47, %v7363_v23  ;;  %v7840_v40 = vld [vmem:[#allocation29_spill] sm:$0xff]  ;;  %v7841_v31 = vld [vmem:[#allocation10_spill] sm:$0xff] }
 0xc7e   :  { %v3891_v20 = vpop.permute.xlu0 %3890  ;;  %v3971_v46 = vpop.permute.xlu1 %3970 }
 0xc7f   :  { %v3834_v18 = vadd.f32 %v3811_v44, %v3754_v48  ;;  %v7374_v44 = vrot.slane %v3481_v6, %v5995_v5  ;;  %v3101_v48 = vmul.f32 %v7840_v40, %v7319_v26  ;;  %v2897_v5 = vmul.f32 %v7075_v28, %v7841_v31 }
 0xc80   :  { %3364 = vrot.lane.b32.xlu1 %v3342_v0, %s5501_s11  ;;  %3198 = vrot.lane.b32.xlu0 %v3179_v12, %s5500_s10  ;;  %v3717_v12 = vmul.f32 %v7842_v43, %v7363_v23 }
 0xc81   :  { %v3914_v57 = vadd.f32 %v3891_v20, %v3834_v18  ;;  %v7387_v41 = vrot.slane %v7374_v44, %v5660_v3  ;;  %v7843_v18 = vld [vmem:[#allocation46_spill] sm:$0xff] }
 0xc82   :  { %v4051_v7 = vpop.permute.xlu0 %4050  ;;  %v2957_v15 = vpop.permute.xlu1 %2956 }
 0xc83   :  { %v3994_v60 = vadd.f32 %v3971_v46, %v3914_v57  ;;  %v3261_v57 = vmul.f32 %v7843_v18, %v7319_v26  ;;  %v7849_v18 = vld [vmem:[#allocation42_spill] sm:$0xff] }
 0xc84   :  { %3444 = vrot.lane.b32.xlu1 %v3422_v42, %s5503_s13  ;;  %3042 = vrot.lane.b32.xlu0 %v3021_v33, %s5497_s7  ;;  %v3639_v33 = vmul.f32 %v7844_v55, %v7387_v41 }
 0xc85   :  { %v4074_v14 = vadd.f32 %v4051_v7, %v3994_v60  ;;  %v7845_v60 = vld [vmem:[#allocation31_spill] sm:$0xff] }
 0xc86   :  { %v4131_v56 = vpop.permute.xlu0 %4130  ;;  %v2961_v38 = vpop.permute.xlu1 %2960 }
 0xc87   :  { %v4154_v54 = vadd.f32 %v4131_v56, %v4074_v14  ;;  %v2980_v20 = vadd.f32 %v2961_v38, %v2900_v1  ;;  %v3341_v14 = vmul.f32 %v7845_v60, %v7319_v26  ;;  %v3511_v56 = vcombine.high %v7216_v29, %v7216_v29  ;;  %v7848_v29 = vld [vmem:[#allocation34_spill] sm:$0xff]  ;;  %v7850_v60 = vld [vmem:[#allocation21_spill] sm:$0xff] }
 0xc88   :  { %3656 = vrot.lane.b32.xlu1 %v3637_v17, %s5498_s8  ;;  %3122 = vrot.lane.b32.xlu0 %v3101_v48, %s5499_s9  ;;  %v7846_v17 = vld [vmem:[#allocation33_spill] sm:$0xff]  ;;  %v7847_v48 = vld [vmem:[#allocation32_spill] sm:$0xff]  ;;  %v3799_v43 = vmul.f32 %v7848_v29, %v7387_v41 }
 0xc89   :  { %5040 = vmatprep.mubr.msk.f32.mxu1 %vm329_vm2, %v4154_v54  ;;  %v3719_v40 = vmul.f32 %v7846_v17, %v7387_v41  ;;  %v3421_v54 = vmul.f32 %v7847_v48, %v7319_v26  ;;  %v7852_v48 = vld [vmem:[#allocation22_spill] sm:$0xff] }
 0xc8a   :  { %v2955_v46 = vpop.permute.xlu0 %2954  ;;  %v3035_v0 = vpop.permute.xlu1 %3034 }
 0xc8b   :  { %v2977_v6 = vadd.f32 %v2955_v46, %v2897_v5  ;;  %v7410_v5 = vrot.slane %v3511_v56, %v5660_v3  ;;  %v7851_v56 = vld [vmem:[#allocation11_spill] sm:$0xff] }
 0xc8c   :  { %3736 = vrot.lane.b32.xlu1 %v3717_v12, %s5497_s7  ;;  %3282 = vrot.lane.b32.xlu0 %v3261_v57, %s5502_s12  ;;  %v3182_v12 = vmul.f32 %v7162_v13, %v7255_v59  ;;  %v2898_v57 = vmul.f32 %v7046_v37, %v7849_v18  ;;  %v3587_v37 = vmul.f32 %v7153_v9, %v7851_v56 }
 0xc8d   :  { %v3057_v7 = vadd.f32 %v3035_v0, %v2977_v6 }
 0xc8e   :  { %v3195_v42 = vpop.permute.xlu0 %3194  ;;  %v3115_v28 = vpop.permute.xlu1 %3114 }
 0xc8f   :  { %v3137_v1 = vadd.f32 %v3115_v28, %v3057_v7  ;;  %v2978_v7 = vadd.f32 %v2957_v15, %v2898_v57 }
 0xc90   :  { %3660 = vrot.lane.b32.xlu1 %v3639_v33, %s5498_s8  ;;  %3362 = vrot.lane.b32.xlu0 %v3341_v14, %s5501_s11  ;;  %v3640_v33 = vmul.f32 %v7210_v52, %v7410_v5  ;;  %v3797_v14 = vmul.f32 %v7850_v60, %v7363_v23  ;;  %v3720_v52 = vmul.f32 %v7241_v53, %v7410_v5  ;;  %v7853_v53 = vld [vmem:[#allocation23_spill] sm:$0xff] }
 0xc91   :  { %v3217_v31 = vadd.f32 %v3195_v42, %v3137_v1 }
 0xc92   :  { %v3275_v38 = vpop.permute.xlu0 %3274  ;;  %v3037_v47 = vpop.permute.xlu1 %3036 }
 0xc93   :  { %v3297_v6 = vadd.f32 %v3275_v38, %v3217_v31  ;;  %v3058_v1 = vadd.f32 %v3037_v47, %v2978_v7 }
 0xc94   :  { %3740 = vrot.lane.b32.xlu1 %v3719_v40, %s5497_s7  ;;  %3442 = vrot.lane.b32.xlu0 %v3421_v54, %s5503_s13  ;;  %v3877_v54 = vmul.f32 %v7852_v48, %v7363_v23 }
 0xc96   :  { %v3355_v46 = vpop.permute.xlu0 %3354  ;;  %v3117_v0 = vpop.permute.xlu1 %3116 }
 0xc97   :  { %v3377_v42 = vadd.f32 %v3355_v46, %v3297_v6  ;;  %v3138_v38 = vadd.f32 %v3117_v0, %v3058_v1  ;;  %v2823_v46 = vcombine.high %v7307_v62, %v7307_v62  ;;  %v3880_v62 = vmul.f32 %v7261_v51, %v7410_v5 }
 0xc98   :  { %3820 = vrot.lane.b32.xlu1 %v3799_v43, %s5499_s9  ;;  %3204 = vrot.lane.b32.xlu0 %v3182_v12, %s5500_s10  ;;  %v3800_v43 = vmul.f32 %v7288_v36, %v7410_v5  ;;  %v3957_v12 = vmul.f32 %v7853_v53, %v7363_v23 }
 0xc99   :  { %v7445_v57 = vrot.slane %v2823_v46, %v5660_v3 }
 0xc9a   :  { %v3435_v28 = vpop.permute.xlu0 %3434  ;;  %v3277_v55 = vpop.permute.xlu1 %3276 }
 0xc9b   :  { %v3457_v13 = vadd.f32 %v3435_v28, %v3377_v42  ;;  %v7854_v42 = vld [vmem:[#allocation40_spill] sm:$0xff] }
 0xc9c   :  { %3662 = vrot.lane.b32.xlu1 %v3640_v33, %s5498_s8  ;;  %3816 = vrot.lane.b32.xlu0 %v3797_v14, %s5499_s9  ;;  %v4037_v36 = vmul.f32 %v7854_v42, %v7363_v23 }
 0xc9d   :  { %v7428_v15 = vadd.f32 %v3587_v37, %v3457_v13  ;;  %v7856_v13 = vld [vmem:[#allocation41_spill] sm:$0xff]  ;;  %v7857_v37 = vld [vmem:[#allocation50_spill] sm:$0xff] }
 0xc9e   :  { %v3197_v17 = vpop.permute.xlu0 %3196  ;;  %v3041_v40 = vpop.permute.xlu1 %3040  ;;  %v4117_v56 = vmul.f32 %v7856_v13, %v7363_v23  ;;  %v3023_v51 = vmul.f32 %v7857_v37, %v7445_v57 }
 0xc9f   :  { %v3218_v47 = vadd.f32 %v3197_v17, %v3138_v38  ;;  %v3060_v31 = vadd.f32 %v3041_v40, %v2980_v20 }
 0xca0   :  { %3742 = vrot.lane.b32.xlu1 %v3720_v52, %s5497_s7  ;;  %3896 = vrot.lane.b32.xlu0 %v3877_v54, %s5500_s10  ;;  %v7858_v52 = vld [vmem:[#allocation49_spill] sm:$0xff]  ;;  %v3103_v54 = vmul.f32 %v7143_v39, %v7445_v57  ;;  %v3590_v39 = vmul.f32 %v7228_v27, %v7113_v32 }
 0xca1   :  { %v3298_v9 = vadd.f32 %v3277_v55, %v3218_v47  ;;  %v7855_v55 = vld [vmem:[#allocation25_spill] sm:$0xff]  ;;  %v3879_v48 = vmul.f32 %v7858_v52, %v7387_v41 }
 0xca2   :  { %v3357_v0 = vpop.permute.xlu0 %3356  ;;  %v3121_v29 = vpop.permute.xlu1 %3120  ;;  %v3588_v33 = vmul.f32 %v7165_v61, %v7855_v55  ;;  %v2943_v55 = vmul.f32 %v7125_v8, %v7445_v57 }
 0xca3   :  { %v3140_v18 = vadd.f32 %v3121_v29, %v3060_v31  ;;  %v3378_v20 = vadd.f32 %v3357_v0, %v3298_v9  ;;  %v3513_v31 = vcombine.high %v7374_v44, %v7374_v44  ;;  %v7859_v0 = vld [vmem:[#allocation35_spill] sm:$0xff] }
 0xca4   :  { %3822 = vrot.lane.b32.xlu1 %v3800_v43, %s5499_s9  ;;  %3976 = vrot.lane.b32.xlu0 %v3957_v12, %s5502_s12  ;;  %v3959_v29 = vmul.f32 %v7859_v0, %v7387_v41  ;;  %v3183_v43 = vmul.f32 %v7160_v21, %v7445_v57  ;;  %v3960_v21 = vmul.f32 %v7302_v4, %v7410_v5 }
 0xca5   :  { %v7480_v44 = vrot.slane %v3513_v31, %v5660_v3 }
 0xca6   :  { %v3437_v6 = vpop.permute.xlu0 %3436  ;;  %v3281_v7 = vpop.permute.xlu1 %3280 }
 0xca7   :  { %v3458_v28 = vadd.f32 %v3437_v6, %v3378_v20  ;;  %v7860_v6 = vld [vmem:[#allocation36_spill] sm:$0xff]  ;;  %v3641_v3 = vmul.f32 %v7191_v2, %v7480_v44 }
 0xca8   :  { %3902 = vrot.lane.b32.xlu1 %v3880_v62, %s5500_s10  ;;  %4056 = vrot.lane.b32.xlu0 %v4037_v36, %s5501_s11  ;;  %v4119_v62 = vmul.f32 %v6997_v22, %v7387_v41 }
 0xca9   :  { %v3596_v60 = vadd.f32 %v3588_v33, %v3458_v28  ;;  %v3721_v28 = vmul.f32 %v7030_v19, %v7480_v44 }
 0xcaa   :  { %v3201_v14 = vpop.permute.xlu0 %3200  ;;  %v3813_v1 = vpop.permute.xlu1 %3812 }
 0xcab   :  { %v3220_v38 = vadd.f32 %v3201_v14, %v3140_v18  ;;  %v3801_v14 = vmul.f32 %v7052_v49, %v7480_v44 }
 0xcac   :  { %4136 = vrot.lane.b32.xlu0 %v4117_v56, %s5503_s13  ;;  %3046 = vrot.lane.b32.xlu1 %v3023_v51, %s5497_s7  ;;  %v4040_v51 = vmul.f32 %v7276_v25, %v7410_v5  ;;  %v7862_v25 = vld [vmem:[#allocation52_spill] sm:$0xff] }
 0xcad   :  { %v3300_v17 = vadd.f32 %v3281_v7, %v3220_v38  ;;  %v4039_v7 = vmul.f32 %v7860_v6, %v7387_v41  ;;  %v3343_v38 = vmul.f32 %v7177_v30, %v7445_v57 }
 0xcae   :  { %v3361_v61 = vpop.permute.xlu0 %3360  ;;  %v3735_v40 = vpop.permute.xlu1 %3734 }
 0xcaf   :  { %v3380_v47 = vadd.f32 %v3361_v61, %v3300_v17  ;;  %v2902_v61 = vmul.f32 %v7255_v59, %v7239_v10  ;;  %v3881_v10 = vmul.f32 %v7071_v16, %v7480_v44  ;;  %v5402_v16 = vld [vmem:[%s7770_s3 + $0x148] sm:$0xff] }
 0xcb0   :  { %3900 = vrot.lane.b32.xlu0 %v3879_v48, %s5500_s10  ;;  %3126 = vrot.lane.b32.xlu1 %v3103_v54, %s5499_s9  ;;  %v4120_v48 = vmul.f32 %v7290_v34, %v7410_v5  ;;  %v3423_v54 = vmul.f32 %v7862_v25, %v7445_v57 }
 0xcb2   :  { %v3441_v9 = vpop.permute.xlu0 %3440  ;;  %v3815_v46 = vpop.permute.xlu1 %3814 }
 0xcb3   :  { %v3460_v53 = vadd.f32 %v3441_v9, %v3380_v47 }
 0xcb4   :  { %3980 = vrot.lane.b32.xlu0 %v3959_v29, %s5502_s12  ;;  %3206 = vrot.lane.b32.xlu1 %v3183_v43, %s5500_s10  ;;  %v3961_v29 = vmul.f32 %v7089_v35, %v7480_v44  ;;  %v156_v43 = vld [vmem:[%s7770_s3 + $0x158] sm:$0xff]  ;;  %v5403_v35 = vld [vmem:[%s7770_s3 + $0x140] sm:$0xff] }
 0xcb5   :  { %v7477_v12 = vadd.f32 %v3590_v39, %v3460_v53  ;;  %v4339_v53 = vrot.slane %v5402_v16, 4  ;;  %v155_v39 = vld [vmem:[%s7770_s3 + $0x150] sm:$0xff] }
 0xcb6   :  { %v3653_v18 = vpop.permute.xlu0 %3652  ;;  %v4133_v20 = vpop.permute.xlu1 %4132 }
 0xcb7   :  { %v3675_v42 = vadd.f32 %v3653_v18, %v7428_v15  ;;  %v7861_v15 = vld [vmem:[#allocation51_spill] sm:$0xff]  ;;  %v4336_v18 = vrot.slane %v5403_v35, 4 }
 0xcb8   :  { %4060 = vrot.lane.b32.xlu0 %v4039_v7, %s5501_s11  ;;  %3982 = vrot.lane.b32.xlu1 %v3960_v21, %s5502_s12  ;;  %v3263_v13 = vmul.f32 %v7861_v15, %v7445_v57  ;;  %v4041_v7 = vmul.f32 %v7208_v63, %v7480_v44  ;;  %v4340_v21 = vrot.slane %v156_v43, 4 }
 0xcba   :  { %v3733_v32 = vpop.permute.xlu0 %3732  ;;  %v3975_v27 = vpop.permute.xlu1 %3974 }
 0xcbb   :  { %v3755_v33 = vadd.f32 %v3733_v32, %v3675_v42  ;;  %v162_v42 = vld [vmem:[%s7770_s3 + $0x188] sm:$0xff] }
 0xcbc   :  { %4140 = vrot.lane.b32.xlu0 %v4119_v62, %s5503_s13  ;;  %3664 = vrot.lane.b32.xlu1 %v3641_v3, %s5498_s8  ;;  %v4337_v62 = vrot.slane %v155_v39, 4  ;;  %v160_v3 = vld [vmem:[%s7770_s3 + $0x178] sm:$0xff] }
 0xcbd   :  { %v3835_v56 = vadd.f32 %v3813_v1, %v3755_v33  ;;  %v4348_v63 = vrot.slane %v160_v3, 4  ;;  %v159_v33 = vld [vmem:[%s7770_s3 + $0x170] sm:$0xff] }
 0xcbe   :  { %v3893_v36 = vpop.permute.xlu0 %3892  ;;  %v4055_v4 = vpop.permute.xlu1 %4054 }
 0xcbf   :  { %v3915_v17 = vadd.f32 %v3893_v36, %v3835_v56  ;;  %v7580_v56 = vld [vmem:[%s7770_s3 + $0x1a8] sm:$0xff] }
 0xcc0   :  { %3744 = vrot.lane.b32.xlu1 %v3721_v28, %s5497_s7  ;;  %2966 = vrot.lane.b32.xlu0 %v2943_v55, %s5498_s8 }
 0xcc2   :  { %v3655_v22 = vpop.permute.xlu0 %3654  ;;  %v7501_v2 = vpop.permute.xlu1 %4134 }
 0xcc3   :  { %v3676_v19 = vadd.f32 %v3655_v22, %v3596_v60  ;;  %v161_v22 = vld [vmem:[%s7770_s3 + $0x180] sm:$0xff] }
 0xcc4   :  { %3824 = vrot.lane.b32.xlu1 %v3801_v14, %s5499_s9  ;;  %3286 = vrot.lane.b32.xlu0 %v3263_v13, %s5502_s12  ;;  %v4341_v14 = vsel %vm208_vm0, %v4339_v53, %v4340_v21  ;;  %v4352_v13 = vrot.slane %v162_v42, 4  ;;  %v4121_v53 = vmul.f32 %v7101_v24, %v7480_v44 }
 0xcc5   :  { %v3756_v49 = vadd.f32 %v3735_v40, %v3676_v19 }
 0xcc6   :  { %v3973_v8 = vpop.permute.xlu0 %3972  ;;  %v7509_v37 = vpop.permute.xlu1 %3898 }
 0xcc7   :  { %v3995_v1 = vadd.f32 %v3973_v8, %v3915_v17  ;;  %v3836_v31 = vadd.f32 %v3815_v46, %v3756_v49  ;;  %v158_v46 = vld [vmem:[%s7770_s3 + $0x168] sm:$0xff]  ;;  %v163_v17 = vld [vmem:[%s7770_s3 + $0x190] sm:$0xff]  ;;  %v7591_v49 = vld [vmem:[%s7770_s3 + $0x1a0] sm:$0xff] }
 0xcc8   :  { %4062 = vrot.lane.b32.xlu1 %v4040_v51, %s5501_s11  ;;  %3366 = vrot.lane.b32.xlu0 %v3343_v38, %s5501_s11  ;;  %v4344_v32 = vrot.slane %v158_v46, 4 }
 0xcca   :  { %v4053_v60 = vpop.permute.xlu0 %4052  ;;  %v2965_v52 = vpop.permute.xlu1 %2964  ;;  %v4345_v15 = vsel %vm208_vm0, %v4340_v21, %v4344_v32  ;;  %v4349_v38 = vsel %vm208_vm0, %v4344_v32, %v4348_v63 }
 0xccb   :  { %v4075_v47 = vadd.f32 %v4053_v60, %v3995_v1  ;;  %v7523_v30 = vadd.f32 %v2965_v52, %v2902_v61  ;;  %v5196_v8 = vpack.c.bf16 %v4345_v15, %v4341_v14  ;;  %v4353_v52 = vsel %vm208_vm0, %v4348_v63, %v4352_v13 }
 0xccc   :  { %4142 = vrot.lane.b32.xlu1 %v4120_v48, %s5503_s13  ;;  %3446 = vrot.lane.b32.xlu0 %v3423_v54, %s5503_s13  ;;  %v4350_v48 = vrot.slane %v161_v22, 4  ;;  %v5200_v25 = vpack.c.bf16 %v4353_v52, %v4349_v38  ;;  %v7865_v52 = vld [vmem:[#allocation24_spill] sm:$0xff] }
 0xccd   :  { %v4155_v40 = vadd.f32 %v4133_v20, %v4075_v47  ;;  %5197 = vmatprep.subr.bf16.mxu1 %v5196_v8  ;;  %v4360_v47 = vrot.slane %v7580_v56, 4 }
 0xcce   :  { %v3895_v9 = vpop.permute.xlu0 %3894  ;;  %v7527_v0 = vpop.permute.xlu1 %3038 }
 0xccf   :  { %v3916_v59 = vadd.f32 %v3895_v9, %v3836_v31  ;;  %5041 = vmatmul.mubr.msk.f32.vlgmr.msra.gmra.mrb[28].mxu1 %vm329_vm2, %v4155_v40  ;;  %v4354_v9 = vrot.slane %v163_v17, 4 }
 0xcd0   :  { %3904 = vrot.lane.b32.xlu0 %v3881_v10, %s5500_s10  ;;  %v4358_v10 = vrot.slane %v7591_v49, 4 }
 0xcd1   :  { %v3996_v34 = vadd.f32 %v3975_v27, %v3916_v59  ;;  %v157_v27 = vld [vmem:[%s7770_s3 + $0x160] sm:$0xff]  ;;  %v4355_v35 = vsel %vm208_vm0, %v4350_v48, %v4354_v9 }
 0xcd2   :  { %v3659_v20 = vpop.permute.xlu0 %3658  ;;  %v7550_v6 = vpop.permute.xlu1 %3118  ;;  %v4342_v55 = vrot.slane %v157_v27, 4 }
 0xcd3   :  { %v4076_v36 = vadd.f32 %v4055_v4, %v3996_v34  ;;  %v3678_v28 = vadd.f32 %v3659_v20, %v7477_v12  ;;  %v4338_v4 = vsel %vm208_vm0, %v4336_v18, %v4337_v62  ;;  %v164_v12 = vld [vmem:[%s7770_s3 + $0x198] sm:$0xff]  ;;  %v4359_v18 = vsel %vm208_vm0, %v4354_v9, %v4358_v10 }
 0xcd4   :  { %3984 = vrot.lane.b32.xlu0 %v3961_v29, %s5502_s12  ;;  %v4343_v51 = vsel %vm208_vm0, %v4337_v62, %v4342_v55  ;;  %v4356_v54 = vrot.slane %v164_v12, 4 }
 0xcd5   :  { %v4156_v19 = vadd.f32 %v7501_v2, %v4076_v36  ;;  %v5198_v60 = vpack.c.bf16 %v4343_v51, %v4338_v4  ;;  %v4346_v2 = vrot.slane %v159_v33, 4  ;;  %v7863_v36 = vld [vmem:[#allocation12_spill] sm:$0xff] }
 0xcd6   :  { %v3739_v1 = vpop.permute.xlu0 %3738  ;;  %v3279_v61 = vpop.permute.xlu1 %3278  ;;  %v4357_v29 = vsel %vm208_vm0, %v4352_v13, %v4356_v54  ;;  %v4361_v43 = vsel %vm208_vm0, %v4356_v54, %v4360_v47 }
 0xcd7   :  { %5043 = vmatprep.mubr.msk.f32.mxu1 %vm329_vm2, %v4156_v19  ;;  %5199 = vmatpush1.bf16.msra.mxu1 %v5198_v60  ;;  %v4347_v40 = vsel %vm208_vm0, %v4342_v55, %v4346_v2  ;;  %v4351_v31 = vsel %vm208_vm0, %v4346_v2, %v4350_v48  ;;  %v3758_v59 = vadd.f32 %v3739_v1, %v3678_v28  ;;  %v7864_v19 = vld [vmem:[#allocation26_spill] sm:$0xff] }
 0xcd8   :  { %4064 = vrot.lane.b32.xlu0 %v4041_v7, %s5501_s11  ;;  %5201 = vmatprep.subr.bf16.mxu1 %v5200_v25  ;;  %v5202_v34 = vpack.c.bf16 %v4351_v31, %v4347_v40  ;;  %v5204_v39 = vpack.c.bf16 %v4361_v43, %v4357_v29  ;;  %v5206_v7 = vpack.c.bf16 %v4359_v18, %v4355_v35 }
 0xcd9   :  { %v2899_v28 = vmul.f32 %v7266_v58, %v7863_v36  ;;  %v2901_v8 = vmul.f32 %v7319_v26, %v7864_v19  ;;  %v3589_v2 = vmul.f32 %v7363_v23, %v7865_v52 }
 0xcda   :  { %v3819_v46 = vpop.permute.xlu0 %3818  ;;  %v3359_v16 = vpop.permute.xlu1 %3358 }
 0xcdb   :  { %v3838_v20 = vadd.f32 %v3819_v46, %v3758_v59  ;;  %5203 = vmatpush1.bf16.msra.mxu1 %v5202_v34 }
 0xcdc   :  { %4144 = vrot.lane.b32.xlu0 %v4121_v53, %s5503_s13  ;;  %5205 = vmatprep.subr.bf16.mxu1 %v5204_v39 }
 0xcdd   :  { %v7612_v21 = vadd.f32 %v7509_v37, %v3838_v20 }
 0xcde   :  { %v7614_v32 = vpop.permute.xlu0 %3978  ;;  %v3439_v27 = vpop.permute.xlu1 %3438 }
 0xcdf   :  { %5207 = vmatpush1.bf16.msra.mxu1 %v5206_v7 }
 0xce2   :  { %v7616_v24 = vpop.permute.xlu0 %4058  ;;  %v3203_v62 = vpop.permute.xlu1 %3202 }
 0xce6   :  { %v7618_v3 = vpop.permute.xlu0 %4138  ;;  %v3045_v42 = vpop.permute.xlu1 %3044 }
 0xce7   :  { %v3062_v46 = vadd.f32 %v3045_v42, %v7523_v30 }
 0xcea   :  { %v2959_v55 = vpop.permute.xlu0 %2958  ;;  %v3125_v63 = vpop.permute.xlu1 %3124 }
 0xceb   :  { %v2979_v33 = vadd.f32 %v2959_v55, %v2899_v28  ;;  %v3142_v39 = vadd.f32 %v3125_v63, %v3062_v46 }
 0xced   :  { %v3059_v37 = vadd.f32 %v7527_v0, %v2979_v33  ;;  %v3592_v33 = vmul.f32 %v7410_v5, %v7304_v50 }
 0xcee   :  { %v3285_v22 = vpop.permute.xlu1 %3284  ;;  %v2963_v14 = vpop.permute.xlu0 %2962 }
 0xcef   :  { %v3139_v15 = vadd.f32 %v7550_v6, %v3059_v37  ;;  %v2981_v1 = vadd.f32 %v2963_v14, %v2901_v8 }
 0xcf2   :  { %v3365_v4 = vpop.permute.xlu1 %3364  ;;  %v3199_v13 = vpop.permute.xlu0 %3198 }
 0xcf3   :  { %v3219_v12 = vadd.f32 %v3199_v13, %v3139_v15 }
 0xcf5   :  { %v3299_v51 = vadd.f32 %v3279_v61, %v3219_v12 }
 0xcf6   :  { %v3445_v38 = vpop.permute.xlu1 %3444  ;;  %v3043_v17 = vpop.permute.xlu0 %3042 }
 0xcf7   :  { %v3379_v58 = vadd.f32 %v3359_v16, %v3299_v51  ;;  %v3061_v60 = vadd.f32 %v3043_v17, %v2981_v1  ;;  %v7866_v16 = vld [vmem:[#allocation38_spill] sm:$0xff] }
 0xcf8   :  { %v3591_v53 = vmul.f32 %v7387_v41, %v7866_v16 }
 0xcf9   :  { %v3459_v0 = vadd.f32 %v3439_v27, %v3379_v58 }
 0xcfa   :  { %v3657_v48 = vpop.permute.xlu1 %3656  ;;  %v3123_v25 = vpop.permute.xlu0 %3122 }
 0xcfb   :  { %v3597_v54 = vadd.f32 %v3589_v2, %v3459_v0  ;;  %v3141_v6 = vadd.f32 %v3123_v25, %v3061_v60 }
 0xcfd   :  { %v3221_v9 = vadd.f32 %v3203_v62, %v3141_v6  ;;  %v3677_v55 = vadd.f32 %v3657_v48, %v3597_v54  ;;  %v7654_v6 = vld [vmem:[%s7770_s3 + $0x1c0] sm:$0x1f] }
 0xcfe   :  { %v3737_v40 = vpop.permute.xlu1 %3736  ;;  %v3283_v31 = vpop.permute.xlu0 %3282 }
 0xcff   :  { %v3301_v26 = vadd.f32 %v3283_v31, %v3221_v9  ;;  %v3757_v15 = vadd.f32 %v3737_v40, %v3677_v55  ;;  %v4366_v31 = vrot.slane %v7654_v6, 4 }
 0xd02   :  { %v3661_v59 = vpop.permute.xlu1 %3660  ;;  %v3363_v34 = vpop.permute.xlu0 %3362 }
 0xd03   :  { %v3381_v61 = vadd.f32 %v3363_v34, %v3301_v26 }
 0xd06   :  { %v3741_v29 = vpop.permute.xlu1 %3740  ;;  %v3443_v43 = vpop.permute.xlu0 %3442 }
 0xd07   :  { %v3461_v23 = vadd.f32 %v3443_v43, %v3381_v61 }
 0xd09   :  { %v3599_v35 = vadd.f32 %v3591_v53, %v3461_v23 }
 0xd0a   :  { %v3821_v18 = vpop.permute.xlu1 %3820  ;;  %v3205_v20 = vpop.permute.xlu0 %3204 }
 0xd0b   :  { %v3222_v7 = vadd.f32 %v3205_v20, %v3142_v39  ;;  %v3679_v5 = vadd.f32 %v3661_v59, %v3599_v35  ;;  %v7867_v20 = vld [vmem:[#allocation48_spill] sm:$0xff] }
 0xd0d   :  { %v3302_v27 = vadd.f32 %v3285_v22, %v3222_v7  ;;  %v3998_v22 = vadd.f32 %v7614_v32, %v7612_v21  ;;  %v3759_v2 = vadd.f32 %v3741_v29, %v3679_v5  ;;  %v168_v21 = vld [vmem:[%s7770_s3 + $0x1b8] sm:$0xff]  ;;  %v7645_v32 = vld [vmem:[%s7770_s3 + $0x1c8] sm:$0x1f]  ;;  %v2903_v7 = vmul.f32 %v7445_v57, %v7867_v20 }
 0xd0e   :  { %v3663_v36 = vpop.permute.xlu1 %3662  ;;  %v3817_v62 = vpop.permute.xlu0 %3816  ;;  %v4364_v25 = vrot.slane %v168_v21, 4  ;;  %v4368_v54 = vrot.slane %v7645_v32, 4  ;;  %v3593_v57 = vmul.f32 %v7480_v44, %v7115_v11  ;;  %v7869_v11 = vld [vmem:[#allocation9_spill] sm:$0xff] }
 0xd0f   :  { %v3382_v28 = vadd.f32 %v3365_v4, %v3302_v27  ;;  %v3837_v63 = vadd.f32 %v3817_v62, %v3757_v15  ;;  %v4078_v17 = vadd.f32 %v7616_v24, %v3998_v22  ;;  %v167_v24 = vld [vmem:[%s7770_s3 + $0x1b0] sm:$0xff]  ;;  %v4165_v44 = vrot.slane %v7236_v45, %v7869_v11  ;;  %s5504_s3 = smov [#allocation4]  }
 0xd10   :  { %v4362_v40 = vrot.slane %v167_v24, 4  ;;  %v4365_v59 = vsel %vm208_vm0, %v4360_v47, %v4364_v25  ;;  %v4369_v34 = vsel %vm208_vm0, %v4364_v25, %v4368_v54  ;;  %v7692_v20 = vrot.slane %v7654_v6, %v7869_v11  ;;  %s4673_s24 = sshll.u32 %s5504_s3, 4  ;;  %s4674_s24 = int_to_ptr.vmem [resolvable:$true] %s4673_s24 }
 0xd11   :  { %v3462_v37 = vadd.f32 %v3445_v38, %v3382_v28  ;;  %v4158_v58 = vadd.f32 %v7618_v3, %v4078_v17  ;;  %v3839_v3 = vadd.f32 %v3821_v18, %v3759_v2  ;;  %v5208_v29 = vpack.c.bf16 %v4369_v34, %v4365_v59  ;;  %s5404_s25 = scalar_lea.vmem %s4674_s24, 256  ;;  %p5409_p1 = scmp.lt.s32.totalorder %s4674_s24, %s4674_s24 }
 0xd12   :  { %v3743_v14 = vpop.permute.xlu1 %3742  ;;  %v3897_v30 = vpop.permute.xlu0 %3896  ;;  %v4363_v43 = vsel %vm208_vm0, %v4358_v10, %v4362_v40  ;;  %v4367_v46 = vsel %vm208_vm0, %v4362_v40, %v4366_v31  ;;  %p5405_p0 = scmp.ne.s32.totalorder %s4674_s24, %s5404_s25  ;;  %p5410_p2 = scmp.lt.s32.totalorder %s5404_s25, %s5404_s25 }
 0xd13   :  { %v3600_v42 = vadd.f32 %v3592_v33, %v3462_v37  ;;  %v3917_v12 = vadd.f32 %v3897_v30, %v3837_v63  ;;  %v5210_v53 = vpack.c.bf16 %v4367_v46, %v4363_v43  ;;  %5209 = vmatprep.subr.bf16.mxu1 %v5208_v29 }
 0xd14   :  { %p5411_p3 = por %p5410_p2, %p5409_p1 }
 0xd15   :  { %v3680_v23 = vadd.f32 %v3663_v36, %v3600_v42  ;;  %5211 = vmatpush1.bf16.msra.mxu1 %v5210_v53 }
 0xd16   :  { %v3823_v41 = vpop.permute.xlu1 %3822  ;;  %v3977_v13 = vpop.permute.xlu0 %3976  ;;  %p5412_p4 = pnand %p5411_p3, %p5405_p0 }
 0xd17   :  { %v3997_v51 = vadd.f32 %v3977_v13, %v3917_v12  ;;  %v3760_v18 = vadd.f32 %v3743_v14, %v3680_v23 }
 0xd19   :  { %v3840_v62 = vadd.f32 %v3823_v41, %v3760_v18 }
 0xd1a   :  { %v3903_v19 = vpop.permute.xlu1 %3902  ;;  %v4057_v8 = vpop.permute.xlu0 %4056 }
 0xd1b   :  { %v4077_v4 = vadd.f32 %v4057_v8, %v3997_v51  ;;  %v3920_v36 = vadd.f32 %v3903_v19, %v3840_v62 }
 0xd1e   :  { %v4137_v1 = vpop.permute.xlu0 %4136  ;;  %v3047_v50 = vpop.permute.xlu1 %3046 }
 0xd1f   :  { %v4157_v38 = vadd.f32 %v4137_v1, %v4077_v4 }
 0xd21   :  { %5044 = vmatmul.mubr.msk.f32.gmra.mrb[30].mxu1 %vm329_vm2, %v4157_v38 }
 0xd22   :  { %5046 = vmatprep.mubr.msk.f32.mxu1 %vm329_vm2, %v4158_v58  ;;  %v3901_v60 = vpop.permute.xlu0 %3900  ;;  %v3127_v52 = vpop.permute.xlu1 %3126 }
 0xd23   :  { %v3919_v9 = vadd.f32 %v3901_v60, %v3839_v3 }
 0xd26   :  { %v3981_v0 = vpop.permute.xlu0 %3980  ;;  %v3207_v48 = vpop.permute.xlu1 %3206 }
 0xd27   :  { %v3999_v16 = vadd.f32 %v3981_v0, %v3919_v9 }
 0xd2a   :  { %v4061_v26 = vpop.permute.xlu0 %4060  ;;  %v3983_v61 = vpop.permute.xlu1 %3982 }
 0xd2b   :  { %v4079_v39 = vadd.f32 %v4061_v26, %v3999_v16  ;;  %v4000_v13 = vadd.f32 %v3983_v61, %v3920_v36 }
 0xd2e   :  { %v4141_v56 = vpop.permute.xlu0 %4140  ;;  %v3665_v35 = vpop.permute.xlu1 %3664 }
 0xd2f   :  { %v4159_v47 = vadd.f32 %v4141_v56, %v4079_v39 }
 0xd31   :  { %5047 = vmatmul.mubr.msk.f32.gmra.mrb[32].mxu1 %vm329_vm2, %v4159_v47 }
 0xd32   :  { %v3745_v49 = vpop.permute.xlu1 %3744  ;;  %v2967_v27 = vpop.permute.xlu0 %2966 }
 0xd33   :  { %v2983_v10 = vadd.f32 %v2967_v27, %v2903_v7  ;;  %v7696_v7 = vrot.slane %v7645_v32, %v7869_v11 }
 0xd35   :  { %v3063_v28 = vadd.f32 %v3047_v50, %v2983_v10 }
 0xd36   :  { %v3825_v55 = vpop.permute.xlu1 %3824  ;;  %v3287_v33 = vpop.permute.xlu0 %3286 }
 0xd37   :  { %v3143_v37 = vadd.f32 %v3127_v52, %v3063_v28 }
 0xd39   :  { %v3223_v30 = vadd.f32 %v3207_v48, %v3143_v37  ;;  %v7868_v48 = vmov 0.0  }
 0xd3a   :  { %v4063_v42 = vpop.permute.xlu1 %4062  ;;  %v3367_v15 = vpop.permute.xlu0 %3366 }
 0xd3b   :  { %v3303_v63 = vadd.f32 %v3287_v33, %v3223_v30  ;;  %v4080_v14 = vadd.f32 %v4063_v42, %v4000_v13 }
 0xd3d   :  { %v3383_v12 = vadd.f32 %v3367_v15, %v3303_v63 }
 0xd3e   :  { %v4143_v8 = vpop.permute.xlu1 %4142  ;;  %v3447_v51 = vpop.permute.xlu0 %3446 }
 0xd3f   :  { %v4160_v22 = vadd.f32 %v4143_v8, %v4080_v14  ;;  %v3463_v4 = vadd.f32 %v3447_v51, %v3383_v12 }
 0xd41   :  { %v3601_v41 = vadd.f32 %v3593_v57, %v3463_v4  ;;  %5049 = vmatprep.mubr.msk.f32.mxu1 %vm329_vm2, %v4160_v22 }
 0xd42   :  { %v3905_v17 = vpop.permute.xlu0 %3904 }
 0xd43   :  { %v3681_v1 = vadd.f32 %v3665_v35, %v3601_v41 }
 0xd45   :  { %v3761_v19 = vadd.f32 %v3745_v49, %v3681_v1 }
 0xd46   :  { %v3985_v50 = vpop.permute.xlu0 %3984 }
 0xd47   :  { %v3841_v5 = vadd.f32 %v3825_v55, %v3761_v19 }
 0xd49   :  { %v3921_v38 = vadd.f32 %v3905_v17, %v3841_v5 }
 0xd4a   :  { %v4065_v58 = vpop.permute.xlu0 %4064 }
 0xd4b   :  { %v4001_v60 = vadd.f32 %v3985_v50, %v3921_v38 }
 0xd4d   :  { %v4081_v52 = vadd.f32 %v4065_v58, %v4001_v60 }
 0xd4e   :  { %v4145_v2 = vpop.permute.xlu0 %4144 }
 0xd4f   :  { %v4161_v0 = vadd.f32 %v4145_v2, %v4081_v52 }
 0xd51   :  { %5050 = vmatmul.mubr.msk.f32.gmra.mrb[34].mxu1 %vm329_vm2, %v4161_v0 }
 0xd52   :  { %4474 = vmatprep.mubr.f32.mxu1 %v7868_v48 }
 0xda2   :  { %v5042_v21 = vpop.f32.mrb[28].mxu1 }
 0xda3   :  { %v4265_v24 = vpop.f32.mrb[29].mxu1  ;;  %v4271_v25 = vadd.f32 %v5042_v21, %v4165_v44 }
 0xda4   :  { %v4266_v3 = vadd.f32 %v4265_v24, %v4165_v44 }
 0xda5   :  { %v4305_v40 = vmax.f32 %v4271_v25, 0.0 }
 0xda6   :  { %v4304_v54 = vmax.f32 %v4266_v3, 0.0 }
 0xda8   :  { %4768 = vmatmul.mubr.msk.f32.vlgmr.msra.gmra.mrb[36].mxu1 %vm475_vm3, %v4304_v54 }
 0xda9   :  { %4480 = vmatprep.mubr.f32.mxu1 %v7868_v48 }
 0xdac   :  { %4769 = vmatmul.mubr.msk.f32.gmra.mrb[38].mxu1 %vm475_vm3, %v4305_v40 }
 0xdad   :  { %4486 = vmatprep.mubr.f32.mxu1 %v7868_v48 }
 0xdf4   :  { %v5045_v31 = vpop.f32.mrb[30].mxu1 }
 0xdf5   :  { %v4275_v9 = vpop.f32.mrb[31].mxu1  ;;  %v4281_v34 = vadd.f32 %v5045_v31, %v4165_v44 }
 0xdf6   :  { %v4276_v59 = vadd.f32 %v4275_v9, %v4165_v44 }
 0xdf7   :  { %v4307_v45 = vmax.f32 %v4281_v34, 0.0 }
 0xdf8   :  { %v4306_v26 = vmax.f32 %v4276_v59, 0.0 }
 0xdfa   :  { %4770 = vmatmul.mubr.msk.f32.gmra.mrb[40].mxu1 %vm475_vm3, %v4306_v26 }
 0xdfb   :  { %4492 = vmatprep.mubr.f32.mxu1 %v7868_v48 }
 0xdfe   :  { %4771 = vmatmul.mubr.msk.f32.gmra.mrb[42].mxu1 %vm475_vm3, %v4307_v45 }
 0xdff   :  { %4498 = vmatprep.mubr.f32.mxu1 %v7868_v48 }
 0xe04   :  { %v5048_v61 = vpop.f32.mrb[32].mxu1 }
 0xe05   :  { %v4285_v29 = vpop.f32.mrb[33].mxu1  ;;  %v4291_v46 = vadd.f32 %v5048_v61, %v4165_v44 }
 0xe06   :  { %v4286_v43 = vadd.f32 %v4285_v29, %v4165_v44 }
 0xe07   :  { %v4309_v53 = vmax.f32 %v4291_v46, 0.0 }
 0xe08   :  { %v4308_v16 = vmax.f32 %v4286_v43, 0.0 }
 0xe0a   :  { %4772 = vmatmul.mubr.msk.f32.gmra.mrb[44].mxu1 %vm475_vm3, %v4308_v16 }
 0xe0b   :  { %4504 = vmatprep.mubr.f32.mxu1 %v7868_v48 }
 0xe0e   :  { %4773 = vmatmul.mubr.msk.f32.gmra.mrb[46].mxu1 %vm475_vm3, %v4309_v53 }
 0xe0f   :  { %4510 = vmatprep.mubr.f32.mxu1 %v7868_v48 }
 0xe24   :  { %v5051_v23 = vpop.f32.mrb[34].mxu1 }
 0xe25   :  { %v4295_v39 = vpop.f32.mrb[35].mxu1  ;;  %v4301_v35 = vadd.f32 %v5051_v23, %v4165_v44 }
 0xe26   :  { %v4296_v56 = vadd.f32 %v4295_v39, %v4165_v44 }
 0xe27   :  { %v4311_v18 = vmax.f32 %v4301_v35, 0.0 }
 0xe28   :  { %v4310_v47 = vmax.f32 %v4296_v56, 0.0 }
 0xe2a   :  { %4774 = vmatmul.mubr.msk.f32.gmra.mrb[48].mxu1 %vm475_vm3, %v4310_v47 }
 0xe2b   :  { %4516 = vmatprep.mubr.f32.mxu1 %v7868_v48 }
 0xe2e   :  { %4775 = vmatmul.mubr.msk.f32.gmra.mrb[50].mxu1 %vm475_vm3, %v4311_v18 }
 0xe7b   :  { %v4476_v49 = vpop.f32.mrb[36].mxu1 }
 0xe7c   :  { %v4477_v27 = vadd.f32 %v4476_v49, %v7692_v20  ;;  %v4478_v10 = vpop.f32.mrb[37].mxu1 }
 0xe7d   :  { %v4479_v62 = vadd.f32 %v4478_v10, %v7696_v7 }
 0xe7e   :  { %v4523_v28 = vrot.slane %v4477_v27, 4 }
 0xe7f   :  { %v4529_v55 = vrot.slane %v4479_v62, 4  ;;  %v4482_v33 = vpop.f32.mrb[38].mxu1 }
 0xe80   :  { %v4524_v37 = vmax.f32 %v4477_v27, %v4523_v28  ;;  %v4483_v36 = vadd.f32 %v4482_v33, %v7692_v20  ;;  %v4484_v30 = vpop.f32.mrb[39].mxu1 }
 0xe81   :  { %v4530_v42 = vmax.f32 %v4479_v62, %v4529_v55  ;;  %v4485_v6 = vadd.f32 %v4484_v30, %v7696_v7 }
 0xe82   :  { %v4525_v15 = vrot.slane %v4524_v37, 2  ;;  %v4535_v13 = vrot.slane %v4483_v36, 4 }
 0xe83   :  { %v4531_v32 = vrot.slane %v4530_v42, 2  ;;  %v4541_v63 = vrot.slane %v4485_v6, 4 }
 0xe84   :  { %v4526_v14 = vmax.f32 %v4524_v37, %v4525_v15  ;;  %v4536_v12 = vmax.f32 %v4483_v36, %v4535_v13 }
 0xe85   :  { %v4532_v8 = vmax.f32 %v4530_v42, %v4531_v32  ;;  %v4542_v51 = vmax.f32 %v4485_v6, %v4541_v63 }
 0xe86   :  { %v4537_v22 = vrot.slane %v4536_v12, 2  ;;  %v4527_v4 = vrot.slane %v4526_v14, 1 }
 0xe87   :  { %v4543_v57 = vrot.slane %v4542_v51, 2  ;;  %v4533_v17 = vrot.slane %v4532_v8, 1 }
 0xe88   :  { %v4538_v41 = vmax.f32 %v4536_v12, %v4537_v22  ;;  %v4528_v5 = vmax.f32 %v4526_v14, %v4527_v4 }
 0xe89   :  { %v4544_v1 = vmax.f32 %v4542_v51, %v4543_v57  ;;  %v4534_v58 = vmax.f32 %v4532_v8, %v4533_v17 }
 0xe8a   :  { %v4539_v19 = vrot.slane %v4538_v41, 1 }
 0xe8b   :  { %v4545_v50 = vrot.slane %v4544_v1, 1 }
 0xe8c   :  { %v4540_v38 = vmax.f32 %v4538_v41, %v4539_v19 }
 0xe8d   :  { %v4546_v60 = vmax.f32 %v4544_v1, %v4545_v50 }
 0xe8e   :  { %v7703_v52 = vsel %vm745_vm5, %v4540_v38, %v4528_v5 }
 0xe8f   :  { %v4642_v2 = vsel %vm745_vm5, %v4546_v60, %v4534_v58 }
 0xe90   :  { %5415 = shalt.err (!%p5412_p4)
}
 0xe91   :  { %s5416_s28 = scalar_lea.hbm %s7772_s5, 256 }
 0xe92   :  { %p5417_p5 = scmp.ne.s32.totalorder %s7772_s5, %s5416_s28  ;;  %p5420_p6 = scmp.lt.u32.totalorder %s5416_s28, %s7772_s5 }
 0xe94   :  { %p5422_p7 = pnand %p5420_p6, %p5417_p5 }
 0xe96   :  { %5425 = shalt.err (!%p5422_p7)
}
 0xe97   :  { %4676 = dma.vmem_to_hbm [thread:$0]  %s4674_s24, 256, %s7772_s5, [#allocation5]  }
 0xe98   :  { %s5505_s14 = smov [#allocation6]  }
 0xe99   :  { %s4683_s15 = sshll.u32 %s5505_s14, 4  ;;  %s4684_s15 = int_to_ptr.vmem [resolvable:$true] %s4683_s15 }
 0xe9a   :  { %s5426_s16 = scalar_lea.vmem %s4684_s15, 256  ;;  %p5431_p9 = scmp.lt.s32.totalorder %s4684_s15, %s4684_s15 }
 0xe9b   :  { %p5427_p8 = scmp.ne.s32.totalorder %s4684_s15, %s5426_s16  ;;  %p5432_p10 = scmp.lt.s32.totalorder %s5426_s16, %s5426_s16 }
 0xe9d   :  { %p5433_p11 = por %p5432_p10, %p5431_p9 }
 0xe9f   :  { %p5434_p12 = pnand %p5433_p11, %p5427_p8 }
 0xea1   :  { %5437 = shalt.err (!%p5434_p12)
}
 0xea2   :  { %s5438_s2 = scalar_lea.hbm %s7773_s6, 256 }
 0xea3   :  { %p5439_p13 = scmp.ne.s32.totalorder %s7773_s6, %s5438_s2  ;;  %p5442_p0 = scmp.lt.u32.totalorder %s5438_s2, %s7773_s6 }
 0xea5   :  { %p5444_p1 = pnand %p5442_p0, %p5439_p13 }
 0xea7   :  { %5447 = shalt.err (!%p5444_p1)
}
 0xea8   :  { %4686 = dma.vmem_to_hbm [thread:$0]  %s4684_s15, 256, %s7773_s6, [#allocation5]  }
 0xea9   :  { %s5506_s6 = smov [#allocation2]  }
 0xeaa   :  { %s4663_s20 = sshll.u32 %s5506_s6, 4  ;;  %s4664_s20 = int_to_ptr.vmem [resolvable:$true] %s4663_s20 }
 0xeab   :  { %s5448_s21 = scalar_lea.vmem %s4664_s20, 256  ;;  %p5453_p3 = scmp.lt.s32.totalorder %s4664_s20, %s4664_s20 }
 0xeac   :  { %p5449_p2 = scmp.ne.s32.totalorder %s4664_s20, %s5448_s21  ;;  %p5454_p4 = scmp.lt.s32.totalorder %s5448_s21, %s5448_s21 }
 0xeae   :  { %p5455_p5 = por %p5454_p4, %p5453_p3 }
 0xeb0   :  { %p5456_p6 = pnand %p5455_p5, %p5449_p2 }
 0xecd   :  { %v4488_v0 = vpop.f32.mrb[40].mxu1 }
 0xece   :  { %v4489_v48 = vadd.f32 %v4488_v0, %v7692_v20  ;;  %v4490_v11 = vpop.f32.mrb[41].mxu1 }
 0xecf   :  { %v4491_v44 = vadd.f32 %v4490_v11, %v7696_v7 }
 0xed0   :  { %v4547_v21 = vrot.slane %v4489_v48, 4 }
 0xed1   :  { %v4553_v24 = vrot.slane %v4491_v44, 4  ;;  %v4494_v3 = vpop.f32.mrb[42].mxu1 }
 0xed2   :  { %v4548_v25 = vmax.f32 %v4489_v48, %v4547_v21  ;;  %v4495_v54 = vadd.f32 %v4494_v3, %v7692_v20  ;;  %v4496_v40 = vpop.f32.mrb[43].mxu1 }
 0xed3   :  { %v4554_v31 = vmax.f32 %v4491_v44, %v4553_v24  ;;  %v4497_v9 = vadd.f32 %v4496_v40, %v7696_v7 }
 0xed4   :  { %v4549_v59 = vrot.slane %v4548_v25, 2  ;;  %v4559_v34 = vrot.slane %v4495_v54, 4 }
 0xed5   :  { %v4555_v26 = vrot.slane %v4554_v31, 2  ;;  %v4565_v45 = vrot.slane %v4497_v9, 4 }
 0xed6   :  { %v4550_v61 = vmax.f32 %v4548_v25, %v4549_v59  ;;  %v4560_v29 = vmax.f32 %v4495_v54, %v4559_v34 }
 0xed7   :  { %v4556_v43 = vmax.f32 %v4554_v31, %v4555_v26  ;;  %v4566_v46 = vmax.f32 %v4497_v9, %v4565_v45 }
 0xed8   :  { %v4551_v16 = vrot.slane %v4550_v61, 1  ;;  %v4561_v53 = vrot.slane %v4560_v29, 2 }
 0xed9   :  { %v4557_v23 = vrot.slane %v4556_v43, 1  ;;  %v4567_v39 = vrot.slane %v4566_v46, 2 }
 0xeda   :  { %v4552_v56 = vmax.f32 %v4550_v61, %v4551_v16  ;;  %v4562_v35 = vmax.f32 %v4560_v29, %v4561_v53 }
 0xedb   :  { %v4558_v47 = vmax.f32 %v4556_v43, %v4557_v23  ;;  %v4568_v18 = vmax.f32 %v4566_v46, %v4567_v39 }
 0xedc   :  { %v4636_v49 = vsel %vm747_vm6, %v4552_v56, %v7703_v52  ;;  %v4563_v27 = vrot.slane %v4562_v35, 1 }
 0xedd   :  { %v4643_v10 = vsel %vm747_vm6, %v4558_v47, %v4642_v2  ;;  %v4569_v62 = vrot.slane %v4568_v18, 1  ;;  %v4500_v28 = vpop.f32.mrb[44].mxu1 }
 0xede   :  { %v4564_v55 = vmax.f32 %v4562_v35, %v4563_v27  ;;  %v4501_v33 = vadd.f32 %v4500_v28, %v7692_v20  ;;  %v4502_v37 = vpop.f32.mrb[45].mxu1 }
 0xedf   :  { %v4570_v36 = vmax.f32 %v4568_v18, %v4569_v62  ;;  %v4503_v30 = vadd.f32 %v4502_v37, %v7696_v7 }
 0xee0   :  { %v4571_v42 = vrot.slane %v4501_v33, 4  ;;  %v4637_v6 = vsel %vm749_vm7, %v4564_v55, %v4636_v49 }
 0xee1   :  { %v4577_v15 = vrot.slane %v4503_v30, 4  ;;  %v4506_v13 = vpop.f32.mrb[46].mxu1  ;;  %v4644_v32 = vsel %vm749_vm7, %v4570_v36, %v4643_v10 }
 0xee2   :  { %v4572_v63 = vmax.f32 %v4501_v33, %v4571_v42  ;;  %v4507_v14 = vadd.f32 %v4506_v13, %v7692_v20  ;;  %v4508_v12 = vpop.f32.mrb[47].mxu1 }
 0xee3   :  { %v4578_v8 = vmax.f32 %v4503_v30, %v4577_v15  ;;  %v4509_v51 = vadd.f32 %v4508_v12, %v7696_v7 }
 0xee4   :  { %v4573_v22 = vrot.slane %v4572_v63, 2  ;;  %v4583_v57 = vrot.slane %v4507_v14, 4 }
 0xee5   :  { %v4579_v4 = vrot.slane %v4578_v8, 2  ;;  %v4589_v41 = vrot.slane %v4509_v51, 4 }
 0xee6   :  { %v4574_v17 = vmax.f32 %v4572_v63, %v4573_v22  ;;  %v4584_v1 = vmax.f32 %v4507_v14, %v4583_v57 }
 0xee7   :  { %v4580_v19 = vmax.f32 %v4578_v8, %v4579_v4  ;;  %v4590_v50 = vmax.f32 %v4509_v51, %v4589_v41 }
 0xee8   :  { %v4575_v5 = vrot.slane %v4574_v17, 1  ;;  %v4585_v38 = vrot.slane %v4584_v1, 2 }
 0xee9   :  { %v4581_v58 = vrot.slane %v4580_v19, 1  ;;  %v4591_v60 = vrot.slane %v4590_v50, 2 }
 0xeea   :  { %v4576_v52 = vmax.f32 %v4574_v17, %v4575_v5  ;;  %v4586_v2 = vmax.f32 %v4584_v1, %v4585_v38 }
 0xeeb   :  { %v4582_v0 = vmax.f32 %v4580_v19, %v4581_v58  ;;  %v4592_v48 = vmax.f32 %v4590_v50, %v4591_v60 }
 0xeec   :  { %v4587_v11 = vrot.slane %v4586_v2, 1  ;;  %v4638_v44 = vsel %vm751_vm8, %v4576_v52, %v4637_v6 }
 0xeed   :  { %v4593_v21 = vrot.slane %v4592_v48, 1  ;;  %v4645_v24 = vsel %vm751_vm8, %v4582_v0, %v4644_v32 }
 0xeee   :  { %v4588_v3 = vmax.f32 %v4586_v2, %v4587_v11 }
 0xeef   :  { %v4594_v25 = vmax.f32 %v4592_v48, %v4593_v21 }
 0xef0   :  { %v4639_v54 = vsel %vm753_vm9, %v4588_v3, %v4638_v44 }
 0xef1   :  { %v4646_v40 = vsel %vm753_vm9, %v4594_v25, %v4645_v24 }
 0xefd   :  { %v4512_v31 = vpop.f32.mrb[48].mxu1 }
 0xefe   :  { %v4513_v9 = vadd.f32 %v4512_v31, %v7692_v20  ;;  %v4514_v59 = vpop.f32.mrb[49].mxu1 }
 0xeff   :  { %v4515_v34 = vadd.f32 %v4514_v59, %v7696_v7 }
 0xf00   :  { %v4595_v26 = vrot.slane %v4513_v9, 4 }
 0xf01   :  { %v4601_v45 = vrot.slane %v4515_v34, 4  ;;  %v4518_v61 = vpop.f32.mrb[50].mxu1 }
 0xf02   :  { %v4596_v29 = vmax.f32 %v4513_v9, %v4595_v26  ;;  %v4519_v43 = vadd.f32 %v4518_v61, %v7692_v20  ;;  %v4520_v46 = vpop.f32.mrb[51].mxu1 }
 0xf03   :  { %v4602_v16 = vmax.f32 %v4515_v34, %v4601_v45  ;;  %v4521_v53 = vadd.f32 %v4520_v46, %v7696_v7 }
 0xf04   :  { %v4597_v23 = vrot.slane %v4596_v29, 2  ;;  %v4607_v39 = vrot.slane %v4519_v43, 4 }
 0xf05   :  { %v4603_v56 = vrot.slane %v4602_v16, 2  ;;  %v4613_v35 = vrot.slane %v4521_v53, 4 }
 0xf06   :  { %v4598_v47 = vmax.f32 %v4596_v29, %v4597_v23  ;;  %v4608_v18 = vmax.f32 %v4519_v43, %v4607_v39 }
 0xf07   :  { %v4604_v49 = vmax.f32 %v4602_v16, %v4603_v56  ;;  %v4614_v27 = vmax.f32 %v4521_v53, %v4613_v35 }
 0xf08   :  { %v4599_v10 = vrot.slane %v4598_v47, 1  ;;  %v4609_v62 = vrot.slane %v4608_v18, 2 }
 0xf09   :  { %v4605_v28 = vrot.slane %v4604_v49, 1  ;;  %v4615_v55 = vrot.slane %v4614_v27, 2 }
 0xf0a   :  { %v4600_v33 = vmax.f32 %v4598_v47, %v4599_v10  ;;  %v4610_v37 = vmax.f32 %v4608_v18, %v4609_v62 }
 0xf0b   :  { %v4606_v36 = vmax.f32 %v4604_v49, %v4605_v28  ;;  %v4616_v20 = vmax.f32 %v4614_v27, %v4615_v55 }
 0xf0c   :  { %v4611_v30 = vrot.slane %v4610_v37, 1  ;;  %v4640_v42 = vsel %vm755_vm11, %v4600_v33, %v4639_v54 }
 0xf0d   :  { %v4617_v7 = vrot.slane %v4616_v20, 1  ;;  %v4647_v6 = vsel %vm755_vm11, %v4606_v36, %v4646_v40 }
 0xf0e   :  { %v4612_v15 = vmax.f32 %v4610_v37, %v4611_v30 }
 0xf0f   :  { %v4618_v13 = vmax.f32 %v4616_v20, %v4617_v7 }
 0xf10   :  { %v4641_v32 = vsel %vm757_vm12, %v4612_v15, %v4640_v42 }
 0xf11   :  { %v4648_v63 = vsel %vm757_vm12, %v4618_v13, %v4647_v6  ;;  %4651 = vst [vmem:[#allocation2] sm:$0xff] %v4641_v32 }
 0xf12   :  { %4652 = vst [vmem:[#allocation2 + $0x8] sm:$0xff] %v4648_v63 }
 0xf13   :  { %5459 = shalt.err (!%p5456_p6)
}
 0xf14   :  { %s5460_s1 = scalar_lea.hbm %s7771_s4, 256 }
 0xf15   :  { %p5461_p7 = scmp.ne.s32.totalorder %s7771_s4, %s5460_s1  ;;  %p5464_p8 = scmp.lt.u32.totalorder %s5460_s1, %s7771_s4 }
 0xf17   :  { %p5466_p9 = pnand %p5464_p8, %p5461_p7 }
 0xf19   :  { %5469 = shalt.err (!%p5466_p9)
}
 0xf1a   :  { %4666 = dma.vmem_to_hbm [thread:$0]  %s4664_s20, 256, %s7771_s4, [#allocation3]  }
 0xf1b   :  { %5470 = dma.done.wait [#allocation3], 256  }
 0xf1c   :  { %5471 = vsyncadd [#allocation3], 4294967040 }
 0xf1d   :  { %5472 = dma.done.wait [#allocation5], 512  }
 0xf1e   :  { %5473 = vsyncadd [#allocation5], 4294966784 }
 0xf1f   :  { %4696 = vsyncpa [#allocation3], 1 }
 0xf20   :  { %4697 = vsyncpa [#allocation5], 1 }

</bundles_post_ra>
